<compile_context>
chip_gen: v7x
topology: tpu7x:2x2x1
jax: 0.10.0
libtpu: 0.0.40
codegen_flags: <defaults>
</compile_context>

<pallas_src>
import functools

import jax
import jax.numpy as jnp
from jax.experimental import pallas as pl
from jax.experimental.pallas import tpu as pltpu

CFG = dict(
    c_in=4, c_hidden=8, h_hidden=16, w_hidden=16,
    num_classes=10, identiClasses=5,
    kernel_size_x=3, stride_x=1, padding_x=1, pooling_x=False,
    kernel_size_s=3, threshold=30, time_step=8, vth=1.0,
    dropout=0.0, leaky=None,
)

_SPAD_PAD = 8   # zero border rows above/below the spike rows in the scratch


def full_spec(shape):
    n = len(shape)
    return pl.BlockSpec(shape, lambda *_: (0,) * n)


# ---------------------------------------------------------------------------
# Fused kernel: network_x (conv + bias + eval-BN) -> T-step IF recurrence.
# One grid step == TB batch images stacked along rows (lane-dense layout:
# each image row is a (W*C)=128-wide vector, w-major / c-minor).
# ---------------------------------------------------------------------------
def fused_snn_kernel(xcat_ref, tx_ref, shift_ref, ts_ref, feat_ref, spad_ref,
                     *, vth, T, H):
    # xcat_ref : (M, KX*W*Cin)   kh-shifted, K-concatenated input rows (f32)
    # tx_ref   : (KX*W*Cin, WC)  conv_x row-Toeplitz, K-concatenated, BN folded
    # shift_ref: (1, WC)         per-lane affine shift (conv bias + BN)
    # ts_ref   : (KS*WC, WC)     conv_s row-Toeplitz, K-concatenated (bf16)
    # feat_ref : (M, WC)         output firing rate (lane-dense)
    # spad_ref : (M + 16, WC)    spike scratch; spikes at rows [P, P+M)
    f32 = jnp.float32
    M, WC = feat_ref.shape
    P = _SPAD_PAD

    # ---- network_x: all kh taps folded into one (M, 192)@(192, 128) matmul.
    x1 = jnp.dot(xcat_ref[...], tx_ref[...],
                 preferred_element_type=f32) + shift_ref[...]

    # Image-boundary masks for the +/-1 row-shifted feedback taps (hoisted).
    rid = jax.lax.broadcasted_iota(jnp.int32, (M, 1), 0)
    not_first_row = (rid % H) != 0          # kh=0 tap is zero at row 0
    not_last_row = (rid % H) != (H - 1)     # kh=2 tap is zero at row H-1

    # Zero only the border rows of the spike scratch; the interior rows are
    # fully overwritten every time step before they are read.
    zrows = jnp.zeros((P, WC), f32)
    spad_ref[0:P, :] = zrows
    spad_ref[P + M:P + M + P, :] = zrows

    # ---- IF recurrence; u, s and the rate accumulator stay in registers ----
    # t = 0: spikes start at zero, so the feedback conv contributes nothing.
    u = x1
    s = (u >= vth).astype(f32)
    u = u - vth * s
    rate = s

    for _ in range(1, T):
        spad_ref[P:P + M, :] = s                               # aligned store
        p_up = jnp.where(not_first_row, spad_ref[P - 1:P - 1 + M, :], 0.0)
        p_dn = jnp.where(not_last_row, spad_ref[P + 1:P + 1 + M, :], 0.0)
        # one K=3*WC matmul per step; spike LHS is exact in bf16
        lhs = jnp.concatenate([p_up, s, p_dn], axis=1).astype(jnp.bfloat16)
        fb = jnp.dot(lhs, ts_ref[...], preferred_element_type=f32)
        u = u + fb + x1
        s = (u >= vth).astype(f32)
        u = u - vth * s
        rate = rate + s

    feat_ref[...] = rate * (1.0 / T)                           # firing rate z


def fused_forward(xcat, tx_cat, shift_vec, ts_cat, *, vth, T, H, TB):
    BpH, KXWCin = xcat.shape
    KSWC, WC = ts_cat.shape
    M = TB * H
    n_tiles = BpH // M
    kern = functools.partial(fused_snn_kernel, vth=vth, T=T, H=H)
    return pl.pallas_call(
        kern,
        out_shape=jax.ShapeDtypeStruct((BpH, WC), jnp.float32),
        grid=(n_tiles,),
        in_specs=[
            pl.BlockSpec((M, KXWCin), lambda i: (i, 0)),
            pl.BlockSpec((KXWCin, WC), lambda i: (0, 0)),
            pl.BlockSpec((1, WC), lambda i: (0, 0)),
            pl.BlockSpec((KSWC, WC), lambda i: (0, 0)),
        ],
        out_specs=pl.BlockSpec((M, WC), lambda i: (i, 0)),
        scratch_shapes=[pltpu.VMEM((M + 2 * _SPAD_PAD, WC), jnp.float32)],
        compiler_params=pltpu.CompilerParams(
            dimension_semantics=("parallel",)),
    )(xcat, tx_cat, shift_vec, ts_cat)


# ---------------------------------------------------------------------------
# Classifier / fully-connected head: one (B, F)@(F, O) matmul kernel.
# ---------------------------------------------------------------------------
def linear_kernel(z_ref, w_ref, b_ref, out_ref):
    out_ref[...] = (jnp.dot(z_ref[...], w_ref[...],
                            preferred_element_type=jnp.float32) + b_ref[...])


def linear(z, w_io, b):
    z = z.astype(jnp.float32)
    w_io = w_io.astype(jnp.float32)
    b = b.astype(jnp.float32)
    B, F = z.shape
    O = w_io.shape[1]
    return pl.pallas_call(
        linear_kernel,
        out_shape=jax.ShapeDtypeStruct((B, O), jnp.float32),
        grid=(1,),
        in_specs=[full_spec((B, F)), full_spec((F, O)), full_spec((1, O))],
        out_specs=full_spec((B, O)),
    )(z, w_io, b.reshape(1, O))


# ---------------------------------------------------------------------------
# Host-side weight preparation (tiny, runs once per traced forward).
# ---------------------------------------------------------------------------
def _build_row_toeplitz(w_hwio, width, pad):
    """(KH,KW,Ci,Co) conv weights -> (KH, width*Ci, width*Co) matrices that
    encode the kw shift + channel mixing of one kernel row of a stride-1 conv
    with `pad` zero padding along W (w-major, c-minor lane order)."""
    KH, KW, Ci, Co = w_hwio.shape
    w_in = jnp.arange(width)[:, None]
    w_out = jnp.arange(width)[None, :]
    kw = w_in - w_out + pad                                   # (Win, Wout)
    valid = (kw >= 0) & (kw < KW)
    g = jnp.take(w_hwio, jnp.clip(kw, 0, KW - 1), axis=1)     # (KH,Win,Wout,Ci,Co)
    g = g * valid[None, :, :, None, None].astype(w_hwio.dtype)
    g = jnp.transpose(g, (0, 1, 3, 2, 4))                     # (KH,Win,Ci,Wout,Co)
    return g.reshape(KH, width * Ci, width * Co)


# ---------------------------------------------------------------------------
# Parameters (deterministic, synthetic — shapes follow the module __init__).
# ---------------------------------------------------------------------------
def init_params(key, cfg):
    c_in, c_h = cfg['c_in'], cfg['c_hidden']
    kx, ks = cfg['kernel_size_x'], cfg['kernel_size_s']
    feat = cfg['c_hidden'] * cfg['h_hidden'] * cfg['w_hidden']
    keys = jax.random.split(key, 8)

    def u(k, shape, fan_in):
        bound = 1.0 / jnp.sqrt(fan_in)
        return jax.random.uniform(k, shape, jnp.float32, -bound, bound)

    params = {
        # network_x conv: PyTorch OIHW -> stored as HWIO
        'wx': jnp.transpose(u(keys[0], (c_h, c_in, kx, kx), c_in * kx * kx), (2, 3, 1, 0)),
        'wx_b': u(keys[1], (c_h,), c_in * kx * kx),
        'bn_gamma': jnp.ones((c_h,), jnp.float32),
        'bn_beta': jnp.zeros((c_h,), jnp.float32),
        'bn_mean': jnp.zeros((c_h,), jnp.float32),
        'bn_var': jnp.ones((c_h,), jnp.float32),
        # network_s conv (bias=False, BN=False), HWIO
        'ws': jnp.transpose(u(keys[2], (c_h, c_h, ks, ks), c_h * ks * ks), (2, 3, 1, 0)),
        # classifier heads, stored [in, out]; input index = NCHW flatten order
        'cls_w': u(keys[3], (feat, cfg['num_classes']), feat),
        'cls_b': u(keys[4], (cfg['num_classes'],), feat),
        'cls2_w': u(keys[5], (feat, cfg['identiClasses']), feat),
        'cls2_b': u(keys[6], (cfg['identiClasses'],), feat),
    }
    return params


# ---------------------------------------------------------------------------
# Full forward (mirrors SNNIDEConvNet.forward).
# ---------------------------------------------------------------------------
@functools.partial(jax.jit, static_argnames=('forward_type', 'time_step', 'vth'))
def snn_ide_convnet_forward(params, x, forward_type='normal',
                            time_step=CFG['time_step'], vth=CFG['vth']):
    if forward_type == 'fc':
        return linear(x, params['cls_w'], params['cls_b'])

    B, Cin, H, W = x.shape
    C = CFG['c_hidden']
    KX, KS = CFG['kernel_size_x'], CFG['kernel_size_s']
    pad = CFG['padding_x']
    T = int(time_step)
    assert KS == 3, "fused kernel hard-codes the 3-tap (kh=-1,0,+1) feedback conv"

    # Batch tile: target M = TB*H >= 256 matmul rows (v6e/v7x MXU), capped at B.
    TB = max(1, min(B, max(1, 256 // H)))
    Bp = ((B + TB - 1) // TB) * TB

    # input: NCHW -> per-row lane-dense (B, H, W*Cin); kh-shifted copies are
    # K-concatenated on the host so conv_x is a single matmul in the kernel.
    xr = jnp.transpose(x, (0, 2, 3, 1)).reshape(B, H, W * Cin).astype(jnp.float32)
    if Bp > B:
        xr = jnp.concatenate(
            [xr, jnp.zeros((Bp - B, H, W * Cin), jnp.float32)], axis=0)
    xp = jnp.pad(xr, ((0, 0), (pad, KX - 1 - pad), (0, 0)))
    xcat = jnp.concatenate([xp[:, kh:kh + H, :] for kh in range(KX)], axis=-1)
    xcat = xcat.reshape(Bp * H, KX * W * Cin)

    # network_x: conv bias + eval-mode BN fused into per-output-channel affine,
    # scale folded into the Toeplitz weights, shift kept as a per-lane vector.
    scale = params['bn_gamma'] * jax.lax.rsqrt(params['bn_var'] + 1e-5)
    shift = params['bn_beta'] + (params['wx_b'] - params['bn_mean']) * scale
    tx = _build_row_toeplitz(params['wx'], W, pad) * jnp.tile(scale, W)[None, None, :]
    tx_cat = tx.reshape(KX * W * Cin, W * C)
    shift_vec = jnp.tile(shift, W).reshape(1, W * C)

    # network_s._wnorm(norm_range=1.0): Frobenius-normalized feedback weights.
    ws = params['ws'] * jax.lax.rsqrt(jnp.sum(params['ws'] * params['ws']))
    ts_cat = _build_row_toeplitz(ws, W, KS // 2).reshape(KS * W * C, W * C)
    ts_cat = ts_cat.astype(jnp.bfloat16)   # spikes are 0/1 -> bf16 matmul is safe

    feat = fused_forward(xcat, tx_cat, shift_vec, ts_cat,
                         vth=float(vth), T=T, H=H, TB=TB)
    # firing rate, (h, w, c) flatten order, real batch rows only
    z_hwc = feat.reshape(Bp, H * W * C)[:B]

    if forward_type == 'feature':
        # back to PyTorch's z.reshape(B, -1) (NCHW flatten) ordering
        return z_hwc.reshape(B, H, W, C).transpose(0, 3, 1, 2).reshape(B, -1)

    if forward_type == 'identity':
        cw, cb = params['cls2_w'], params['cls2_b']
    else:
        cw, cb = params['cls_w'], params['cls_b']
    O = cw.shape[1]
    # permute classifier input rows from NCHW-flatten order to (h, w, c) order
    wc_hwc = cw.reshape(C, H, W, O).transpose(1, 2, 0, 3).reshape(H * W * C, O)
    return linear(z_hwc, wc_hwc, cb)        # 'normal' or 'identity'


if __name__ == "__main__":
    key = jax.random.PRNGKey(0)
    pkey, xkey = jax.random.split(key)
    params = init_params(pkey, CFG)

    # input: B=2, c_in=4, 16x16 (NCHW, PyTorch convention)
    x = jax.random.normal(xkey, (2, CFG['c_in'], 16, 16), jnp.float32)

    y = snn_ide_convnet_forward(params, x, forward_type='normal')
    y = jax.block_until_ready(y)
    assert y.shape == (2, CFG['num_classes'])

    y2 = snn_ide_convnet_forward(params, x, forward_type='identity')
    y2 = jax.block_until_ready(y2)
    assert y2.shape == (2, CFG['identiClasses'])

    z = snn_ide_convnet_forward(params, x, forward_type='feature')
    z = jax.block_until_ready(z)
    assert z.shape == (2, CFG['c_hidden'] * 16 * 16)

    print("KERNEL_OK")
</pallas_src>

<mosaic_0001>
module attributes {stable_mosaic.version = 11 : i64} {
  func.func @fused_snn_kernel(%arg0: i32, %arg1: memref<32x192xf32, #tpu.memory_space<vmem>>, %arg2: memref<192x128xf32, #tpu.memory_space<vmem>>, %arg3: memref<1x128xf32, #tpu.memory_space<vmem>>, %arg4: memref<384x128xbf16, #tpu.memory_space<vmem>>, %arg5: memref<32x128xf32, #tpu.memory_space<vmem>>, %arg6: memref<48x128xf32, #tpu.memory_space<vmem>>) attributes {dimension_semantics = [#tpu.dimension_semantics<parallel>], iteration_bounds = array<i64: 1>, scalar_prefetch = 0 : i64, scratch_operands = 1 : i64, tpu.core_type = #tpu.core_type<tc>, window_params = [{transform_indices = @transform_0, window_bounds = array<i64: 32, 192>}, {pipeline_mode = #tpu.pipeline_mode<synchronous>, transform_indices = @transform_1, window_bounds = array<i64: 192, 128>}, {pipeline_mode = #tpu.pipeline_mode<synchronous>, transform_indices = @transform_2, window_bounds = array<i64: 1, 128>}, {pipeline_mode = #tpu.pipeline_mode<synchronous>, transform_indices = @transform_3, window_bounds = array<i64: 384, 128>}, {transform_indices = @transform_4, window_bounds = array<i64: 32, 128>}]} {
    %c0 = arith.constant 0 : index
    %c0_0 = arith.constant 0 : index
    %0 = vector.load %arg1[%c0, %c0_0] : memref<32x192xf32, #tpu.memory_space<vmem>>, vector<32x192xf32>
    %c0_1 = arith.constant 0 : index
    %c0_2 = arith.constant 0 : index
    %1 = vector.load %arg2[%c0_1, %c0_2] : memref<192x128xf32, #tpu.memory_space<vmem>>, vector<192x128xf32>
    %cst = arith.constant dense<0.000000e+00> : vector<32x128xf32>
    %2 = tpu.matmul %0, %1, %cst {dimension_numbers = #tpu.dot_dimension_numbers<[1], [0], [0], [1], [0, 0, 1, 1], [], []>} : vector<32x192xf32>, vector<192x128xf32>, vector<32x128xf32> -> vector<32x128xf32>
    %c0_3 = arith.constant 0 : index
    %c0_4 = arith.constant 0 : index
    %3 = vector.load %arg3[%c0_3, %c0_4] : memref<1x128xf32, #tpu.memory_space<vmem>>, vector<1x128xf32>
    %4 = vector.broadcast %3 : vector<1x128xf32> to vector<32x128xf32>
    %5 = arith.addf %2, %4 : vector<32x128xf32>
    %6 = tpu.iota {dimensions = array<i32: 0>} : vector<32x1xi32>
    %c16_i32 = arith.constant 16 : i32
    %c0_i32 = arith.constant 0 : i32
    %7 = arith.cmpi eq, %c16_i32, %c0_i32 : i32
    %c1_i32 = arith.constant 1 : i32
    %8 = arith.select %7, %c1_i32, %c16_i32 : i32
    %9 = vector.broadcast %8 : i32 to vector<32x1xi32>
    %10 = arith.remsi %6, %9 : vector<32x1xi32>
    %c0_i32_5 = arith.constant 0 : i32
    %11 = vector.broadcast %c0_i32_5 : i32 to vector<32x1xi32>
    %12 = arith.cmpi ne, %10, %11 : vector<32x1xi32>
    %c0_i32_6 = arith.constant 0 : i32
    %13 = vector.broadcast %c0_i32_6 : i32 to vector<32x1xi32>
    %14 = arith.cmpi slt, %10, %13 : vector<32x1xi32>
    %c0_i32_7 = arith.constant 0 : i32
    %15 = arith.cmpi slt, %8, %c0_i32_7 : i32
    %16 = vector.broadcast %15 : i1 to vector<32x1xi1>
    %17 = vector.broadcast %16 : vector<32x1xi1> to vector<32x1xi1>
    %18 = arith.xori %14, %17 : vector<32x1xi1>
    %19 = arith.andi %18, %12 : vector<32x1xi1>
    %20 = vector.broadcast %8 : i32 to vector<32x1xi32>
    %21 = arith.addi %10, %20 : vector<32x1xi32>
    %22 = arith.select %19, %21, %10 : vector<32x1xi1>, vector<32x1xi32>
    %c0_i32_8 = arith.constant 0 : i32
    %23 = vector.broadcast %c0_i32_8 : i32 to vector<32x1xi32>
    %24 = arith.cmpi ne, %22, %23 : vector<32x1xi32>
    %c16_i32_9 = arith.constant 16 : i32
    %c0_i32_10 = arith.constant 0 : i32
    %25 = arith.cmpi eq, %c16_i32_9, %c0_i32_10 : i32
    %c1_i32_11 = arith.constant 1 : i32
    %26 = arith.select %25, %c1_i32_11, %c16_i32_9 : i32
    %27 = vector.broadcast %26 : i32 to vector<32x1xi32>
    %28 = arith.remsi %6, %27 : vector<32x1xi32>
    %c0_i32_12 = arith.constant 0 : i32
    %29 = vector.broadcast %c0_i32_12 : i32 to vector<32x1xi32>
    %30 = arith.cmpi ne, %28, %29 : vector<32x1xi32>
    %c0_i32_13 = arith.constant 0 : i32
    %31 = vector.broadcast %c0_i32_13 : i32 to vector<32x1xi32>
    %32 = arith.cmpi slt, %28, %31 : vector<32x1xi32>
    %c0_i32_14 = arith.constant 0 : i32
    %33 = arith.cmpi slt, %26, %c0_i32_14 : i32
    %34 = vector.broadcast %33 : i1 to vector<32x1xi1>
    %35 = vector.broadcast %34 : vector<32x1xi1> to vector<32x1xi1>
    %36 = arith.xori %32, %35 : vector<32x1xi1>
    %37 = arith.andi %36, %30 : vector<32x1xi1>
    %38 = vector.broadcast %26 : i32 to vector<32x1xi32>
    %39 = arith.addi %28, %38 : vector<32x1xi32>
    %40 = arith.select %37, %39, %28 : vector<32x1xi1>, vector<32x1xi32>
    %c15_i32 = arith.constant 15 : i32
    %41 = vector.broadcast %c15_i32 : i32 to vector<32x1xi32>
    %42 = arith.cmpi ne, %40, %41 : vector<32x1xi32>
    %cst_15 = arith.constant 0.000000e+00 : f32
    %43 = vector.broadcast %cst_15 : f32 to vector<8x128xf32>
    %c0_16 = arith.constant 0 : index
    %c0_17 = arith.constant 0 : index
    %44 = vector.load %arg6[%c0_16, %c0_17] : memref<48x128xf32, #tpu.memory_space<vmem>>, vector<8x128xf32>
    tpu.vector_store %arg6[%c0_16, %c0_17], %43 {strides = array<i32>} : memref<48x128xf32, #tpu.memory_space<vmem>>, vector<8x128xf32>,
    %c40 = arith.constant 40 : index
    %c0_18 = arith.constant 0 : index
    %45 = vector.load %arg6[%c40, %c0_18] : memref<48x128xf32, #tpu.memory_space<vmem>>, vector<8x128xf32>
    tpu.vector_store %arg6[%c40, %c0_18], %43 {strides = array<i32>} : memref<48x128xf32, #tpu.memory_space<vmem>>, vector<8x128xf32>,
    %cst_19 = arith.constant 1.000000e+00 : f32
    %46 = vector.broadcast %cst_19 : f32 to vector<32x128xf32>
    %47 = arith.cmpf oge, %5, %46 : vector<32x128xf32>
    %48 = arith.extui %47 : vector<32x128xi1> to vector<32x128xi32>
    %49 = arith.sitofp %48 : vector<32x128xi32> to vector<32x128xf32>
    %cst_20 = arith.constant 1.000000e+00 : f32
    %50 = vector.broadcast %cst_20 : f32 to vector<32x128xf32>
    %51 = arith.mulf %50, %49 : vector<32x128xf32>
    %52 = arith.subf %5, %51 : vector<32x128xf32>
    %c8 = arith.constant 8 : index
    %c0_21 = arith.constant 0 : index
    %53 = vector.load %arg6[%c8, %c0_21] : memref<48x128xf32, #tpu.memory_space<vmem>>, vector<32x128xf32>
    tpu.vector_store %arg6[%c8, %c0_21], %49 {strides = array<i32>} : memref<48x128xf32, #tpu.memory_space<vmem>>, vector<32x128xf32>,
    %c7 = arith.constant 7 : index
    %c0_22 = arith.constant 0 : index
    %54 = vector.load %arg6[%c7, %c0_22] : memref<48x128xf32, #tpu.memory_space<vmem>>, vector<32x128xf32>
    %cst_23 = arith.constant 0.000000e+00 : f32
    %55 = vector.shape_cast %24 : vector<32x1xi1> to vector<32x1xi1>
    %56 = vector.broadcast %55 : vector<32x1xi1> to vector<32x128xi1>
    %57 = vector.broadcast %cst_23 : f32 to vector<32x128xf32>
    %58 = arith.select %56, %54, %57 : vector<32x128xi1>, vector<32x128xf32>
    %c9 = arith.constant 9 : index
    %c0_24 = arith.constant 0 : index
    %59 = vector.load %arg6[%c9, %c0_24] : memref<48x128xf32, #tpu.memory_space<vmem>>, vector<32x128xf32>
    %cst_25 = arith.constant 0.000000e+00 : f32
    %60 = vector.shape_cast %42 : vector<32x1xi1> to vector<32x1xi1>
    %61 = vector.broadcast %60 : vector<32x1xi1> to vector<32x128xi1>
    %62 = vector.broadcast %cst_25 : f32 to vector<32x128xf32>
    %63 = arith.select %61, %59, %62 : vector<32x128xi1>, vector<32x128xf32>
    %64 = tpu.concatenate %58, %49, %63 in 1 : vector<32x128xf32>, vector<32x128xf32>, vector<32x128xf32> -> vector<32x384xf32>
    %65 = arith.truncf %64 : vector<32x384xf32> to vector<32x384xbf16>
    %c0_26 = arith.constant 0 : index
    %c0_27 = arith.constant 0 : index
    %66 = vector.load %arg4[%c0_26, %c0_27] : memref<384x128xbf16, #tpu.memory_space<vmem>>, vector<384x128xbf16>
    %cst_28 = arith.constant dense<0.000000e+00> : vector<32x128xf32>
    %67 = tpu.matmul %65, %66, %cst_28 {dimension_numbers = #tpu.dot_dimension_numbers<[1], [0], [0], [1], [0, 0, 1, 1], [], []>} : vector<32x384xbf16>, vector<384x128xbf16>, vector<32x128xf32> -> vector<32x128xf32>
    %68 = arith.addf %52, %67 : vector<32x128xf32>
    %69 = arith.addf %68, %5 : vector<32x128xf32>
    %cst_29 = arith.constant 1.000000e+00 : f32
    %70 = vector.broadcast %cst_29 : f32 to vector<32x128xf32>
    %71 = arith.cmpf oge, %69, %70 : vector<32x128xf32>
    %72 = arith.extui %71 : vector<32x128xi1> to vector<32x128xi32>
    %73 = arith.sitofp %72 : vector<32x128xi32> to vector<32x128xf32>
    %cst_30 = arith.constant 1.000000e+00 : f32
    %74 = vector.broadcast %cst_30 : f32 to vector<32x128xf32>
    %75 = arith.mulf %74, %73 : vector<32x128xf32>
    %76 = arith.subf %69, %75 : vector<32x128xf32>
    %77 = arith.addf %49, %73 : vector<32x128xf32>
    %c8_31 = arith.constant 8 : index
    %c0_32 = arith.constant 0 : index
    %78 = vector.load %arg6[%c8_31, %c0_32] : memref<48x128xf32, #tpu.memory_space<vmem>>, vector<32x128xf32>
    tpu.vector_store %arg6[%c8_31, %c0_32], %73 {strides = array<i32>} : memref<48x128xf32, #tpu.memory_space<vmem>>, vector<32x128xf32>,
    %c7_33 = arith.constant 7 : index
    %c0_34 = arith.constant 0 : index
    %79 = vector.load %arg6[%c7_33, %c0_34] : memref<48x128xf32, #tpu.memory_space<vmem>>, vector<32x128xf32>
    %cst_35 = arith.constant 0.000000e+00 : f32
    %80 = vector.shape_cast %24 : vector<32x1xi1> to vector<32x1xi1>
    %81 = vector.broadcast %80 : vector<32x1xi1> to vector<32x128xi1>
    %82 = vector.broadcast %cst_35 : f32 to vector<32x128xf32>
    %83 = arith.select %81, %79, %82 : vector<32x128xi1>, vector<32x128xf32>
    %c9_36 = arith.constant 9 : index
    %c0_37 = arith.constant 0 : index
    %84 = vector.load %arg6[%c9_36, %c0_37] : memref<48x128xf32, #tpu.memory_space<vmem>>, vector<32x128xf32>
    %cst_38 = arith.constant 0.000000e+00 : f32
    %85 = vector.shape_cast %42 : vector<32x1xi1> to vector<32x1xi1>
    %86 = vector.broadcast %85 : vector<32x1xi1> to vector<32x128xi1>
    %87 = vector.broadcast %cst_38 : f32 to vector<32x128xf32>
    %88 = arith.select %86, %84, %87 : vector<32x128xi1>, vector<32x128xf32>
    %89 = tpu.concatenate %83, %73, %88 in 1 : vector<32x128xf32>, vector<32x128xf32>, vector<32x128xf32> -> vector<32x384xf32>
    %90 = arith.truncf %89 : vector<32x384xf32> to vector<32x384xbf16>
    %c0_39 = arith.constant 0 : index
    %c0_40 = arith.constant 0 : index
    %91 = vector.load %arg4[%c0_39, %c0_40] : memref<384x128xbf16, #tpu.memory_space<vmem>>, vector<384x128xbf16>
    %cst_41 = arith.constant dense<0.000000e+00> : vector<32x128xf32>
    %92 = tpu.matmul %90, %91, %cst_41 {dimension_numbers = #tpu.dot_dimension_numbers<[1], [0], [0], [1], [0, 0, 1, 1], [], []>} : vector<32x384xbf16>, vector<384x128xbf16>, vector<32x128xf32> -> vector<32x128xf32>
    %93 = arith.addf %76, %92 : vector<32x128xf32>
    %94 = arith.addf %93, %5 : vector<32x128xf32>
    %cst_42 = arith.constant 1.000000e+00 : f32
    %95 = vector.broadcast %cst_42 : f32 to vector<32x128xf32>
    %96 = arith.cmpf oge, %94, %95 : vector<32x128xf32>
    %97 = arith.extui %96 : vector<32x128xi1> to vector<32x128xi32>
    %98 = arith.sitofp %97 : vector<32x128xi32> to vector<32x128xf32>
    %cst_43 = arith.constant 1.000000e+00 : f32
    %99 = vector.broadcast %cst_43 : f32 to vector<32x128xf32>
    %100 = arith.mulf %99, %98 : vector<32x128xf32>
    %101 = arith.subf %94, %100 : vector<32x128xf32>
    %102 = arith.addf %77, %98 : vector<32x128xf32>
    %c8_44 = arith.constant 8 : index
    %c0_45 = arith.constant 0 : index
    %103 = vector.load %arg6[%c8_44, %c0_45] : memref<48x128xf32, #tpu.memory_space<vmem>>, vector<32x128xf32>
    tpu.vector_store %arg6[%c8_44, %c0_45], %98 {strides = array<i32>} : memref<48x128xf32, #tpu.memory_space<vmem>>, vector<32x128xf32>,
    %c7_46 = arith.constant 7 : index
    %c0_47 = arith.constant 0 : index
    %104 = vector.load %arg6[%c7_46, %c0_47] : memref<48x128xf32, #tpu.memory_space<vmem>>, vector<32x128xf32>
    %cst_48 = arith.constant 0.000000e+00 : f32
    %105 = vector.shape_cast %24 : vector<32x1xi1> to vector<32x1xi1>
    %106 = vector.broadcast %105 : vector<32x1xi1> to vector<32x128xi1>
    %107 = vector.broadcast %cst_48 : f32 to vector<32x128xf32>
    %108 = arith.select %106, %104, %107 : vector<32x128xi1>, vector<32x128xf32>
    %c9_49 = arith.constant 9 : index
    %c0_50 = arith.constant 0 : index
    %109 = vector.load %arg6[%c9_49, %c0_50] : memref<48x128xf32, #tpu.memory_space<vmem>>, vector<32x128xf32>
    %cst_51 = arith.constant 0.000000e+00 : f32
    %110 = vector.shape_cast %42 : vector<32x1xi1> to vector<32x1xi1>
    %111 = vector.broadcast %110 : vector<32x1xi1> to vector<32x128xi1>
    %112 = vector.broadcast %cst_51 : f32 to vector<32x128xf32>
    %113 = arith.select %111, %109, %112 : vector<32x128xi1>, vector<32x128xf32>
    %114 = tpu.concatenate %108, %98, %113 in 1 : vector<32x128xf32>, vector<32x128xf32>, vector<32x128xf32> -> vector<32x384xf32>
    %115 = arith.truncf %114 : vector<32x384xf32> to vector<32x384xbf16>
    %c0_52 = arith.constant 0 : index
    %c0_53 = arith.constant 0 : index
    %116 = vector.load %arg4[%c0_52, %c0_53] : memref<384x128xbf16, #tpu.memory_space<vmem>>, vector<384x128xbf16>
    %cst_54 = arith.constant dense<0.000000e+00> : vector<32x128xf32>
    %117 = tpu.matmul %115, %116, %cst_54 {dimension_numbers = #tpu.dot_dimension_numbers<[1], [0], [0], [1], [0, 0, 1, 1], [], []>} : vector<32x384xbf16>, vector<384x128xbf16>, vector<32x128xf32> -> vector<32x128xf32>
    %118 = arith.addf %101, %117 : vector<32x128xf32>
    %119 = arith.addf %118, %5 : vector<32x128xf32>
    %cst_55 = arith.constant 1.000000e+00 : f32
    %120 = vector.broadcast %cst_55 : f32 to vector<32x128xf32>
    %121 = arith.cmpf oge, %119, %120 : vector<32x128xf32>
    %122 = arith.extui %121 : vector<32x128xi1> to vector<32x128xi32>
    %123 = arith.sitofp %122 : vector<32x128xi32> to vector<32x128xf32>
    %cst_56 = arith.constant 1.000000e+00 : f32
    %124 = vector.broadcast %cst_56 : f32 to vector<32x128xf32>
    %125 = arith.mulf %124, %123 : vector<32x128xf32>
    %126 = arith.subf %119, %125 : vector<32x128xf32>
    %127 = arith.addf %102, %123 : vector<32x128xf32>
    %c8_57 = arith.constant 8 : index
    %c0_58 = arith.constant 0 : index
    %128 = vector.load %arg6[%c8_57, %c0_58] : memref<48x128xf32, #tpu.memory_space<vmem>>, vector<32x128xf32>
    tpu.vector_store %arg6[%c8_57, %c0_58], %123 {strides = array<i32>} : memref<48x128xf32, #tpu.memory_space<vmem>>, vector<32x128xf32>,
    %c7_59 = arith.constant 7 : index
    %c0_60 = arith.constant 0 : index
    %129 = vector.load %arg6[%c7_59, %c0_60] : memref<48x128xf32, #tpu.memory_space<vmem>>, vector<32x128xf32>
    %cst_61 = arith.constant 0.000000e+00 : f32
    %130 = vector.shape_cast %24 : vector<32x1xi1> to vector<32x1xi1>
    %131 = vector.broadcast %130 : vector<32x1xi1> to vector<32x128xi1>
    %132 = vector.broadcast %cst_61 : f32 to vector<32x128xf32>
    %133 = arith.select %131, %129, %132 : vector<32x128xi1>, vector<32x128xf32>
    %c9_62 = arith.constant 9 : index
    %c0_63 = arith.constant 0 : index
    %134 = vector.load %arg6[%c9_62, %c0_63] : memref<48x128xf32, #tpu.memory_space<vmem>>, vector<32x128xf32>
    %cst_64 = arith.constant 0.000000e+00 : f32
    %135 = vector.shape_cast %42 : vector<32x1xi1> to vector<32x1xi1>
    %136 = vector.broadcast %135 : vector<32x1xi1> to vector<32x128xi1>
    %137 = vector.broadcast %cst_64 : f32 to vector<32x128xf32>
    %138 = arith.select %136, %134, %137 : vector<32x128xi1>, vector<32x128xf32>
    %139 = tpu.concatenate %133, %123, %138 in 1 : vector<32x128xf32>, vector<32x128xf32>, vector<32x128xf32> -> vector<32x384xf32>
    %140 = arith.truncf %139 : vector<32x384xf32> to vector<32x384xbf16>
    %c0_65 = arith.constant 0 : index
    %c0_66 = arith.constant 0 : index
    %141 = vector.load %arg4[%c0_65, %c0_66] : memref<384x128xbf16, #tpu.memory_space<vmem>>, vector<384x128xbf16>
    %cst_67 = arith.constant dense<0.000000e+00> : vector<32x128xf32>
    %142 = tpu.matmul %140, %141, %cst_67 {dimension_numbers = #tpu.dot_dimension_numbers<[1], [0], [0], [1], [0, 0, 1, 1], [], []>} : vector<32x384xbf16>, vector<384x128xbf16>, vector<32x128xf32> -> vector<32x128xf32>
    %143 = arith.addf %126, %142 : vector<32x128xf32>
    %144 = arith.addf %143, %5 : vector<32x128xf32>
    %cst_68 = arith.constant 1.000000e+00 : f32
    %145 = vector.broadcast %cst_68 : f32 to vector<32x128xf32>
    %146 = arith.cmpf oge, %144, %145 : vector<32x128xf32>
    %147 = arith.extui %146 : vector<32x128xi1> to vector<32x128xi32>
    %148 = arith.sitofp %147 : vector<32x128xi32> to vector<32x128xf32>
    %cst_69 = arith.constant 1.000000e+00 : f32
    %149 = vector.broadcast %cst_69 : f32 to vector<32x128xf32>
    %150 = arith.mulf %149, %148 : vector<32x128xf32>
    %151 = arith.subf %144, %150 : vector<32x128xf32>
    %152 = arith.addf %127, %148 : vector<32x128xf32>
    %c8_70 = arith.constant 8 : index
    %c0_71 = arith.constant 0 : index
    %153 = vector.load %arg6[%c8_70, %c0_71] : memref<48x128xf32, #tpu.memory_space<vmem>>, vector<32x128xf32>
    tpu.vector_store %arg6[%c8_70, %c0_71], %148 {strides = array<i32>} : memref<48x128xf32, #tpu.memory_space<vmem>>, vector<32x128xf32>,
    %c7_72 = arith.constant 7 : index
    %c0_73 = arith.constant 0 : index
    %154 = vector.load %arg6[%c7_72, %c0_73] : memref<48x128xf32, #tpu.memory_space<vmem>>, vector<32x128xf32>
    %cst_74 = arith.constant 0.000000e+00 : f32
    %155 = vector.shape_cast %24 : vector<32x1xi1> to vector<32x1xi1>
    %156 = vector.broadcast %155 : vector<32x1xi1> to vector<32x128xi1>
    %157 = vector.broadcast %cst_74 : f32 to vector<32x128xf32>
    %158 = arith.select %156, %154, %157 : vector<32x128xi1>, vector<32x128xf32>
    %c9_75 = arith.constant 9 : index
    %c0_76 = arith.constant 0 : index
    %159 = vector.load %arg6[%c9_75, %c0_76] : memref<48x128xf32, #tpu.memory_space<vmem>>, vector<32x128xf32>
    %cst_77 = arith.constant 0.000000e+00 : f32
    %160 = vector.shape_cast %42 : vector<32x1xi1> to vector<32x1xi1>
    %161 = vector.broadcast %160 : vector<32x1xi1> to vector<32x128xi1>
    %162 = vector.broadcast %cst_77 : f32 to vector<32x128xf32>
    %163 = arith.select %161, %159, %162 : vector<32x128xi1>, vector<32x128xf32>
    %164 = tpu.concatenate %158, %148, %163 in 1 : vector<32x128xf32>, vector<32x128xf32>, vector<32x128xf32> -> vector<32x384xf32>
    %165 = arith.truncf %164 : vector<32x384xf32> to vector<32x384xbf16>
    %c0_78 = arith.constant 0 : index
    %c0_79 = arith.constant 0 : index
    %166 = vector.load %arg4[%c0_78, %c0_79] : memref<384x128xbf16, #tpu.memory_space<vmem>>, vector<384x128xbf16>
    %cst_80 = arith.constant dense<0.000000e+00> : vector<32x128xf32>
    %167 = tpu.matmul %165, %166, %cst_80 {dimension_numbers = #tpu.dot_dimension_numbers<[1], [0], [0], [1], [0, 0, 1, 1], [], []>} : vector<32x384xbf16>, vector<384x128xbf16>, vector<32x128xf32> -> vector<32x128xf32>
    %168 = arith.addf %151, %167 : vector<32x128xf32>
    %169 = arith.addf %168, %5 : vector<32x128xf32>
    %cst_81 = arith.constant 1.000000e+00 : f32
    %170 = vector.broadcast %cst_81 : f32 to vector<32x128xf32>
    %171 = arith.cmpf oge, %169, %170 : vector<32x128xf32>
    %172 = arith.extui %171 : vector<32x128xi1> to vector<32x128xi32>
    %173 = arith.sitofp %172 : vector<32x128xi32> to vector<32x128xf32>
    %cst_82 = arith.constant 1.000000e+00 : f32
    %174 = vector.broadcast %cst_82 : f32 to vector<32x128xf32>
    %175 = arith.mulf %174, %173 : vector<32x128xf32>
    %176 = arith.subf %169, %175 : vector<32x128xf32>
    %177 = arith.addf %152, %173 : vector<32x128xf32>
    %c8_83 = arith.constant 8 : index
    %c0_84 = arith.constant 0 : index
    %178 = vector.load %arg6[%c8_83, %c0_84] : memref<48x128xf32, #tpu.memory_space<vmem>>, vector<32x128xf32>
    tpu.vector_store %arg6[%c8_83, %c0_84], %173 {strides = array<i32>} : memref<48x128xf32, #tpu.memory_space<vmem>>, vector<32x128xf32>,
    %c7_85 = arith.constant 7 : index
    %c0_86 = arith.constant 0 : index
    %179 = vector.load %arg6[%c7_85, %c0_86] : memref<48x128xf32, #tpu.memory_space<vmem>>, vector<32x128xf32>
    %cst_87 = arith.constant 0.000000e+00 : f32
    %180 = vector.shape_cast %24 : vector<32x1xi1> to vector<32x1xi1>
    %181 = vector.broadcast %180 : vector<32x1xi1> to vector<32x128xi1>
    %182 = vector.broadcast %cst_87 : f32 to vector<32x128xf32>
    %183 = arith.select %181, %179, %182 : vector<32x128xi1>, vector<32x128xf32>
    %c9_88 = arith.constant 9 : index
    %c0_89 = arith.constant 0 : index
    %184 = vector.load %arg6[%c9_88, %c0_89] : memref<48x128xf32, #tpu.memory_space<vmem>>, vector<32x128xf32>
    %cst_90 = arith.constant 0.000000e+00 : f32
    %185 = vector.shape_cast %42 : vector<32x1xi1> to vector<32x1xi1>
    %186 = vector.broadcast %185 : vector<32x1xi1> to vector<32x128xi1>
    %187 = vector.broadcast %cst_90 : f32 to vector<32x128xf32>
    %188 = arith.select %186, %184, %187 : vector<32x128xi1>, vector<32x128xf32>
    %189 = tpu.concatenate %183, %173, %188 in 1 : vector<32x128xf32>, vector<32x128xf32>, vector<32x128xf32> -> vector<32x384xf32>
    %190 = arith.truncf %189 : vector<32x384xf32> to vector<32x384xbf16>
    %c0_91 = arith.constant 0 : index
    %c0_92 = arith.constant 0 : index
    %191 = vector.load %arg4[%c0_91, %c0_92] : memref<384x128xbf16, #tpu.memory_space<vmem>>, vector<384x128xbf16>
    %cst_93 = arith.constant dense<0.000000e+00> : vector<32x128xf32>
    %192 = tpu.matmul %190, %191, %cst_93 {dimension_numbers = #tpu.dot_dimension_numbers<[1], [0], [0], [1], [0, 0, 1, 1], [], []>} : vector<32x384xbf16>, vector<384x128xbf16>, vector<32x128xf32> -> vector<32x128xf32>
    %193 = arith.addf %176, %192 : vector<32x128xf32>
    %194 = arith.addf %193, %5 : vector<32x128xf32>
    %cst_94 = arith.constant 1.000000e+00 : f32
    %195 = vector.broadcast %cst_94 : f32 to vector<32x128xf32>
    %196 = arith.cmpf oge, %194, %195 : vector<32x128xf32>
    %197 = arith.extui %196 : vector<32x128xi1> to vector<32x128xi32>
    %198 = arith.sitofp %197 : vector<32x128xi32> to vector<32x128xf32>
    %cst_95 = arith.constant 1.000000e+00 : f32
    %199 = vector.broadcast %cst_95 : f32 to vector<32x128xf32>
    %200 = arith.mulf %199, %198 : vector<32x128xf32>
    %201 = arith.subf %194, %200 : vector<32x128xf32>
    %202 = arith.addf %177, %198 : vector<32x128xf32>
    %c8_96 = arith.constant 8 : index
    %c0_97 = arith.constant 0 : index
    %203 = vector.load %arg6[%c8_96, %c0_97] : memref<48x128xf32, #tpu.memory_space<vmem>>, vector<32x128xf32>
    tpu.vector_store %arg6[%c8_96, %c0_97], %198 {strides = array<i32>} : memref<48x128xf32, #tpu.memory_space<vmem>>, vector<32x128xf32>,
    %c7_98 = arith.constant 7 : index
    %c0_99 = arith.constant 0 : index
    %204 = vector.load %arg6[%c7_98, %c0_99] : memref<48x128xf32, #tpu.memory_space<vmem>>, vector<32x128xf32>
    %cst_100 = arith.constant 0.000000e+00 : f32
    %205 = vector.shape_cast %24 : vector<32x1xi1> to vector<32x1xi1>
    %206 = vector.broadcast %205 : vector<32x1xi1> to vector<32x128xi1>
    %207 = vector.broadcast %cst_100 : f32 to vector<32x128xf32>
    %208 = arith.select %206, %204, %207 : vector<32x128xi1>, vector<32x128xf32>
    %c9_101 = arith.constant 9 : index
    %c0_102 = arith.constant 0 : index
    %209 = vector.load %arg6[%c9_101, %c0_102] : memref<48x128xf32, #tpu.memory_space<vmem>>, vector<32x128xf32>
    %cst_103 = arith.constant 0.000000e+00 : f32
    %210 = vector.shape_cast %42 : vector<32x1xi1> to vector<32x1xi1>
    %211 = vector.broadcast %210 : vector<32x1xi1> to vector<32x128xi1>
    %212 = vector.broadcast %cst_103 : f32 to vector<32x128xf32>
    %213 = arith.select %211, %209, %212 : vector<32x128xi1>, vector<32x128xf32>
    %214 = tpu.concatenate %208, %198, %213 in 1 : vector<32x128xf32>, vector<32x128xf32>, vector<32x128xf32> -> vector<32x384xf32>
    %215 = arith.truncf %214 : vector<32x384xf32> to vector<32x384xbf16>
    %c0_104 = arith.constant 0 : index
    %c0_105 = arith.constant 0 : index
    %216 = vector.load %arg4[%c0_104, %c0_105] : memref<384x128xbf16, #tpu.memory_space<vmem>>, vector<384x128xbf16>
    %cst_106 = arith.constant dense<0.000000e+00> : vector<32x128xf32>
    %217 = tpu.matmul %215, %216, %cst_106 {dimension_numbers = #tpu.dot_dimension_numbers<[1], [0], [0], [1], [0, 0, 1, 1], [], []>} : vector<32x384xbf16>, vector<384x128xbf16>, vector<32x128xf32> -> vector<32x128xf32>
    %218 = arith.addf %201, %217 : vector<32x128xf32>
    %219 = arith.addf %218, %5 : vector<32x128xf32>
    %cst_107 = arith.constant 1.000000e+00 : f32
    %220 = vector.broadcast %cst_107 : f32 to vector<32x128xf32>
    %221 = arith.cmpf oge, %219, %220 : vector<32x128xf32>
    %222 = arith.extui %221 : vector<32x128xi1> to vector<32x128xi32>
    %223 = arith.sitofp %222 : vector<32x128xi32> to vector<32x128xf32>
    %224 = arith.addf %202, %223 : vector<32x128xf32>
    %cst_108 = arith.constant 1.250000e-01 : f32
    %225 = vector.broadcast %cst_108 : f32 to vector<32x128xf32>
    %226 = arith.mulf %224, %225 : vector<32x128xf32>
    %c0_109 = arith.constant 0 : index
    %c0_110 = arith.constant 0 : index
    %227 = vector.load %arg5[%c0_109, %c0_110] : memref<32x128xf32, #tpu.memory_space<vmem>>, vector<32x128xf32>
    tpu.vector_store %arg5[%c0_109, %c0_110], %226 {strides = array<i32>} : memref<32x128xf32, #tpu.memory_space<vmem>>, vector<32x128xf32>,
    return
  }
  func.func @transform_0(%arg0: i32) -> (i32, i32) {
    %c0_i32 = arith.constant 0 : i32
    %c0_i32_0 = arith.constant 0 : i32
    return %arg0, %c0_i32 : i32, i32
  }
  func.func @transform_1(%arg0: i32) -> (i32, i32) {
    %c0_i32 = arith.constant 0 : i32
    %c0_i32_0 = arith.constant 0 : i32
    %c0_i32_1 = arith.constant 0 : i32
    return %c0_i32, %c0_i32_0 : i32, i32
  }
  func.func @transform_2(%arg0: i32) -> (i32, i32) {
    %c0_i32 = arith.constant 0 : i32
    %c0_i32_0 = arith.constant 0 : i32
    %c0_i32_1 = arith.constant 0 : i32
    return %c0_i32, %c0_i32_0 : i32, i32
  }
  func.func @transform_3(%arg0: i32) -> (i32, i32) {
    %c0_i32 = arith.constant 0 : i32
    %c0_i32_0 = arith.constant 0 : i32
    %c0_i32_1 = arith.constant 0 : i32
    return %c0_i32, %c0_i32_0 : i32, i32
  }
  func.func @transform_4(%arg0: i32) -> (i32, i32) {
    %c0_i32 = arith.constant 0 : i32
    %c0_i32_0 = arith.constant 0 : i32
    return %arg0, %c0_i32 : i32, i32
  }
}

module attributes {stable_mosaic.version = 11 : i64} {
  func.func @linear_kernel(%arg0: i32, %arg1: memref<2x2048xf32, #tpu.memory_space<vmem>>, %arg2: memref<2048x10xf32, #tpu.memory_space<vmem>>, %arg3: memref<1x10xf32, #tpu.memory_space<vmem>>, %arg4: memref<2x10xf32, #tpu.memory_space<vmem>>) attributes {dimension_semantics = [#tpu.dimension_semantics<arbitrary>], iteration_bounds = array<i64: 1>, scalar_prefetch = 0 : i64, scratch_operands = 0 : i64, tpu.core_type = #tpu.core_type<tc>, window_params = [{pipeline_mode = #tpu.pipeline_mode<synchronous>, transform_indices = @transform_0, window_bounds = array<i64: 2, 2048>}, {pipeline_mode = #tpu.pipeline_mode<synchronous>, transform_indices = @transform_1, window_bounds = array<i64: 2048, 10>}, {pipeline_mode = #tpu.pipeline_mode<synchronous>, transform_indices = @transform_2, window_bounds = array<i64: 1, 10>}, {pipeline_mode = #tpu.pipeline_mode<synchronous>, transform_indices = @transform_3, window_bounds = array<i64: 2, 10>}]} {
    %c0 = arith.constant 0 : index
    %c0_0 = arith.constant 0 : index
    %0 = vector.load %arg1[%c0, %c0_0] : memref<2x2048xf32, #tpu.memory_space<vmem>>, vector<2x2048xf32>
    %c0_1 = arith.constant 0 : index
    %c0_2 = arith.constant 0 : index
    %1 = vector.load %arg2[%c0_1, %c0_2] : memref<2048x10xf32, #tpu.memory_space<vmem>>, vector<2048x10xf32>
    %cst = arith.constant dense<0.000000e+00> : vector<2x10xf32>
    %2 = tpu.matmul %0, %1, %cst {dimension_numbers = #tpu.dot_dimension_numbers<[1], [0], [0], [1], [0, 0, 1, 1], [], []>} : vector<2x2048xf32>, vector<2048x10xf32>, vector<2x10xf32> -> vector<2x10xf32>
    %c0_3 = arith.constant 0 : index
    %c0_4 = arith.constant 0 : index
    %3 = vector.load %arg3[%c0_3, %c0_4] : memref<1x10xf32, #tpu.memory_space<vmem>>, vector<1x10xf32>
    %4 = vector.broadcast %3 : vector<1x10xf32> to vector<2x10xf32>
    %5 = arith.addf %2, %4 : vector<2x10xf32>
    %c0_5 = arith.constant 0 : index
    %c0_6 = arith.constant 0 : index
    %6 = vector.load %arg4[%c0_5, %c0_6] : memref<2x10xf32, #tpu.memory_space<vmem>>, vector<2x10xf32>
    tpu.vector_store %arg4[%c0_5, %c0_6], %5 {strides = array<i32>} : memref<2x10xf32, #tpu.memory_space<vmem>>, vector<2x10xf32>,
    return
  }
  func.func @transform_0(%arg0: i32) -> (i32, i32) {
    %c0_i32 = arith.constant 0 : i32
    %c0_i32_0 = arith.constant 0 : i32
    %c0_i32_1 = arith.constant 0 : i32
    return %c0_i32, %c0_i32_0 : i32, i32
  }
  func.func @transform_1(%arg0: i32) -> (i32, i32) {
    %c0_i32 = arith.constant 0 : i32
    %c0_i32_0 = arith.constant 0 : i32
    %c0_i32_1 = arith.constant 0 : i32
    return %c0_i32, %c0_i32_0 : i32, i32
  }
  func.func @transform_2(%arg0: i32) -> (i32, i32) {
    %c0_i32 = arith.constant 0 : i32
    %c0_i32_0 = arith.constant 0 : i32
    %c0_i32_1 = arith.constant 0 : i32
    return %c0_i32, %c0_i32_0 : i32, i32
  }
  func.func @transform_3(%arg0: i32) -> (i32, i32) {
    %c0_i32 = arith.constant 0 : i32
    %c0_i32_0 = arith.constant 0 : i32
    %c0_i32_1 = arith.constant 0 : i32
    return %c0_i32, %c0_i32_0 : i32, i32
  }
}

</mosaic_0001>

<bundles_post_ra>
// kernel: tile.13
= control target key start
LH: loop header
LB: loop body
LE: loop exit
PB: predicated region body
PF: predicated region fallthrough
CT: control target
= control target key end

     0   :  { %s28_s0 = inlined_call_operand.vmem [shape: f32[8], index: 0, kind: input, shape index: {}]   ;;  %s29_s1 = inlined_call_operand.vmem [shape: f32[16,8], index: 1, kind: output, shape index: {}]  }
   0x1   :  { %v4_v0 = vld [vmem:[%s28_s0] ss:$0 sm:$0xff] }
   0x2   :  { %5 = vst [vmem:[%s29_s1] sm:$0xff] %v4_v0  ;;  %8 = vst [vmem:[%s29_s1 + $0x8] sm:$0xff] %v4_v0 }

// kernel: mul.24
= control target key start
LH: loop header
LB: loop body
LE: loop exit
PB: predicated region body
PF: predicated region fallthrough
CT: control target
= control target key end

     0   :  { %s131_s10 = smov 120   ;;  %s132_s11 = smov 104   ;;  %vm3_vm0 = vcmask 64512   ;;  %vm9_vm1 = vcmask 1048512   ;;  %vm15_vm2 = vcmask 982912   ;;  %vm21_vm3 = vcmask 917312   ;;  %s207_s0 = inlined_call_operand.vmem [shape: f32[16,8], index: 0, kind: input, shape index: {}]   ;;  %s208_s1 = inlined_call_operand.vmem [shape: f32[128], index: 1, kind: output, shape index: {}]  }
   0x1   :  { %v101_v0 = vld [vmem:[%s207_s0 + $0xf] sm:$0x1]   ;;  %v103_v1 = vld [vmem:[%s207_s0 + $0xd] sm:$0x1]   ;;  %v102_v2 = vld [vmem:[%s207_s0 + $0xe] sm:$0x1]  }
   0x2   :  { %7 = vrot.lane.b32.xlu0 %v101_v0, %s131_s10  ;;  %19 = vrot.lane.b32.xlu1 %v103_v1, %s132_s11  ;;  %v104_v3 = vld [vmem:[%s207_s0 + $0xc] sm:$0x1]   ;;  %s133_s16 = smov 112   ;;  %s134_s17 = smov 96   ;;  %v105_v4 = vld [vmem:[%s207_s0 + $0xb] sm:$0x1]  }
   0x3   :  { %v106_v5 = vld [vmem:[%s207_s0 + $0xa] sm:$0x1]   ;;  %v2_v6 = vld [vmem:[%s207_s0] sm:$0x1]   ;;  %s135_s24 = smov 88   ;;  %s136_s25 = smov 80  }
   0x4   :  { %4 = vst.msk [vmem:[#allocation0] sm:$0x1] %vm3_vm0, %v2_v6   ;;  %v107_v7 = vld [vmem:[%s207_s0 + $0x9] sm:$0x1]   ;;  %v108_v8 = vld [vmem:[%s207_s0 + $0x8] sm:$0x1]  }
   0x5   :  { %s137_s30 = smov 72   ;;  %s138_s2 = smov 64   ;;  %v109_v9 = vld [vmem:[%s207_s0 + $0x7] sm:$0x1]   ;;  %v110_v10 = vld [vmem:[%s207_s0 + $0x6] sm:$0x1]  }
   0x6   :  { %13 = vrot.lane.b32.xlu0 %v102_v2, %s133_s16  ;;  %25 = vrot.lane.b32.xlu1 %v104_v3, %s134_s17  ;;  %s139_s7 = smov 56   ;;  %s140_s8 = smov 48   ;;  %v111_v11 = vld [vmem:[%s207_s0 + $0x5] sm:$0x1]   ;;  %v112_v12 = vld [vmem:[%s207_s0 + $0x4] sm:$0x1]  }
   0x7   :  { %s141_s13 = smov 40   ;;  %s142_s14 = smov 32   ;;  %v113_v13 = vld [vmem:[%s207_s0 + $0x3] sm:$0x1]   ;;  %v114_v14 = vld [vmem:[%s207_s0 + $0x2] sm:$0x1]  }
   0x8   :  { %s143_s19 = smov 24   ;;  %s144_s20 = smov 16   ;;  %v115_v15 = vld [vmem:[%s207_s0 + $0x1] sm:$0x1]   ;;  %vm27_vm4 = vcmask 851712   ;;  %vm33_vm5 = vcmask 786112  }
   0x9   :  { %s145_s0 = smov 8   ;;  %vm39_vm6 = vcmask 720512   ;;  %vm45_vm7 = vcmask 654912   ;;  %vm51_vm8 = vcmask 589312   ;;  %vm57_vm9 = vcmask 523712  }
   0xa   :  { %31 = vrot.lane.b32.xlu0 %v105_v4, %s135_s24  ;;  %37 = vrot.lane.b32.xlu1 %v106_v5, %s136_s25  ;;  %vm63_vm10 = vcmask 458112   ;;  %vm69_vm11 = vcmask 392512   ;;  %vm75_vm12 = vcmask 326912   ;;  %vm81_vm13 = vcmask 261312  }
   0xb   :  { %vm87_vm14 = vcmask 195712   ;;  %vm93_vm15 = vcmask 130112  }
   0xe   :  { %43 = vrot.lane.b32.xlu0 %v107_v7, %s137_s30  ;;  %49 = vrot.lane.b32.xlu1 %v108_v8, %s138_s2 }
  0x12   :  { %55 = vrot.lane.b32.xlu0 %v109_v9, %s139_s7  ;;  %61 = vrot.lane.b32.xlu1 %v110_v10, %s140_s8 }
  0x16   :  { %67 = vrot.lane.b32.xlu0 %v111_v11, %s141_s13  ;;  %73 = vrot.lane.b32.xlu1 %v112_v12, %s142_s14 }
  0x1a   :  { %79 = vrot.lane.b32.xlu0 %v113_v13, %s143_s19  ;;  %85 = vrot.lane.b32.xlu1 %v114_v14, %s144_s20 }
  0x1e   :  { %91 = vrot.lane.b32.xlu0 %v115_v15, %s145_s0 }
  0x74   :  { %v8_v16 = vpop.permute.xlu0 %7   ;;  %v20_v17 = vpop.permute.xlu1 %19  }
  0x75   :  { %10 = vst.msk [vmem:[#allocation0] sm:$0x1] %vm9_vm1, %v8_v16  }
  0x78   :  { %v14_v18 = vpop.permute.xlu0 %13   ;;  %v26_v19 = vpop.permute.xlu1 %25  }
  0x79   :  { %16 = vst.msk [vmem:[#allocation0] sm:$0x1] %vm15_vm2, %v14_v18  }
  0x7a   :  { %22 = vst.msk [vmem:[#allocation0] sm:$0x1] %vm21_vm3, %v20_v17  }
  0x7b   :  { %28 = vst.msk [vmem:[#allocation0] sm:$0x1] %vm27_vm4, %v26_v19  }
  0x7c   :  { %v32_v20 = vpop.permute.xlu0 %31   ;;  %v38_v21 = vpop.permute.xlu1 %37  }
  0x7d   :  { %34 = vst.msk [vmem:[#allocation0] sm:$0x1] %vm33_vm5, %v32_v20  }
  0x7e   :  { %40 = vst.msk [vmem:[#allocation0] sm:$0x1] %vm39_vm6, %v38_v21  }
  0x80   :  { %v44_v22 = vpop.permute.xlu0 %43   ;;  %v50_v23 = vpop.permute.xlu1 %49  }
  0x81   :  { %46 = vst.msk [vmem:[#allocation0] sm:$0x1] %vm45_vm7, %v44_v22  }
  0x82   :  { %52 = vst.msk [vmem:[#allocation0] sm:$0x1] %vm51_vm8, %v50_v23  }
  0x84   :  { %v56_v24 = vpop.permute.xlu0 %55   ;;  %v62_v25 = vpop.permute.xlu1 %61  }
  0x85   :  { %58 = vst.msk [vmem:[#allocation0] sm:$0x1] %vm57_vm9, %v56_v24  }
  0x86   :  { %64 = vst.msk [vmem:[#allocation0] sm:$0x1] %vm63_vm10, %v62_v25  }
  0x88   :  { %v68_v26 = vpop.permute.xlu0 %67   ;;  %v74_v27 = vpop.permute.xlu1 %73  }
  0x89   :  { %70 = vst.msk [vmem:[#allocation0] sm:$0x1] %vm69_vm11, %v68_v26  }
  0x8a   :  { %76 = vst.msk [vmem:[#allocation0] sm:$0x1] %vm75_vm12, %v74_v27  }
  0x8c   :  { %v80_v28 = vpop.permute.xlu0 %79   ;;  %v86_v29 = vpop.permute.xlu1 %85  }
  0x8d   :  { %82 = vst.msk [vmem:[#allocation0] sm:$0x1] %vm81_vm13, %v80_v28  }
  0x8e   :  { %88 = vst.msk [vmem:[#allocation0] sm:$0x1] %vm87_vm14, %v86_v29  }
  0x90   :  { %v92_v30 = vpop.permute.xlu0 %91  }
  0x91   :  { %94 = vst.msk [vmem:[#allocation0] sm:$0x1] %vm93_vm15, %v92_v30  }
  0x98   :  { %v98_v31 = vld [vmem:[#allocation0] sm:$0x1] }
  0x99   :  { %100 = vst [vmem:[%s208_s1] sm:$0x1] %v98_v31 }

// kernel: tile.19
= control target key start
LH: loop header
LB: loop body
LE: loop exit
PB: predicated region body
PF: predicated region fallthrough
CT: control target
= control target key end

     0   :  { %s131_s10 = smov 120   ;;  %s132_s11 = smov 104   ;;  %vm3_vm0 = vcmask 64512   ;;  %vm9_vm1 = vcmask 1048512   ;;  %vm15_vm2 = vcmask 982912   ;;  %vm21_vm3 = vcmask 917312   ;;  %s207_s0 = inlined_call_operand.vmem [shape: f32[16,8], index: 0, kind: input, shape index: {}]   ;;  %s208_s1 = inlined_call_operand.vmem [shape: f32[1,128], index: 1, kind: output, shape index: {}]  }
   0x1   :  { %v101_v0 = vld [vmem:[%s207_s0 + $0xf] sm:$0x1]   ;;  %v103_v1 = vld [vmem:[%s207_s0 + $0xd] sm:$0x1]   ;;  %v102_v2 = vld [vmem:[%s207_s0 + $0xe] sm:$0x1]  }
   0x2   :  { %7 = vrot.lane.b32.xlu0 %v101_v0, %s131_s10  ;;  %19 = vrot.lane.b32.xlu1 %v103_v1, %s132_s11  ;;  %v104_v3 = vld [vmem:[%s207_s0 + $0xc] sm:$0x1]   ;;  %s133_s16 = smov 112   ;;  %s134_s17 = smov 96   ;;  %v105_v4 = vld [vmem:[%s207_s0 + $0xb] sm:$0x1]  }
   0x3   :  { %v106_v5 = vld [vmem:[%s207_s0 + $0xa] sm:$0x1]   ;;  %v2_v6 = vld [vmem:[%s207_s0] sm:$0x1]   ;;  %s135_s24 = smov 88   ;;  %s136_s25 = smov 80  }
   0x4   :  { %4 = vst.msk [vmem:[#allocation0] sm:$0x1] %vm3_vm0, %v2_v6   ;;  %v107_v7 = vld [vmem:[%s207_s0 + $0x9] sm:$0x1]   ;;  %v108_v8 = vld [vmem:[%s207_s0 + $0x8] sm:$0x1]  }
   0x5   :  { %s137_s30 = smov 72   ;;  %s138_s2 = smov 64   ;;  %v109_v9 = vld [vmem:[%s207_s0 + $0x7] sm:$0x1]   ;;  %v110_v10 = vld [vmem:[%s207_s0 + $0x6] sm:$0x1]  }
   0x6   :  { %13 = vrot.lane.b32.xlu0 %v102_v2, %s133_s16  ;;  %25 = vrot.lane.b32.xlu1 %v104_v3, %s134_s17  ;;  %s139_s7 = smov 56   ;;  %s140_s8 = smov 48   ;;  %v111_v11 = vld [vmem:[%s207_s0 + $0x5] sm:$0x1]   ;;  %v112_v12 = vld [vmem:[%s207_s0 + $0x4] sm:$0x1]  }
   0x7   :  { %s141_s13 = smov 40   ;;  %s142_s14 = smov 32   ;;  %v113_v13 = vld [vmem:[%s207_s0 + $0x3] sm:$0x1]   ;;  %v114_v14 = vld [vmem:[%s207_s0 + $0x2] sm:$0x1]  }
   0x8   :  { %s143_s19 = smov 24   ;;  %s144_s20 = smov 16   ;;  %v115_v15 = vld [vmem:[%s207_s0 + $0x1] sm:$0x1]   ;;  %vm27_vm4 = vcmask 851712   ;;  %vm33_vm5 = vcmask 786112  }
   0x9   :  { %s145_s0 = smov 8   ;;  %vm39_vm6 = vcmask 720512   ;;  %vm45_vm7 = vcmask 654912   ;;  %vm51_vm8 = vcmask 589312   ;;  %vm57_vm9 = vcmask 523712  }
   0xa   :  { %31 = vrot.lane.b32.xlu0 %v105_v4, %s135_s24  ;;  %37 = vrot.lane.b32.xlu1 %v106_v5, %s136_s25  ;;  %vm63_vm10 = vcmask 458112   ;;  %vm69_vm11 = vcmask 392512   ;;  %vm75_vm12 = vcmask 326912   ;;  %vm81_vm13 = vcmask 261312  }
   0xb   :  { %vm87_vm14 = vcmask 195712   ;;  %vm93_vm15 = vcmask 130112  }
   0xe   :  { %43 = vrot.lane.b32.xlu0 %v107_v7, %s137_s30  ;;  %49 = vrot.lane.b32.xlu1 %v108_v8, %s138_s2 }
  0x12   :  { %55 = vrot.lane.b32.xlu0 %v109_v9, %s139_s7  ;;  %61 = vrot.lane.b32.xlu1 %v110_v10, %s140_s8 }
  0x16   :  { %67 = vrot.lane.b32.xlu0 %v111_v11, %s141_s13  ;;  %73 = vrot.lane.b32.xlu1 %v112_v12, %s142_s14 }
  0x1a   :  { %79 = vrot.lane.b32.xlu0 %v113_v13, %s143_s19  ;;  %85 = vrot.lane.b32.xlu1 %v114_v14, %s144_s20 }
  0x1e   :  { %91 = vrot.lane.b32.xlu0 %v115_v15, %s145_s0 }
  0x74   :  { %v8_v16 = vpop.permute.xlu0 %7   ;;  %v20_v17 = vpop.permute.xlu1 %19  }
  0x75   :  { %10 = vst.msk [vmem:[#allocation0] sm:$0x1] %vm9_vm1, %v8_v16  }
  0x78   :  { %v14_v18 = vpop.permute.xlu0 %13   ;;  %v26_v19 = vpop.permute.xlu1 %25  }
  0x79   :  { %16 = vst.msk [vmem:[#allocation0] sm:$0x1] %vm15_vm2, %v14_v18  }
  0x7a   :  { %22 = vst.msk [vmem:[#allocation0] sm:$0x1] %vm21_vm3, %v20_v17  }
  0x7b   :  { %28 = vst.msk [vmem:[#allocation0] sm:$0x1] %vm27_vm4, %v26_v19  }
  0x7c   :  { %v32_v20 = vpop.permute.xlu0 %31   ;;  %v38_v21 = vpop.permute.xlu1 %37  }
  0x7d   :  { %34 = vst.msk [vmem:[#allocation0] sm:$0x1] %vm33_vm5, %v32_v20  }
  0x7e   :  { %40 = vst.msk [vmem:[#allocation0] sm:$0x1] %vm39_vm6, %v38_v21  }
  0x80   :  { %v44_v22 = vpop.permute.xlu0 %43   ;;  %v50_v23 = vpop.permute.xlu1 %49  }
  0x81   :  { %46 = vst.msk [vmem:[#allocation0] sm:$0x1] %vm45_vm7, %v44_v22  }
  0x82   :  { %52 = vst.msk [vmem:[#allocation0] sm:$0x1] %vm51_vm8, %v50_v23  }
  0x84   :  { %v56_v24 = vpop.permute.xlu0 %55   ;;  %v62_v25 = vpop.permute.xlu1 %61  }
  0x85   :  { %58 = vst.msk [vmem:[#allocation0] sm:$0x1] %vm57_vm9, %v56_v24  }
  0x86   :  { %64 = vst.msk [vmem:[#allocation0] sm:$0x1] %vm63_vm10, %v62_v25  }
  0x88   :  { %v68_v26 = vpop.permute.xlu0 %67   ;;  %v74_v27 = vpop.permute.xlu1 %73  }
  0x89   :  { %70 = vst.msk [vmem:[#allocation0] sm:$0x1] %vm69_vm11, %v68_v26  }
  0x8a   :  { %76 = vst.msk [vmem:[#allocation0] sm:$0x1] %vm75_vm12, %v74_v27  }
  0x8c   :  { %v80_v28 = vpop.permute.xlu0 %79   ;;  %v86_v29 = vpop.permute.xlu1 %85  }
  0x8d   :  { %82 = vst.msk [vmem:[#allocation0] sm:$0x1] %vm81_vm13, %v80_v28  }
  0x8e   :  { %88 = vst.msk [vmem:[#allocation0] sm:$0x1] %vm87_vm14, %v86_v29  }
  0x90   :  { %v92_v30 = vpop.permute.xlu0 %91  }
  0x91   :  { %94 = vst.msk [vmem:[#allocation0] sm:$0x1] %vm93_vm15, %v92_v30  }
  0x98   :  { %v98_v31 = vld [vmem:[#allocation0] sm:$0x1] }
  0x99   :  { %100 = vst [vmem:[%s208_s1] sm:$0x1] %v98_v31 }

// kernel: snn_ide_convnet_forward.2
= control target key start
LH: loop header
LB: loop body
LE: loop exit
PB: predicated region body
PF: predicated region fallthrough
CT: control target
= control target key end

     0   :  { %v3598_v0 = vmov 0.0|0.0   ;;  %vm57_vm0 = vcmask 523264   ;;  %v3599_v56 = vmov 0.0   ;;  %vm3601_vm7 = vmmov 1   ;;  %s4790_s1 = inlined_call_operand.vmem [shape: f32[192,128], index: 1, kind: input, shape index: {}]   ;;  %s4791_s0 = inlined_call_operand.vmem [shape: f32[32,192], index: 0, kind: input, shape index: {}]   ;;  %s4792_s3 = inlined_call_operand.vmem [shape: bf16[384,128], index: 3, kind: input, shape index: {}]   ;;  %s4793_s2 = inlined_call_operand.vmem [shape: f32[1,128], index: 2, kind: input, shape index: {}]   ;;  %s4794_s4 = inlined_call_operand.vmem [shape: f32[32,128], index: 4, kind: output, shape index: {}]  }
   0x1   :  { %3389 = vmatprep.subr.bf16.mxu0 %v3598_v0  ;;  %v26_v1 = vld [vmem:[%s4790_s1] sm:$0xff]  ;;  %v27_v2 = vld [vmem:[%s4790_s1 + $0x8] sm:$0xff]  ;;  %v28_v3 = vld [vmem:[%s4790_s1 + $0x10] sm:$0xff]  ;;  %216 = vst [vmem:[#allocation2] sm:$0xff] %v3599_v56 }
   0x2   :  { %v3390_v4 = vpack.c.bf16 %v27_v2, %v26_v1  ;;  %v29_v5 = vld [vmem:[%s4790_s1 + $0x18] sm:$0xff]  ;;  %v30_v7 = vld [vmem:[%s4790_s1 + $0x20] sm:$0xff]  ;;  %v31_v8 = vld [vmem:[%s4790_s1 + $0x28] sm:$0xff]  ;;  %217 = vst [vmem:[#allocation2 + $0x28] sm:$0xff] %v3599_v56 }
   0x3   :  { %v3393_v6 = vpack.c.bf16 %v29_v5, %v28_v3  ;;  %v3396_v9 = vpack.c.bf16 %v31_v8, %v30_v7  ;;  %v32_v10 = vld [vmem:[%s4790_s1 + $0x30] sm:$0xff]  ;;  %v33_v11 = vld [vmem:[%s4790_s1 + $0x38] sm:$0xff]  ;;  %v19_v12 = vld [vmem:[%s4791_s0 + $0x8] sm:$0xff]  ;;  %v155_v3 = vlaneseq }
   0x4   :  { %3391 = vmatpush1.bf16.msra.mxu0 %v3390_v4  ;;  %2667 = vmatprep.mubr.msk.f32.mxu0 %vm57_vm0, %v19_v12  ;;  %v34_v13 = vld [vmem:[%s4790_s1 + $0x40] sm:$0xff]  ;;  %v35_v14 = vld [vmem:[%s4790_s1 + $0x48] sm:$0xff]  ;;  %v3399_v15 = vpack.c.bf16 %v33_v11, %v32_v10  ;;  %v36_v19 = vld [vmem:[%s4790_s1 + $0x50] sm:$0xff]  ;;  %v3600_v12 = vmov 1.0|1.0  }
   0x5   :  { %3392 = vmatprep.subr.bf16.mxu0 %v3598_v0  ;;  %v3429_v16 = vld [vmem:[%s4792_s3 + $0x40] sm:$0xff]   ;;  %v3431_v18 = vld [vmem:[%s4792_s3 + $0x48] sm:$0xff]   ;;  %v3402_v21 = vpack.c.bf16 %v35_v14, %v34_v13  ;;  %v3433_v22 = vld [vmem:[%s4792_s3 + $0x50] sm:$0xff]   ;;  %v156_v8 = vshrl.u32 %v155_v3, 7 }
   0x6   :  { %v3430_v17 = vld [vmem:[%s4792_s3] sm:$0xff]   ;;  %2983 = vmatprep.subr.bf16.mxu1 %v3429_v16  ;;  %v3432_v20 = vld [vmem:[%s4792_s3 + $0x8] sm:$0xff]   ;;  %v37_v23 = vld [vmem:[%s4790_s1 + $0x58] sm:$0xff] }
   0x7   :  { %2984 = vmatpush3.bf16.msra.mxu1 %v3430_v17  ;;  %v38_v24 = vld [vmem:[%s4790_s1 + $0x60] sm:$0xff]  ;;  %v39_v25 = vld [vmem:[%s4790_s1 + $0x68] sm:$0xff]  ;;  %v3434_v26 = vld [vmem:[%s4792_s3 + $0x10] sm:$0xff]   ;;  %v3405_v28 = vpack.c.bf16 %v37_v23, %v36_v19  ;;  %v164_v14 = vand.u32 15, %v156_v8  ;;  %v158_v19 = vadd.s32 16, %v156_v8 }
   0x8   :  { %3394 = vmatpush1.bf16.msra.mxu0 %v3393_v6  ;;  %2985 = vmatprep.subr.bf16.mxu1 %v3431_v18  ;;  %v3435_v27 = vld [vmem:[%s4792_s3 + $0x58] sm:$0xff]   ;;  %v40_v30 = vld [vmem:[%s4790_s1 + $0x70] sm:$0xff]  ;;  %v3408_v32 = vpack.c.bf16 %v39_v25, %v38_v24  ;;  %v42_v33 = vld [vmem:[%s4790_s1 + $0x80] sm:$0xff] }
   0x9   :  { %3395 = vmatprep.subr.bf16.mxu0 %v3598_v0  ;;  %v3436_v29 = vld [vmem:[%s4792_s3 + $0x18] sm:$0xff]   ;;  %v43_v34 = vld [vmem:[%s4790_s1 + $0x88] sm:$0xff]  ;;  %v44_v36 = vld [vmem:[%s4790_s1 + $0x90] sm:$0xff]  ;;  %vm208_vm5 = vcmp.ne.s32.totalorder %v164_v14, 0 }
   0xa   :  { %v41_v31 = vld [vmem:[%s4790_s1 + $0x78] sm:$0xff]  ;;  %v3414_v38 = vpack.c.bf16 %v43_v34, %v42_v33  ;;  %v46_v39 = vld [vmem:[%s4790_s1 + $0xa0] sm:$0xff]  ;;  %v47_v40 = vld [vmem:[%s4790_s1 + $0xa8] sm:$0xff] }
   0xb   :  { %2986 = vmatpush3.bf16.msra.mxu1 %v3432_v20  ;;  %v3411_v35 = vpack.c.bf16 %v41_v31, %v40_v30  ;;  %v45_v37 = vld [vmem:[%s4790_s1 + $0x98] sm:$0xff]  ;;  %v48_v42 = vld [vmem:[%s4790_s1 + $0xb0] sm:$0xff]  ;;  %v3420_v44 = vpack.c.bf16 %v47_v40, %v46_v39  ;;  %v18_v46 = vld [vmem:[%s4791_s0] sm:$0xff]  ;;  %v157_v20 = vadd.s32 8, %v156_v8 }
   0xc   :  { %3397 = vmatpush1.bf16.msra.mxu0 %v3396_v9  ;;  %2987 = vmatprep.subr.bf16.mxu1 %v3433_v22  ;;  %v3417_v41 = vpack.c.bf16 %v45_v37, %v44_v36  ;;  %v49_v43 = vld [vmem:[%s4790_s1 + $0xb8] sm:$0xff]  ;;  %v20_v48 = vld [vmem:[%s4791_s0 + $0x10] sm:$0xff]  ;;  %v23_v49 = vld [vmem:[%s4791_s0 + $0x28] sm:$0xff] }
   0xd   :  { %3398 = vmatprep.subr.bf16.mxu0 %v3598_v0  ;;  %v3423_v45 = vpack.c.bf16 %v49_v43, %v48_v42  ;;  %v21_v47 = vld [vmem:[%s4791_s0 + $0x18] sm:$0xff]  ;;  %v22_v50 = vld [vmem:[%s4791_s0 + $0x20] sm:$0xff]  ;;  %v24_v52 = vld [vmem:[%s4791_s0 + $0x30] sm:$0xff]  ;;  %v159_v42 = vadd.s32 24, %v156_v8 }
   0xe   :  { %v25_v51 = vld [vmem:[%s4791_s0 + $0x38] sm:$0xff]  ;;  %v3437_v53 = vld [vmem:[%s4792_s3 + $0x60] sm:$0xff]   ;;  %v3439_v55 = vld [vmem:[%s4792_s3 + $0x68] sm:$0xff]  }
   0xf   :  { %2988 = vmatpush3.bf16.msra.mxu1 %v3434_v26  ;;  %v3438_v54 = vld [vmem:[%s4792_s3 + $0x20] sm:$0xff]   ;;  %v3440_v57 = vld [vmem:[%s4792_s3 + $0x28] sm:$0xff]   ;;  %v3441_v58 = vld [vmem:[%s4792_s3 + $0x70] sm:$0xff]  }
  0x10   :  { %3400 = vmatpush1.bf16.msra.mxu0 %v3399_v15  ;;  %2989 = vmatprep.subr.bf16.mxu1 %v3435_v27  ;;  %v3442_v59 = vld [vmem:[%s4792_s3 + $0x30] sm:$0xff]   ;;  %v3443_v60 = vld [vmem:[%s4792_s3 + $0x78] sm:$0xff]   ;;  %v3445_v62 = vld [vmem:[%s4792_s3 + $0x80] sm:$0xff]   ;;  %v178_v27 = vand.u32 15, %v158_v19 }
  0x11   :  { %3401 = vmatprep.subr.bf16.mxu0 %v3598_v0  ;;  %v3444_v61 = vld [vmem:[%s4792_s3 + $0x38] sm:$0xff]   ;;  %v2666_v63 = vld [vmem:[%s4793_s2] ss:$0 sm:$0xff]  ;;  %vm3823_vm8 = vmpackc.low %vm3601_vm7, %vm208_vm5 }
  0x12   :  { %v3446_v26 = vld [vmem:[%s4792_s3 + $0x88] sm:$0xff]   ;;  %vm210_vm10 = vcmp.ne.s32.totalorder %v178_v27, 0  ;;  %v3448_v37 = vld [vmem:[%s4792_s3 + $0x98] sm:$0xff]   ;;  %v3449_v39 = vld [vmem:[%s4792_s3 + $0xa0] sm:$0xff]  }
  0x13   :  { %2990 = vmatpush3.bf16.msra.mxu1 %v3436_v29  ;;  %v3447_v29 = vld [vmem:[%s4792_s3 + $0x90] sm:$0xff]   ;;  %vm3843_vm12 = vmpackc.low %vm3601_vm7, %vm210_vm10  ;;  %v3450_v40 = vld [vmem:[%s4792_s3 + $0xa8] sm:$0xff]  }
  0x14   :  { %3403 = vmatpush1.bf16.msra.mxu0 %v3402_v21  ;;  %2991 = vmatprep.subr.bf16.mxu1 %v3437_v53  ;;  %v3452_v43 = vld [vmem:[%s4792_s3 + $0xb8] sm:$0xff]   ;;  %v3458_v53 = vld [vmem:[%s4792_s3 + $0x88] sm:$0xff]   ;;  %v3472_v8 = vld [vmem:[%s4792_s3 + $0x30] sm:$0xff]  }
  0x15   :  { %3404 = vmatprep.subr.bf16.mxu0 %v3598_v0  ;;  %v3469_v3 = vld [vmem:[%s4792_s3 + $0x28] sm:$0xff]   ;;  %v3475_v14 = vld [vmem:[%s4792_s3 + $0x38] sm:$0xff]  }
  0x17   :  { %2992 = vmatpush3.bf16.msra.mxu1 %v3438_v54  ;;  %v3457_v54 = vld [vmem:[%s4792_s3 + $0x8] sm:$0xff]  }
  0x18   :  { %3406 = vmatpush1.bf16.msra.mxu0 %v3405_v28  ;;  %2993 = vmatprep.subr.bf16.mxu1 %v3439_v55  ;;  %v171_v28 = vand.u32 15, %v157_v20  ;;  %v3459_v55 = vld [vmem:[%s4792_s3 + $0x50] sm:$0xff]  }
  0x19   :  { %3407 = vmatprep.subr.bf16.mxu0 %v3598_v0 }
  0x1a   :  { %vm213_vm11 = vcmp.ne.s32.totalorder %v171_v28, 15 }
  0x1b   :  { %2994 = vmatpush3.bf16.msra.mxu1 %v3440_v57  ;;  %vm3848_vm13 = vmpackc.low %vm213_vm11, %vm3601_vm7  ;;  %v3461_v57 = vld [vmem:[%s4792_s3 + $0x90] sm:$0xff]  }
  0x1c   :  { %3409 = vmatpush1.bf16.msra.mxu0 %v3408_v32  ;;  %2995 = vmatprep.subr.bf16.mxu1 %v3441_v58  ;;  %v3460_v58 = vld [vmem:[%s4792_s3 + $0x10] sm:$0xff]  }
  0x1d   :  { %3410 = vmatprep.subr.bf16.mxu0 %v3598_v0 }
  0x1f   :  { %2996 = vmatpush3.bf16.msra.mxu1 %v3442_v59  ;;  %v3462_v59 = vld [vmem:[%s4792_s3 + $0x58] sm:$0xff]  }
  0x20   :  { %3412 = vmatpush1.bf16.msra.mxu0 %v3411_v35  ;;  %2997 = vmatprep.subr.bf16.mxu1 %v3443_v60  ;;  %v3463_v60 = vld [vmem:[%s4792_s3 + $0x18] sm:$0xff]  }
  0x21   :  { %3413 = vmatprep.subr.bf16.mxu0 %v3598_v0 }
  0x23   :  { %2998 = vmatpush3.bf16.msra.mxu1 %v3444_v61  ;;  %v3464_v61 = vld [vmem:[%s4792_s3 + $0x98] sm:$0xff]  }
  0x24   :  { %3415 = vmatpush1.bf16.msra.mxu0 %v3414_v38  ;;  %3249 = vmatprep.subr.bf16.mxu1 %v3445_v62 }
  0x25   :  { %3416 = vmatprep.subr.bf16.mxu0 %v3598_v0 }
  0x28   :  { %3418 = vmatpush1.bf16.msra.mxu0 %v3417_v41  ;;  %v3451_v41 = vld [vmem:[%s4792_s3 + $0xb0] sm:$0xff]  }
  0x29   :  { %3419 = vmatprep.subr.bf16.mxu0 %v3598_v0 }
  0x2c   :  { %3421 = vmatpush1.bf16.msra.mxu0 %v3420_v44  ;;  %v185_v44 = vand.u32 15, %v159_v42 }
  0x2d   :  { %3422 = vmatprep.subr.bf16.mxu0 %v3598_v0 }
  0x2e   :  { %vm215_vm14 = vcmp.ne.s32.totalorder %v185_v44, 15 }
  0x2f   :  { %vm3872_vm15 = vmpackc.low %vm215_vm14, %vm3601_vm7 }
  0x30   :  { %3424 = vmatpush1.bf16.msra.mxu0 %v3423_v45 }
  0x33   :  { %135 = vmatmul.mubr.f32.vlgmr.msra.gmra.mrb[0].mxu0 %v18_v46 }
  0x34   :  { %2668 = vmatprep.mubr.msk.f32.mxu0 %vm57_vm0, %v21_v47 }
  0x37   :  { %140 = vmatmul.mubr.f32.gmra.mrb[2].mxu0 %v20_v48 }
  0x38   :  { %2669 = vmatprep.mubr.msk.f32.mxu0 %vm57_vm0, %v23_v49  ;;  %v3453_v49 = vld [vmem:[%s4792_s3 + $0x40] sm:$0xff]  }
  0x39   :  { %3021 = vmatprep.subr.bf16.mxu0 %v3453_v49 }
  0x3b   :  { %145 = vmatmul.mubr.f32.gmra.mrb[4].mxu0 %v22_v50  ;;  %v3454_v50 = vld [vmem:[%s4792_s3] sm:$0xff]  }
  0x3c   :  { %2670 = vmatprep.mubr.msk.f32.mxu0 %vm57_vm0, %v25_v51  ;;  %v3455_v51 = vld [vmem:[%s4792_s3 + $0x80] sm:$0xff]   ;;  %3022 = vmatpush3.bf16.msra.mxu0 %v3454_v50 }
  0x3f   :  { %150 = vmatmul.mubr.f32.gmra.mrb[6].mxu0 %v24_v52  ;;  %v3456_v52 = vld [vmem:[%s4792_s3 + $0x48] sm:$0xff]  }
  0x40   :  { %3023 = vmatprep.subr.bf16.mxu0 %v3456_v52 }
  0x41   :  { %3024 = vmatpush3.bf16.msra.mxu0 %v3457_v54 }
  0x42   :  { %3025 = vmatprep.subr.bf16.mxu0 %v3459_v55 }
  0x45   :  { %3026 = vmatpush3.bf16.msra.mxu0 %v3460_v58 }
  0x46   :  { %3027 = vmatprep.subr.bf16.mxu0 %v3462_v59 }
  0x49   :  { %3028 = vmatpush3.bf16.msra.mxu0 %v3463_v60 }
 0x106   :  { %v136_v0 = vpop.f32.mrb[0].mxu0 }
 0x107   :  { %v3795_v1 = vadd.f32 %v2666_v63, %v136_v0  ;;  %v138_v2 = vpop.f32.mrb[1].mxu0  ;;  %v3467_v0 = vld [vmem:[%s4792_s3 + $0xa0] sm:$0xff]  }
 0x108   :  { %v3468_v2 = vld [vmem:[%s4792_s3 + $0x68] sm:$0xff]  }
 0x109   :  { %vm218_vm1 = vcmp.ge.f32.partialorder %v3795_v1, 1.0 }
 0x10a   :  { %v141_v4 = vpop.f32.mrb[2].mxu0  ;;  %v3799_v5 = vsel %vm218_vm1, 1.0, %v3599_v56 }
 0x10b   :  { %v3801_v6 = vadd.f32 %v2666_v63, %v141_v4  ;;  %v143_v7 = vpop.f32.mrb[3].mxu0  ;;  %234 = vst [vmem:[#allocation2 + $0x8] sm:$0xff] %v3799_v5  ;;  %v3470_v4 = vld [vmem:[%s4792_s3 + $0xa8] sm:$0xff]  }
 0x10c   :  { %v3471_v7 = vld [vmem:[%s4792_s3 + $0x70] sm:$0xff]  }
 0x10d   :  { %vm219_vm2 = vcmp.ge.f32.partialorder %v3801_v6, 1.0 }
 0x10e   :  { %v146_v9 = vpop.f32.mrb[4].mxu0  ;;  %v3806_v10 = vsel %vm219_vm2, 1.0, %v3599_v56  ;;  %vm2699_vm3 = vmpackc.low %vm219_vm2, %vm218_vm1 }
 0x10f   :  { %v3808_v11 = vadd.f32 %v2666_v63, %v146_v9  ;;  %235 = vst [vmem:[#allocation2 + $0x10] sm:$0xff] %v3806_v10  ;;  %2700 = vmatprep.mubr.msk.bf16.mxu1 %vm2699_vm3, %v3600_v12  ;;  %v148_v13 = vpop.f32.mrb[5].mxu0  ;;  %v3473_v9 = vld [vmem:[%s4792_s3 + $0xb0] sm:$0xff]  }
 0x110   :  { %v3474_v13 = vld [vmem:[%s4792_s3 + $0x78] sm:$0xff]  }
 0x111   :  { %vm220_vm4 = vcmp.ge.f32.partialorder %v3808_v11, 1.0 }
 0x112   :  { %v151_v15 = vpop.f32.mrb[6].mxu0  ;;  %v3816_v16 = vsel %vm220_vm4, 1.0, %v3599_v56  ;;  %v238_v22 = vld [vmem:[#allocation2 + $0x7] sm:$0xff] }
 0x113   :  { %v3818_v17 = vadd.f32 %v2666_v63, %v151_v15  ;;  %236 = vst [vmem:[#allocation2 + $0x18] sm:$0xff] %v3816_v16  ;;  %v153_v18 = vpop.f32.mrb[7].mxu0  ;;  %v3466_v63 = vld [vmem:[%s4792_s3 + $0x20] sm:$0xff]   ;;  %v3476_v15 = vld [vmem:[%s4792_s3 + $0xb8] sm:$0xff]  }
 0x114   :  { %v3477_v18 = vld [vmem:[%s4792_s3 + $0x40] sm:$0xff]  }
 0x115   :  { %vm221_vm6 = vcmp.ge.f32.partialorder %v3818_v17, 1.0 }
 0x116   :  { %v239_v21 = vld [vmem:[#allocation2 + $0xf] sm:$0xff]  ;;  %v3828_v24 = vsel %vm221_vm6, 1.0, %v3599_v56  ;;  %vm2704_vm9 = vmpackc.low %vm221_vm6, %vm220_vm4 }
 0x117   :  { %v2702_v25 = vpack.c.bf16 %v239_v21, %v238_v22  ;;  %237 = vst [vmem:[#allocation2 + $0x20] sm:$0xff] %v3828_v24  ;;  %v254_v34 = vld [vmem:[#allocation2 + $0x9] sm:$0xff] }
 0x119   :  { %2703 = vmatmul.mubr.msk.bf16.vlgmr.msra.gmra.mrb[0].mxu1 %vm3823_vm8, %v2702_v25 }
 0x11a   :  { %3250 = vmatpush3.bf16.msra.mxu1 %v3445_v62  ;;  %2705 = vmatprep.mubr.msk.bf16.mxu1 %vm2704_vm9, %v3600_v12  ;;  %v255_v30 = vld [vmem:[#allocation2 + $0x11] sm:$0xff]  ;;  %v3465_v62 = vld [vmem:[%s4792_s3 + $0x60] sm:$0xff]  }
 0x11b   :  { %3251 = vmatprep.subr.bf16.mxu1 %v3446_v26  ;;  %v240_v31 = vld [vmem:[#allocation2 + $0x17] sm:$0xff]  ;;  %v2710_v38 = vpack.c.bf16 %v255_v30, %v254_v34  ;;  %3029 = vmatprep.subr.bf16.mxu0 %v3465_v62 }
 0x11c   :  { %3030 = vmatpush3.bf16.msra.mxu0 %v3466_v63 }
 0x11d   :  { %3031 = vmatprep.subr.bf16.mxu0 %v3468_v2 }
 0x11e   :  { %3252 = vmatpush3.bf16.msra.mxu1 %v3446_v26  ;;  %v241_v32 = vld [vmem:[#allocation2 + $0x1f] sm:$0xff] }
 0x11f   :  { %3253 = vmatprep.subr.bf16.mxu1 %v3447_v29  ;;  %v2707_v35 = vpack.c.bf16 %v241_v32, %v240_v31  ;;  %v256_v45 = vld [vmem:[#allocation2 + $0x19] sm:$0xff]  ;;  %v257_v46 = vld [vmem:[#allocation2 + $0x21] sm:$0xff] }
 0x120   :  { %v2713_v48 = vpack.c.bf16 %v257_v46, %v256_v45  ;;  %3032 = vmatpush3.bf16.msra.mxu0 %v3469_v3 }
 0x121   :  { %2708 = vmatmul.mubr.msk.bf16.gmra.mrb[4].mxu1 %vm3843_vm12, %v2707_v35  ;;  %3033 = vmatprep.subr.bf16.mxu0 %v3471_v7  ;;  %v232_v35 = vsub.f32 %v3808_v11, %v3816_v16 }
 0x122   :  { %3254 = vmatpush3.bf16.msra.mxu1 %v3447_v29  ;;  %3265 = vmatprep.mubr.msk.bf16.mxu1 %vm3848_vm13, %v2710_v38 }
 0x123   :  { %3255 = vmatprep.subr.bf16.mxu1 %v3448_v37 }
 0x124   :  { %3034 = vmatpush3.bf16.msra.mxu0 %v3472_v8 }
 0x125   :  { %3035 = vmatprep.subr.bf16.mxu0 %v3474_v13 }
 0x126   :  { %3256 = vmatpush3.bf16.msra.mxu1 %v3448_v37 }
 0x127   :  { %3257 = vmatprep.subr.bf16.mxu1 %v3449_v39 }
 0x128   :  { %3036 = vmatpush3.bf16.msra.mxu0 %v3475_v14 }
 0x129   :  { %3059 = vmatprep.subr.bf16.mxu0 %v3477_v18  ;;  %v3478_v18 = vld [vmem:[%s4792_s3] sm:$0xff]  }
 0x12a   :  { %3258 = vmatpush3.bf16.msra.mxu1 %v3449_v39  ;;  %v230_v39 = vsub.f32 %v3795_v1, %v3799_v5 }
 0x12b   :  { %3259 = vmatprep.subr.bf16.mxu1 %v3450_v40 }
 0x12e   :  { %3260 = vmatpush3.bf16.msra.mxu1 %v3450_v40 }
 0x12f   :  { %3261 = vmatprep.subr.bf16.mxu1 %v3451_v41 }
 0x132   :  { %3262 = vmatpush3.bf16.msra.mxu1 %v3451_v41 }
 0x133   :  { %3263 = vmatprep.subr.bf16.mxu1 %v3452_v43 }
 0x136   :  { %3264 = vmatpush3.bf16.msra.mxu1 %v3452_v43  ;;  %v233_v43 = vsub.f32 %v3818_v17, %v3828_v24 }
 0x137   :  { %3269 = vmatprep.subr.bf16.mxu1 %v3455_v51 }
 0x139   :  { %3266 = vmatmul.mubr.msk.bf16.vlgmr.msra.gmra.mrb[8].mxu1 %vm3872_vm15, %v2713_v48  ;;  %v231_v48 = vsub.f32 %v3801_v6, %v3806_v10 }
 0x13a   :  { %3270 = vmatpush3.bf16.msra.mxu1 %v3455_v51 }
 0x13b   :  { %3271 = vmatprep.subr.bf16.mxu1 %v3458_v53 }
 0x13e   :  { %3272 = vmatpush3.bf16.msra.mxu1 %v3458_v53 }
 0x13f   :  { %3273 = vmatprep.subr.bf16.mxu1 %v3461_v57 }
 0x142   :  { %3274 = vmatpush3.bf16.msra.mxu1 %v3461_v57 }
 0x143   :  { %3275 = vmatprep.subr.bf16.mxu1 %v3464_v61 }
 0x146   :  { %3276 = vmatpush3.bf16.msra.mxu1 %v3464_v61 }
 0x147   :  { %3277 = vmatprep.subr.bf16.mxu1 %v3467_v0 }
 0x14a   :  { %3278 = vmatpush3.bf16.msra.mxu1 %v3467_v0 }
 0x14b   :  { %3279 = vmatprep.subr.bf16.mxu1 %v3470_v4 }
 0x14e   :  { %3280 = vmatpush3.bf16.msra.mxu1 %v3470_v4 }
 0x14f   :  { %3281 = vmatprep.subr.bf16.mxu1 %v3473_v9 }
 0x152   :  { %3282 = vmatpush3.bf16.msra.mxu1 %v3473_v9 }
 0x153   :  { %3283 = vmatprep.subr.bf16.mxu1 %v3476_v15 }
 0x156   :  { %3284 = vmatpush3.bf16.msra.mxu1 %v3476_v15 }
 0x1ec   :  { %v2999_v19 = vpop.f32.mrb[0].mxu1 }
 0x1ed   :  { %v3000_v20 = vpop.f32.mrb[1].mxu1 }
 0x1ee   :  { %v3001_v21 = vadd.f32 %v3000_v20, %v2999_v19  ;;  %v3002_v22 = vpop.f32.mrb[2].mxu1  ;;  %v3479_v20 = vld [vmem:[%s4792_s3 + $0x48] sm:$0xff]  }
 0x1ef   :  { %v3003_v25 = vpop.f32.mrb[3].mxu1 }
 0x1f0   :  { %v3004_v26 = vadd.f32 %v3003_v25, %v3002_v22 }
 0x1f4   :  { %v3005_v27 = vpop.f32.mrb[4].mxu1 }
 0x1f5   :  { %v3006_v28 = vpop.f32.mrb[5].mxu1 }
 0x1f6   :  { %v3007_v29 = vadd.f32 %v3006_v28, %v3005_v27  ;;  %v3008_v30 = vpop.f32.mrb[6].mxu1  ;;  %v3481_v27 = vld [vmem:[%s4792_s3 + $0x50] sm:$0xff]   ;;  %v3482_v28 = vld [vmem:[%s4792_s3 + $0x80] sm:$0xff]  }
 0x1f7   :  { %v3009_v31 = vpop.f32.mrb[7].mxu1  ;;  %3289 = vmatprep.subr.bf16.mxu1 %v3482_v28 }
 0x1f8   :  { %v3010_v32 = vadd.f32 %v3009_v31, %v3008_v30  ;;  %v3484_v30 = vld [vmem:[%s4792_s3 + $0x58] sm:$0xff]   ;;  %v3485_v31 = vld [vmem:[%s4792_s3 + $0x88] sm:$0xff]  }
 0x20c   :  { %v3267_v34 = vpop.f32.mrb[8].mxu1 }
 0x20d   :  { %v560_v37 = vadd.f32 %v3267_v34, %v3007_v29  ;;  %v551_v38 = vpop.f32.mrb[9].mxu1  ;;  %v3483_v29 = vld [vmem:[%s4792_s3 + $0x10] sm:$0xff]   ;;  %v3487_v34 = vld [vmem:[%s4792_s3 + $0x60] sm:$0xff]  }
 0x20e   :  { %v552_v40 = vadd.f32 %v3001_v21, %v551_v38  ;;  %v3268_v41 = vpop.f32.mrb[10].mxu1  ;;  %v3480_v21 = vld [vmem:[%s4792_s3 + $0x8] sm:$0xff]  }
 0x20f   :  { %v568_v42 = vadd.f32 %v560_v37, %v232_v35  ;;  %v563_v44 = vadd.f32 %v3268_v41, %v3010_v32  ;;  %v554_v45 = vpop.f32.mrb[11].mxu1  ;;  %v3486_v32 = vld [vmem:[%s4792_s3 + $0x18] sm:$0xff]   ;;  %v3488_v35 = vld [vmem:[%s4792_s3 + $0x90] sm:$0xff]   ;;  %v3489_v37 = vld [vmem:[%s4792_s3 + $0x20] sm:$0xff]  }
 0x210   :  { %v566_v46 = vadd.f32 %v552_v40, %v230_v39  ;;  %v555_v49 = vadd.f32 %v3004_v26, %v554_v45  ;;  %v3490_v38 = vld [vmem:[%s4792_s3 + $0x68] sm:$0xff]   ;;  %v3491_v39 = vld [vmem:[%s4792_s3 + $0x98] sm:$0xff]   ;;  %v3493_v41 = vld [vmem:[%s4792_s3 + $0x70] sm:$0xff]  }
 0x211   :  { %v3962_v50 = vadd.f32 %v568_v42, %v3808_v11  ;;  %v569_v51 = vadd.f32 %v563_v44, %v233_v43  ;;  %v3492_v40 = vld [vmem:[%s4792_s3 + $0x28] sm:$0xff]   ;;  %v3494_v42 = vld [vmem:[%s4792_s3 + $0xa0] sm:$0xff]   ;;  %v3495_v43 = vld [vmem:[%s4792_s3 + $0x30] sm:$0xff]  }
 0x212   :  { %v3965_v52 = vadd.f32 %v566_v46, %v3795_v1  ;;  %v567_v53 = vadd.f32 %v555_v49, %v231_v48  ;;  %v3496_v44 = vld [vmem:[%s4792_s3 + $0x78] sm:$0xff]   ;;  %v3497_v45 = vld [vmem:[%s4792_s3 + $0xa8] sm:$0xff]   ;;  %v3499_v48 = vld [vmem:[%s4792_s3 + $0xb0] sm:$0xff]  }
 0x213   :  { %vm576_vm0 = vcmp.ge.f32.partialorder %v3962_v50, 1.0  ;;  %v3969_v54 = vadd.f32 %v569_v51, %v3818_v17  ;;  %v3498_v46 = vld [vmem:[%s4792_s3 + $0x38] sm:$0xff]   ;;  %v3501_v51 = vld [vmem:[%s4792_s3 + $0x40] sm:$0xff]  }
 0x214   :  { %v3972_v55 = vsel %vm576_vm0, 1.0, %v3599_v56  ;;  %v3975_v57 = vadd.f32 %v567_v53, %v3801_v6  ;;  %vm574_vm1 = vcmp.ge.f32.partialorder %v3965_v52, 1.0  ;;  %v3500_v49 = vld [vmem:[%s4792_s3 + $0xb8] sm:$0xff]  }
 0x215   :  { %596 = vst [vmem:[#allocation2 + $0x18] sm:$0xff] %v3972_v55  ;;  %v3980_v58 = vsel %vm574_vm1, 1.0, %v3599_v56  ;;  %vm577_vm2 = vcmp.ge.f32.partialorder %v3969_v54, 1.0  ;;  %v588_v59 = vsub.f32 %v3962_v50, %v3972_v55  ;;  %v592_v50 = vadd.f32 %v3972_v55, %v3816_v16  ;;  %v3502_v16 = vld [vmem:[%s4792_s3] sm:$0xff]  }
 0x216   :  { %vm575_vm3 = vcmp.ge.f32.partialorder %v3975_v57, 1.0  ;;  %594 = vst [vmem:[#allocation2 + $0x8] sm:$0xff] %v3980_v58  ;;  %v3988_v60 = vsel %vm577_vm2, 1.0, %v3599_v56  ;;  %vm3990_vm4 = vmpackc.low %vm577_vm2, %vm576_vm0  ;;  %v586_v62 = vsub.f32 %v3965_v52, %v3980_v58 }
 0x217   :  { %v3997_v63 = vsel %vm575_vm3, 1.0, %v3599_v56  ;;  %vm2743_vm5 = vmpackc.low %vm575_vm3, %vm574_vm1  ;;  %597 = vst [vmem:[#allocation2 + $0x20] sm:$0xff] %v3988_v60  ;;  %v589_v0 = vsub.f32 %v3969_v54, %v3988_v60 }
 0x218   :  { %595 = vst [vmem:[#allocation2 + $0x10] sm:$0xff] %v3997_v63  ;;  %2744 = vmatprep.mubr.msk.bf16.mxu0 %vm2743_vm5, %v3600_v12  ;;  %v587_v2 = vsub.f32 %v3975_v57, %v3997_v63  ;;  %v591_v52 = vadd.f32 %v3997_v63, %v3806_v10 }
 0x21d   :  { %v598_v3 = vld [vmem:[#allocation2 + $0x7] sm:$0xff] }
 0x21e   :  { %v608_v4 = vld [vmem:[#allocation2 + $0x19] sm:$0xff]  ;;  %v609_v7 = vld [vmem:[#allocation2 + $0x21] sm:$0xff] }
 0x21f   :  { %v599_v8 = vld [vmem:[#allocation2 + $0xf] sm:$0xff]  ;;  %v2757_v19 = vpack.c.bf16 %v609_v7, %v608_v4  ;;  %v600_v22 = vld [vmem:[#allocation2 + $0x17] sm:$0xff]  ;;  %v601_v25 = vld [vmem:[#allocation2 + $0x1f] sm:$0xff] }
 0x220   :  { %v606_v9 = vld [vmem:[#allocation2 + $0x9] sm:$0xff]  ;;  %v607_v13 = vld [vmem:[#allocation2 + $0x11] sm:$0xff]  ;;  %v2746_v14 = vpack.c.bf16 %v599_v8, %v598_v3  ;;  %v2751_v26 = vpack.c.bf16 %v601_v25, %v600_v22 }
 0x221   :  { %v2754_v15 = vpack.c.bf16 %v607_v13, %v606_v9 }
 0x222   :  { %2747 = vmatmul.mubr.msk.bf16.vlgmr.msra.gmra.mrb[8].mxu0 %vm3823_vm8, %v2746_v14 }
 0x223   :  { %3285 = vmatprep.mubr.msk.bf16.mxu1 %vm3848_vm13, %v2754_v15  ;;  %2749 = vmatprep.mubr.msk.bf16.mxu0 %vm3990_vm4, %v3600_v12 }
 0x224   :  { %3286 = vmatmul.mubr.msk.bf16.vlgmr.msra.gmra.mrb[12].mxu1 %vm3872_vm15, %v2757_v19  ;;  %3060 = vmatpush3.bf16.msra.mxu0 %v3478_v18 }
 0x225   :  { %3061 = vmatprep.subr.bf16.mxu0 %v3479_v20  ;;  %3290 = vmatpush3.bf16.msra.mxu1 %v3482_v28 }
 0x226   :  { %3291 = vmatprep.subr.bf16.mxu1 %v3485_v31 }
 0x228   :  { %3062 = vmatpush3.bf16.msra.mxu0 %v3480_v21 }
 0x229   :  { %3063 = vmatprep.subr.bf16.mxu0 %v3481_v27  ;;  %3292 = vmatpush3.bf16.msra.mxu1 %v3485_v31  ;;  %v590_v27 = vadd.f32 %v3980_v58, %v3799_v5 }
 0x22a   :  { %2752 = vmatmul.mubr.msk.bf16.gmra.mrb[12].mxu0 %vm3843_vm12, %v2751_v26  ;;  %3293 = vmatprep.subr.bf16.mxu1 %v3488_v35 }
 0x22c   :  { %3064 = vmatpush3.bf16.msra.mxu0 %v3483_v29 }
 0x22d   :  { %3065 = vmatprep.subr.bf16.mxu0 %v3484_v30  ;;  %3294 = vmatpush3.bf16.msra.mxu1 %v3488_v35 }
 0x22e   :  { %3295 = vmatprep.subr.bf16.mxu1 %v3491_v39 }
 0x230   :  { %3066 = vmatpush3.bf16.msra.mxu0 %v3486_v32 }
 0x231   :  { %3067 = vmatprep.subr.bf16.mxu0 %v3487_v34  ;;  %3296 = vmatpush3.bf16.msra.mxu1 %v3491_v39 }
 0x232   :  { %3297 = vmatprep.subr.bf16.mxu1 %v3494_v42 }
 0x234   :  { %3068 = vmatpush3.bf16.msra.mxu0 %v3489_v37 }
 0x235   :  { %3069 = vmatprep.subr.bf16.mxu0 %v3490_v38  ;;  %3298 = vmatpush3.bf16.msra.mxu1 %v3494_v42 }
 0x236   :  { %3299 = vmatprep.subr.bf16.mxu1 %v3497_v45 }
 0x238   :  { %3070 = vmatpush3.bf16.msra.mxu0 %v3492_v40  ;;  %v593_v40 = vadd.f32 %v3988_v60, %v3828_v24 }
 0x239   :  { %3071 = vmatprep.subr.bf16.mxu0 %v3493_v41  ;;  %3300 = vmatpush3.bf16.msra.mxu1 %v3497_v45 }
 0x23a   :  { %3301 = vmatprep.subr.bf16.mxu1 %v3499_v48 }
 0x23c   :  { %3072 = vmatpush3.bf16.msra.mxu0 %v3495_v43 }
 0x23d   :  { %3073 = vmatprep.subr.bf16.mxu0 %v3496_v44  ;;  %3302 = vmatpush3.bf16.msra.mxu1 %v3499_v48 }
 0x23e   :  { %3303 = vmatprep.subr.bf16.mxu1 %v3500_v49 }
 0x240   :  { %3074 = vmatpush3.bf16.msra.mxu0 %v3498_v46 }
 0x241   :  { %3304 = vmatpush3.bf16.msra.mxu1 %v3500_v49  ;;  %3097 = vmatprep.subr.bf16.mxu0 %v3501_v51 }
 0x2f5   :  { %v3037_v53 = vpop.f32.mrb[8].mxu0 }
 0x2f6   :  { %v3038_v61 = vpop.f32.mrb[9].mxu0 }
 0x2f7   :  { %v3287_v3 = vpop.f32.mrb[12].mxu1  ;;  %v3039_v4 = vadd.f32 %v3038_v61, %v3037_v53  ;;  %v3040_v7 = vpop.f32.mrb[10].mxu0 }
 0x2f8   :  { %v895_v8 = vpop.f32.mrb[13].mxu1  ;;  %v3041_v9 = vpop.f32.mrb[11].mxu0 }
 0x2f9   :  { %v3288_v13 = vpop.f32.mrb[14].mxu1  ;;  %v896_v14 = vadd.f32 %v3039_v4, %v895_v8  ;;  %v3042_v15 = vadd.f32 %v3041_v9, %v3040_v7  ;;  %v3503_v4 = vld [vmem:[%s4792_s3 + $0x80] sm:$0xff]   ;;  %v3504_v7 = vld [vmem:[%s4792_s3 + $0x48] sm:$0xff]  }
 0x2fa   :  { %v898_v18 = vpop.f32.mrb[15].mxu1  ;;  %3309 = vmatprep.subr.bf16.mxu1 %v3503_v4  ;;  %v3505_v8 = vld [vmem:[%s4792_s3 + $0x8] sm:$0xff]  }
 0x2fb   :  { %v910_v19 = vadd.f32 %v896_v14, %v586_v62  ;;  %v899_v20 = vadd.f32 %v3042_v15, %v898_v18  ;;  %v3506_v9 = vld [vmem:[%s4792_s3 + $0x88] sm:$0xff]   ;;  %v3508_v14 = vld [vmem:[%s4792_s3 + $0x10] sm:$0xff]   ;;  %v3510_v18 = vld [vmem:[%s4792_s3 + $0x58] sm:$0xff]  }
 0x2fc   :  { %v3509_v15 = vld [vmem:[%s4792_s3 + $0x90] sm:$0xff]  }
 0x2fd   :  { %v4093_v21 = vadd.f32 %v910_v19, %v3795_v1  ;;  %v911_v22 = vadd.f32 %v899_v20, %v587_v2  ;;  %v3043_v25 = vpop.f32.mrb[12].mxu0  ;;  %v3511_v19 = vld [vmem:[%s4792_s3 + $0x18] sm:$0xff]  }
 0x2fe   :  { %v3044_v26 = vpop.f32.mrb[13].mxu0  ;;  %v3512_v20 = vld [vmem:[%s4792_s3 + $0x98] sm:$0xff]  }
 0x2ff   :  { %v4101_v28 = vadd.f32 %v911_v22, %v3801_v6  ;;  %v3045_v29 = vadd.f32 %v3044_v26, %v3043_v25  ;;  %v3046_v30 = vpop.f32.mrb[14].mxu0  ;;  %vm918_vm6 = vcmp.ge.f32.partialorder %v4093_v21, 1.0  ;;  %v3513_v22 = vld [vmem:[%s4792_s3 + $0x60] sm:$0xff]  }
 0x300   :  { %v3047_v62 = vpop.f32.mrb[15].mxu0  ;;  %v4107_v31 = vsel %vm918_vm6, 1.0, %v3599_v56  ;;  %v3514_v25 = vld [vmem:[%s4792_s3 + $0x20] sm:$0xff]  }
 0x301   :  { %v904_v57 = vadd.f32 %v3287_v3, %v3045_v29  ;;  %v3048_v2 = vadd.f32 %v3047_v62, %v3046_v30  ;;  %vm919_vm7 = vcmp.ge.f32.partialorder %v4101_v28, 1.0  ;;  %v4111_v5 = vadd.f32 %v4107_v31, %v590_v27  ;;  %938 = vst [vmem:[#allocation2 + $0x8] sm:$0xff] %v4107_v31  ;;  %v3515_v26 = vld [vmem:[%s4792_s3 + $0xa0] sm:$0xff]   ;;  %v3516_v27 = vld [vmem:[%s4792_s3 + $0x68] sm:$0xff]   ;;  %v3520_v62 = vld [vmem:[%s4792_s3 + $0x30] sm:$0xff]  }
 0x302   :  { %v4115_v58 = vsel %vm919_vm7, 1.0, %v3599_v56  ;;  %vm2787_vm9 = vmpackc.low %vm919_vm7, %vm918_vm6  ;;  %v930_v10 = vsub.f32 %v4093_v21, %v4107_v31  ;;  %v3517_v29 = vld [vmem:[%s4792_s3 + $0x28] sm:$0xff]  }
 0x303   :  { %v912_v63 = vadd.f32 %v904_v57, %v588_v59  ;;  %v907_v32 = vadd.f32 %v3288_v13, %v3048_v2  ;;  %v4123_v34 = vadd.f32 %v4115_v58, %v591_v52  ;;  %939 = vst [vmem:[#allocation2 + $0x10] sm:$0xff] %v4115_v58  ;;  %2788 = vmatprep.mubr.msk.bf16.mxu0 %vm2787_vm9, %v3600_v12  ;;  %v3507_v13 = vld [vmem:[%s4792_s3 + $0x50] sm:$0xff]   ;;  %v3518_v30 = vld [vmem:[%s4792_s3 + $0xa8] sm:$0xff]   ;;  %v3522_v2 = vld [vmem:[%s4792_s3 + $0x78] sm:$0xff]  }
 0x304   :  { %v931_v35 = vsub.f32 %v4101_v28, %v4115_v58  ;;  %v3519_v52 = vld [vmem:[%s4792_s3 + $0x70] sm:$0xff]  }
 0x305   :  { %v913_v37 = vadd.f32 %v907_v32, %v589_v0  ;;  %v4133_v38 = vadd.f32 %v912_v63, %v3808_v11  ;;  %v3521_v57 = vld [vmem:[%s4792_s3 + $0xb0] sm:$0xff]   ;;  %v3524_v63 = vld [vmem:[%s4792_s3 + $0xb8] sm:$0xff]  }
 0x306   :  { %v3523_v32 = vld [vmem:[%s4792_s3 + $0x38] sm:$0xff]  }
 0x307   :  { %v4138_v59 = vadd.f32 %v913_v37, %v3818_v17  ;;  %vm920_vm10 = vcmp.ge.f32.partialorder %v4133_v38, 1.0  ;;  %v3525_v37 = vld [vmem:[%s4792_s3 + $0x40] sm:$0xff]  }
 0x308   :  { %v4142_v39 = vsel %vm920_vm10, 1.0, %v3599_v56  ;;  %v942_v0 = vld [vmem:[#allocation2 + $0x7] sm:$0xff] }
 0x309   :  { %vm921_vm11 = vcmp.ge.f32.partialorder %v4138_v59, 1.0  ;;  %v4148_v54 = vadd.f32 %v4142_v39, %v592_v50  ;;  %940 = vst [vmem:[#allocation2 + $0x18] sm:$0xff] %v4142_v39  ;;  %v932_v55 = vsub.f32 %v4133_v38, %v4142_v39 }
 0x30a   :  { %v943_v41 = vld [vmem:[#allocation2 + $0xf] sm:$0xff]  ;;  %v4157_v42 = vsel %vm921_vm11, 1.0, %v3599_v56  ;;  %vm2792_vm14 = vmpackc.low %vm921_vm11, %vm920_vm10 }
 0x30b   :  { %v2790_v24 = vpack.c.bf16 %v943_v41, %v942_v0  ;;  %v4160_v60 = vadd.f32 %v4157_v42, %v593_v40  ;;  %941 = vst [vmem:[#allocation2 + $0x20] sm:$0xff] %v4157_v42  ;;  %v933_v43 = vsub.f32 %v4138_v59, %v4157_v42  ;;  %v950_v44 = vld [vmem:[#allocation2 + $0x9] sm:$0xff] }
 0x30d   :  { %2791 = vmatmul.mubr.msk.bf16.vlgmr.msra.gmra.mrb[16].mxu0 %vm3823_vm8, %v2790_v24 }
 0x30e   :  { %2793 = vmatprep.mubr.msk.bf16.mxu0 %vm2792_vm14, %v3600_v12  ;;  %3098 = vmatpush3.bf16.msra.mxu0 %v3502_v16 }
 0x30f   :  { %3099 = vmatprep.subr.bf16.mxu0 %v3504_v7 }
 0x310   :  { %v951_v45 = vld [vmem:[#allocation2 + $0x11] sm:$0xff] }
 0x311   :  { %v2798_v46 = vpack.c.bf16 %v951_v45, %v950_v44  ;;  %v944_v48 = vld [vmem:[#allocation2 + $0x17] sm:$0xff] }
 0x312   :  { %v945_v49 = vld [vmem:[#allocation2 + $0x1f] sm:$0xff]  ;;  %3100 = vmatpush3.bf16.msra.mxu0 %v3505_v8 }
 0x313   :  { %v952_v51 = vld [vmem:[#allocation2 + $0x19] sm:$0xff]  ;;  %v953_v53 = vld [vmem:[#allocation2 + $0x21] sm:$0xff]  ;;  %3305 = vmatprep.mubr.msk.bf16.mxu1 %vm3848_vm13, %v2798_v46  ;;  %v2795_v61 = vpack.c.bf16 %v945_v49, %v944_v48  ;;  %3101 = vmatprep.subr.bf16.mxu0 %v3507_v13 }
 0x314   :  { %v2801_v3 = vpack.c.bf16 %v953_v53, %v952_v51 }
 0x315   :  { %2796 = vmatmul.mubr.msk.bf16.gmra.mrb[20].mxu0 %vm3843_vm12, %v2795_v61 }
 0x316   :  { %3306 = vmatmul.mubr.msk.bf16.vlgmr.msra.gmra.mrb[16].mxu1 %vm3872_vm15, %v2801_v3  ;;  %3102 = vmatpush3.bf16.msra.mxu0 %v3508_v14 }
 0x317   :  { %3310 = vmatpush3.bf16.msra.mxu1 %v3503_v4  ;;  %3103 = vmatprep.subr.bf16.mxu0 %v3510_v18 }
 0x318   :  { %3311 = vmatprep.subr.bf16.mxu1 %v3506_v9 }
 0x31a   :  { %3104 = vmatpush3.bf16.msra.mxu0 %v3511_v19 }
 0x31b   :  { %3312 = vmatpush3.bf16.msra.mxu1 %v3506_v9  ;;  %3105 = vmatprep.subr.bf16.mxu0 %v3513_v22 }
 0x31c   :  { %3313 = vmatprep.subr.bf16.mxu1 %v3509_v15 }
 0x31e   :  { %3106 = vmatpush3.bf16.msra.mxu0 %v3514_v25 }
 0x31f   :  { %3314 = vmatpush3.bf16.msra.mxu1 %v3509_v15  ;;  %3107 = vmatprep.subr.bf16.mxu0 %v3516_v27 }
 0x320   :  { %3315 = vmatprep.subr.bf16.mxu1 %v3512_v20 }
 0x322   :  { %3108 = vmatpush3.bf16.msra.mxu0 %v3517_v29 }
 0x323   :  { %3316 = vmatpush3.bf16.msra.mxu1 %v3512_v20  ;;  %3109 = vmatprep.subr.bf16.mxu0 %v3519_v52 }
 0x324   :  { %3317 = vmatprep.subr.bf16.mxu1 %v3515_v26 }
 0x326   :  { %3110 = vmatpush3.bf16.msra.mxu0 %v3520_v62 }
 0x327   :  { %3318 = vmatpush3.bf16.msra.mxu1 %v3515_v26  ;;  %3111 = vmatprep.subr.bf16.mxu0 %v3522_v2  ;;  %v3526_v26 = vld [vmem:[%s4792_s3] sm:$0xff]  }
 0x328   :  { %3319 = vmatprep.subr.bf16.mxu1 %v3518_v30 }
 0x32a   :  { %3112 = vmatpush3.bf16.msra.mxu0 %v3523_v32 }
 0x32b   :  { %3320 = vmatpush3.bf16.msra.mxu1 %v3518_v30  ;;  %3135 = vmatprep.subr.bf16.mxu0 %v3525_v37 }
 0x32c   :  { %3321 = vmatprep.subr.bf16.mxu1 %v3521_v57 }
 0x32f   :  { %3322 = vmatpush3.bf16.msra.mxu1 %v3521_v57 }
 0x330   :  { %3323 = vmatprep.subr.bf16.mxu1 %v3524_v63 }
 0x333   :  { %3324 = vmatpush3.bf16.msra.mxu1 %v3524_v63  ;;  %v3528_v63 = vld [vmem:[%s4792_s3 + $0x8] sm:$0xff]  }
 0x3e0   :  { %v3075_v50 = vpop.f32.mrb[16].mxu0 }
 0x3e1   :  { %v3076_v40 = vpop.f32.mrb[17].mxu0 }
 0x3e2   :  { %v3077_v16 = vadd.f32 %v3076_v40, %v3075_v50  ;;  %v3078_v0 = vpop.f32.mrb[18].mxu0  ;;  %v3529_v40 = vld [vmem:[%s4792_s3 + $0x50] sm:$0xff]  }
 0x3e3   :  { %v3079_v41 = vpop.f32.mrb[19].mxu0 }
 0x3e4   :  { %v3080_v24 = vadd.f32 %v3079_v41, %v3078_v0  ;;  %v3531_v0 = vld [vmem:[%s4792_s3 + $0x10] sm:$0xff]   ;;  %v3532_v41 = vld [vmem:[%s4792_s3 + $0x58] sm:$0xff]  }
 0x3e8   :  { %v3081_v44 = vpop.f32.mrb[20].mxu0 }
 0x3e9   :  { %v3307_v45 = vpop.f32.mrb[16].mxu1  ;;  %v3082_v46 = vpop.f32.mrb[21].mxu0 }
 0x3ea   :  { %v1239_v48 = vpop.f32.mrb[17].mxu1  ;;  %v3083_v49 = vadd.f32 %v3082_v46, %v3081_v44  ;;  %v3084_v53 = vpop.f32.mrb[22].mxu0  ;;  %v3534_v44 = vld [vmem:[%s4792_s3 + $0x18] sm:$0xff]   ;;  %v3536_v46 = vld [vmem:[%s4792_s3 + $0x90] sm:$0xff]  }
 0x3eb   :  { %v1240_v51 = vadd.f32 %v3077_v16, %v1239_v48  ;;  %v3308_v61 = vpop.f32.mrb[18].mxu1  ;;  %v3085_v3 = vpop.f32.mrb[23].mxu0  ;;  %v3530_v16 = vld [vmem:[%s4792_s3 + $0x80] sm:$0xff]  }
 0x3ec   :  { %v1242_v4 = vpop.f32.mrb[19].mxu1  ;;  %v1248_v7 = vadd.f32 %v3307_v45, %v3083_v49  ;;  %v3086_v9 = vadd.f32 %v3085_v3, %v3084_v53  ;;  %3329 = vmatprep.subr.bf16.mxu1 %v3530_v16  ;;  %v3535_v45 = vld [vmem:[%s4792_s3 + $0x60] sm:$0xff]   ;;  %v3538_v49 = vld [vmem:[%s4792_s3 + $0x68] sm:$0xff]  }
 0x3ed   :  { %v1254_v8 = vadd.f32 %v1240_v51, %v930_v10  ;;  %v1243_v13 = vadd.f32 %v3080_v24, %v1242_v4  ;;  %v3533_v24 = vld [vmem:[%s4792_s3 + $0x88] sm:$0xff]   ;;  %v3537_v48 = vld [vmem:[%s4792_s3 + $0x20] sm:$0xff]   ;;  %v3539_v51 = vld [vmem:[%s4792_s3 + $0x98] sm:$0xff]  }
 0x3ee   :  { %v1256_v14 = vadd.f32 %v1248_v7, %v932_v55  ;;  %v1251_v18 = vadd.f32 %v3308_v61, %v3086_v9  ;;  %v3540_v53 = vld [vmem:[%s4792_s3 + $0x28] sm:$0xff]   ;;  %v3541_v61 = vld [vmem:[%s4792_s3 + $0x70] sm:$0xff]   ;;  %v3542_v3 = vld [vmem:[%s4792_s3 + $0xa0] sm:$0xff]  }
 0x3ef   :  { %v4250_v15 = vadd.f32 %v1254_v8, %v3795_v1  ;;  %v1255_v19 = vadd.f32 %v1243_v13, %v931_v35  ;;  %v3543_v4 = vld [vmem:[%s4792_s3 + $0x30] sm:$0xff]   ;;  %v3544_v7 = vld [vmem:[%s4792_s3 + $0x78] sm:$0xff]   ;;  %v3545_v8 = vld [vmem:[%s4792_s3 + $0xa8] sm:$0xff]  }
 0x3f0   :  { %v4256_v20 = vadd.f32 %v1256_v14, %v3808_v11  ;;  %v1257_v21 = vadd.f32 %v1251_v18, %v933_v43  ;;  %v3546_v9 = vld [vmem:[%s4792_s3 + $0x38] sm:$0xff]   ;;  %v3547_v13 = vld [vmem:[%s4792_s3 + $0xb0] sm:$0xff]   ;;  %v3549_v18 = vld [vmem:[%s4792_s3 + $0x40] sm:$0xff]  }
 0x3f1   :  { %v4262_v31 = vadd.f32 %v1255_v19, %v3801_v6  ;;  %vm1262_vm0 = vcmp.ge.f32.partialorder %v4250_v15, 1.0  ;;  %v3548_v14 = vld [vmem:[%s4792_s3 + $0xb8] sm:$0xff]  }
 0x3f2   :  { %v4266_v10 = vsel %vm1262_vm0, 1.0, %v3599_v56  ;;  %vm1264_vm1 = vcmp.ge.f32.partialorder %v4256_v20, 1.0  ;;  %v4276_v58 = vadd.f32 %v1257_v21, %v3818_v17 }
 0x3f3   :  { %vm1263_vm2 = vcmp.ge.f32.partialorder %v4262_v31, 1.0  ;;  %v4272_v28 = vadd.f32 %v4266_v10, %v4111_v5  ;;  %1282 = vst [vmem:[#allocation2 + $0x8] sm:$0xff] %v4266_v10  ;;  %v4281_v35 = vsel %vm1264_vm1, 1.0, %v3599_v56  ;;  %v1274_v59 = vsub.f32 %v4250_v15, %v4266_v10  ;;  %v4416_v15 = vld [vmem:[#allocation2] sm:$0xff] }
 0x3f4   :  { %v4284_v38 = vsel %vm1263_vm2, 1.0, %v3599_v56  ;;  %vm2831_vm3 = vmpackc.low %vm1263_vm2, %vm1262_vm0  ;;  %1284 = vst [vmem:[#allocation2 + $0x18] sm:$0xff] %v4281_v35  ;;  %vm1265_vm4 = vcmp.ge.f32.partialorder %v4276_v58, 1.0  ;;  %v1276_v55 = vsub.f32 %v4256_v20, %v4281_v35  ;;  %v4311_v43 = vadd.f32 %v4281_v35, %v4148_v54 }
 0x3f5   :  { %v4291_v5 = vadd.f32 %v4284_v38, %v4123_v34  ;;  %1283 = vst [vmem:[#allocation2 + $0x10] sm:$0xff] %v4284_v38  ;;  %2832 = vmatprep.mubr.msk.bf16.mxu0 %vm2831_vm3, %v3600_v12  ;;  %v1275_v39 = vsub.f32 %v4262_v31, %v4284_v38  ;;  %v4301_v42 = vsel %vm1265_vm4, 1.0, %v3599_v56  ;;  %vm4305_vm5 = vmpackc.low %vm1265_vm4, %vm1264_vm1 }
 0x3f6   :  { %v4315_v22 = vadd.f32 %v4301_v42, %v4160_v60  ;;  %1285 = vst [vmem:[#allocation2 + $0x20] sm:$0xff] %v4301_v42  ;;  %v1277_v56 = vsub.f32 %v4276_v58, %v4301_v42  ;;  %v3527_v60 = vld [vmem:[%s4792_s3 + $0x48] sm:$0xff]   ;;  %v3550_v58 = vld [vmem:[%s4792_s3] sm:$0xff]  }
 0x3fa   :  { %v1286_v25 = vld [vmem:[#allocation2 + $0x7] sm:$0xff] }
 0x3fc   :  { %v1287_v27 = vld [vmem:[#allocation2 + $0xf] sm:$0xff]  ;;  %v1288_v37 = vld [vmem:[#allocation2 + $0x17] sm:$0xff] }
 0x3fd   :  { %v1294_v29 = vld [vmem:[#allocation2 + $0x9] sm:$0xff]  ;;  %v1295_v30 = vld [vmem:[#allocation2 + $0x11] sm:$0xff]  ;;  %v2834_v52 = vpack.c.bf16 %v1287_v27, %v1286_v25  ;;  %v1296_v62 = vld [vmem:[#allocation2 + $0x19] sm:$0xff] }
 0x3fe   :  { %v2842_v54 = vpack.c.bf16 %v1295_v30, %v1294_v29  ;;  %v1297_v57 = vld [vmem:[#allocation2 + $0x21] sm:$0xff] }
 0x3ff   :  { %2835 = vmatmul.mubr.msk.bf16.vlgmr.msra.gmra.mrb[24].mxu0 %vm3823_vm8, %v2834_v52  ;;  %v2845_v2 = vpack.c.bf16 %v1297_v57, %v1296_v62  ;;  %v1289_v32 = vld [vmem:[#allocation2 + $0x1f] sm:$0xff] }
 0x400   :  { %3325 = vmatprep.mubr.msk.bf16.mxu1 %vm3848_vm13, %v2842_v54  ;;  %2837 = vmatprep.mubr.msk.bf16.mxu0 %vm4305_vm5, %v3600_v12  ;;  %v2839_v50 = vpack.c.bf16 %v1289_v32, %v1288_v37 }
 0x401   :  { %3136 = vmatpush3.bf16.msra.mxu0 %v3526_v26  ;;  %3326 = vmatmul.mubr.msk.bf16.vlgmr.msra.gmra.mrb[20].mxu1 %vm3872_vm15, %v2845_v2 }
 0x402   :  { %3137 = vmatprep.subr.bf16.mxu0 %v3527_v60  ;;  %3330 = vmatpush3.bf16.msra.mxu1 %v3530_v16 }
 0x403   :  { %3331 = vmatprep.subr.bf16.mxu1 %v3533_v24 }
 0x405   :  { %3138 = vmatpush3.bf16.msra.mxu0 %v3528_v63 }
 0x406   :  { %3139 = vmatprep.subr.bf16.mxu0 %v3529_v40  ;;  %3332 = vmatpush3.bf16.msra.mxu1 %v3533_v24 }
 0x407   :  { %2840 = vmatmul.mubr.msk.bf16.gmra.mrb[28].mxu0 %vm3843_vm12, %v2839_v50  ;;  %3333 = vmatprep.subr.bf16.mxu1 %v3536_v46 }
 0x409   :  { %3140 = vmatpush3.bf16.msra.mxu0 %v3531_v0 }
 0x40a   :  { %3141 = vmatprep.subr.bf16.mxu0 %v3532_v41  ;;  %3334 = vmatpush3.bf16.msra.mxu1 %v3536_v46 }
 0x40b   :  { %3335 = vmatprep.subr.bf16.mxu1 %v3539_v51 }
 0x40d   :  { %3142 = vmatpush3.bf16.msra.mxu0 %v3534_v44 }
 0x40e   :  { %3143 = vmatprep.subr.bf16.mxu0 %v3535_v45  ;;  %3336 = vmatpush3.bf16.msra.mxu1 %v3539_v51 }
 0x40f   :  { %3337 = vmatprep.subr.bf16.mxu1 %v3542_v3 }
 0x411   :  { %3144 = vmatpush3.bf16.msra.mxu0 %v3537_v48 }
 0x412   :  { %3145 = vmatprep.subr.bf16.mxu0 %v3538_v49  ;;  %3338 = vmatpush3.bf16.msra.mxu1 %v3542_v3 }
 0x413   :  { %3339 = vmatprep.subr.bf16.mxu1 %v3545_v8 }
 0x415   :  { %3146 = vmatpush3.bf16.msra.mxu0 %v3540_v53 }
 0x416   :  { %3147 = vmatprep.subr.bf16.mxu0 %v3541_v61  ;;  %3340 = vmatpush3.bf16.msra.mxu1 %v3545_v8 }
 0x417   :  { %3341 = vmatprep.subr.bf16.mxu1 %v3547_v13 }
 0x419   :  { %3148 = vmatpush3.bf16.msra.mxu0 %v3543_v4 }
 0x41a   :  { %3149 = vmatprep.subr.bf16.mxu0 %v3544_v7  ;;  %3342 = vmatpush3.bf16.msra.mxu1 %v3547_v13 }
 0x41b   :  { %3343 = vmatprep.subr.bf16.mxu1 %v3548_v14 }
 0x41d   :  { %3150 = vmatpush3.bf16.msra.mxu0 %v3546_v9 }
 0x41e   :  { %3344 = vmatpush3.bf16.msra.mxu1 %v3548_v14  ;;  %3173 = vmatprep.subr.bf16.mxu0 %v3549_v18  ;;  %v3551_v18 = vld [vmem:[%s4792_s3 + $0x80] sm:$0xff]  }
 0x41f   :  { %3349 = vmatprep.subr.bf16.mxu1 %v3551_v18 }
 0x4d2   :  { %v3113_v19 = vpop.f32.mrb[24].mxu0 }
 0x4d3   :  { %v3114_v21 = vpop.f32.mrb[25].mxu0 }
 0x4d4   :  { %v3115_v34 = vadd.f32 %v3114_v21, %v3113_v19  ;;  %v3116_v25 = vpop.f32.mrb[26].mxu0  ;;  %v3327_v26 = vpop.f32.mrb[20].mxu1  ;;  %v3552_v19 = vld [vmem:[%s4792_s3 + $0x48] sm:$0xff]  }
 0x4d5   :  { %v3117_v27 = vpop.f32.mrb[27].mxu0  ;;  %v1583_v29 = vpop.f32.mrb[21].mxu1  ;;  %v3553_v21 = vld [vmem:[%s4792_s3 + $0x8] sm:$0xff]  }
 0x4d6   :  { %v3118_v30 = vadd.f32 %v3117_v27, %v3116_v25  ;;  %v1584_v52 = vadd.f32 %v3115_v34, %v1583_v29  ;;  %v3328_v54 = vpop.f32.mrb[22].mxu1  ;;  %v3554_v34 = vld [vmem:[%s4792_s3 + $0x88] sm:$0xff]   ;;  %v3555_v25 = vld [vmem:[%s4792_s3 + $0x50] sm:$0xff]   ;;  %v3558_v29 = vld [vmem:[%s4792_s3 + $0x58] sm:$0xff]  }
 0x4d7   :  { %v1586_v60 = vpop.f32.mrb[23].mxu1  ;;  %v3557_v27 = vld [vmem:[%s4792_s3 + $0x90] sm:$0xff]  }
 0x4d8   :  { %v1598_v62 = vadd.f32 %v1584_v52, %v1274_v59  ;;  %v1587_v57 = vadd.f32 %v3118_v30, %v1586_v60  ;;  %v3559_v30 = vld [vmem:[%s4792_s3 + $0x18] sm:$0xff]   ;;  %v3562_v60 = vld [vmem:[%s4792_s3 + $0x20] sm:$0xff]  }
 0x4d9   :  { %v3560_v52 = vld [vmem:[%s4792_s3 + $0x98] sm:$0xff]  }
 0x4da   :  { %v4407_v2 = vadd.f32 %v1598_v62, %v3795_v1  ;;  %v1599_v63 = vadd.f32 %v1587_v57, %v1275_v39  ;;  %v3119_v32 = vpop.f32.mrb[28].mxu0  ;;  %v3563_v62 = vld [vmem:[%s4792_s3 + $0xa0] sm:$0xff]   ;;  %v3564_v57 = vld [vmem:[%s4792_s3 + $0x68] sm:$0xff]  }
 0x4db   :  { %v3120_v37 = vpop.f32.mrb[29].mxu0 }
 0x4dc   :  { %v4413_v50 = vadd.f32 %v1599_v63, %v3801_v6  ;;  %v3121_v40 = vadd.f32 %v3120_v37, %v3119_v32  ;;  %v3122_v16 = vpop.f32.mrb[30].mxu0  ;;  %vm1606_vm6 = vcmp.ge.f32.partialorder %v4407_v2, 1.0  ;;  %v3565_v63 = vld [vmem:[%s4792_s3 + $0x28] sm:$0xff]   ;;  %v3567_v37 = vld [vmem:[%s4792_s3 + $0x70] sm:$0xff]  }
 0x4dd   :  { %v3123_v0 = vpop.f32.mrb[31].mxu0  ;;  %v4419_v10 = vsel %vm1606_vm6, 1.0, %v4416_v15  ;;  %v3566_v32 = vld [vmem:[%s4792_s3 + $0xa8] sm:$0xff]  }
 0x4de   :  { %v1592_v59 = vadd.f32 %v3327_v26, %v3121_v40  ;;  %v3124_v41 = vadd.f32 %v3123_v0, %v3122_v16  ;;  %vm1607_vm7 = vcmp.ge.f32.partialorder %v4413_v50, 1.0  ;;  %v4424_v31 = vadd.f32 %v4419_v10, %v4272_v28  ;;  %1626 = vst [vmem:[#allocation2 + $0x8] sm:$0xff] %v4419_v10  ;;  %v3556_v26 = vld [vmem:[%s4792_s3 + $0x10] sm:$0xff]   ;;  %v3570_v0 = vld [vmem:[%s4792_s3 + $0x78] sm:$0xff]  }
 0x4df   :  { %v4428_v38 = vsel %vm1607_vm7, 1.0, %v4416_v15  ;;  %vm2875_vm9 = vmpackc.low %vm1607_vm7, %vm1606_vm6  ;;  %v1618_v39 = vsub.f32 %v4407_v2, %v4419_v10  ;;  %v3568_v40 = vld [vmem:[%s4792_s3 + $0x30] sm:$0xff]  }
 0x4e0   :  { %v1600_v24 = vadd.f32 %v1592_v59, %v1276_v55  ;;  %v1595_v44 = vadd.f32 %v3328_v54, %v3124_v41  ;;  %v4437_v45 = vadd.f32 %v4428_v38, %v4291_v5  ;;  %2876 = vmatprep.mubr.msk.bf16.mxu0 %vm2875_vm9, %v3600_v12  ;;  %1627 = vst [vmem:[#allocation2 + $0x10] sm:$0xff] %v4428_v38  ;;  %v3561_v54 = vld [vmem:[%s4792_s3 + $0x60] sm:$0xff]   ;;  %v3569_v16 = vld [vmem:[%s4792_s3 + $0xb0] sm:$0xff]   ;;  %v3572_v59 = vld [vmem:[%s4792_s3 + $0xb8] sm:$0xff]  }
 0x4e1   :  { %v1619_v28 = vsub.f32 %v4413_v50, %v4428_v38  ;;  %v3571_v41 = vld [vmem:[%s4792_s3 + $0x38] sm:$0xff]  }
 0x4e2   :  { %v1601_v46 = vadd.f32 %v1595_v44, %v1277_v56  ;;  %v4447_v48 = vadd.f32 %v1600_v24, %v3808_v11  ;;  %v3573_v24 = vld [vmem:[%s4792_s3 + $0x40] sm:$0xff]  }
 0x4e4   :  { %v4450_v20 = vadd.f32 %v1601_v46, %v3818_v17  ;;  %vm1608_vm10 = vcmp.ge.f32.partialorder %v4447_v48, 1.0 }
 0x4e5   :  { %v4454_v35 = vsel %vm1608_vm10, 1.0, %v4416_v15  ;;  %v1630_v42 = vld [vmem:[#allocation2 + $0x7] sm:$0xff] }
 0x4e6   :  { %vm1609_vm11 = vcmp.ge.f32.partialorder %v4450_v20, 1.0  ;;  %v4459_v5 = vadd.f32 %v4454_v35, %v4311_v43  ;;  %1628 = vst [vmem:[#allocation2 + $0x18] sm:$0xff] %v4454_v35  ;;  %v1620_v55 = vsub.f32 %v4447_v48, %v4454_v35 }
 0x4e7   :  { %v1631_v56 = vld [vmem:[#allocation2 + $0xf] sm:$0xff]  ;;  %v4468_v49 = vsel %vm1609_vm11, 1.0, %v4416_v15  ;;  %vm2880_vm14 = vmpackc.low %vm1609_vm11, %vm1608_vm10 }
 0x4e8   :  { %v2878_v51 = vpack.c.bf16 %v1631_v56, %v1630_v42  ;;  %v4472_v43 = vadd.f32 %v4468_v49, %v4315_v22  ;;  %1629 = vst [vmem:[#allocation2 + $0x20] sm:$0xff] %v4468_v49  ;;  %v1621_v53 = vsub.f32 %v4450_v20, %v4468_v49  ;;  %v1638_v61 = vld [vmem:[#allocation2 + $0x9] sm:$0xff] }
 0x4ea   :  { %2879 = vmatmul.mubr.msk.bf16.vlgmr.msra.gmra.mrb[32].mxu0 %vm3823_vm8, %v2878_v51 }
 0x4eb   :  { %2881 = vmatprep.mubr.msk.bf16.mxu0 %vm2880_vm14, %v3600_v12  ;;  %3174 = vmatpush3.bf16.msra.mxu0 %v3550_v58 }
 0x4ec   :  { %3175 = vmatprep.subr.bf16.mxu0 %v3552_v19 }
 0x4ed   :  { %v1639_v3 = vld [vmem:[#allocation2 + $0x11] sm:$0xff] }
 0x4ee   :  { %v2886_v4 = vpack.c.bf16 %v1639_v3, %v1638_v61  ;;  %v1632_v7 = vld [vmem:[#allocation2 + $0x17] sm:$0xff] }
 0x4ef   :  { %v1633_v8 = vld [vmem:[#allocation2 + $0x1f] sm:$0xff]  ;;  %3176 = vmatpush3.bf16.msra.mxu0 %v3553_v21 }
 0x4f0   :  { %v1640_v9 = vld [vmem:[#allocation2 + $0x19] sm:$0xff]  ;;  %v1641_v13 = vld [vmem:[#allocation2 + $0x21] sm:$0xff]  ;;  %3345 = vmatprep.mubr.msk.bf16.mxu1 %vm3848_vm13, %v2886_v4  ;;  %v2883_v22 = vpack.c.bf16 %v1633_v8, %v1632_v7  ;;  %3177 = vmatprep.subr.bf16.mxu0 %v3555_v25 }
 0x4f1   :  { %v2889_v14 = vpack.c.bf16 %v1641_v13, %v1640_v9 }
 0x4f2   :  { %2884 = vmatmul.mubr.msk.bf16.gmra.mrb[36].mxu0 %vm3843_vm12, %v2883_v22 }
 0x4f3   :  { %3346 = vmatmul.mubr.msk.bf16.vlgmr.msra.gmra.mrb[24].mxu1 %vm3872_vm15, %v2889_v14  ;;  %3178 = vmatpush3.bf16.msra.mxu0 %v3556_v26 }
 0x4f4   :  { %3350 = vmatpush3.bf16.msra.mxu1 %v3551_v18  ;;  %3179 = vmatprep.subr.bf16.mxu0 %v3558_v29 }
 0x4f5   :  { %3351 = vmatprep.subr.bf16.mxu1 %v3554_v34 }
 0x4f7   :  { %3180 = vmatpush3.bf16.msra.mxu0 %v3559_v30 }
 0x4f8   :  { %3352 = vmatpush3.bf16.msra.mxu1 %v3554_v34  ;;  %3181 = vmatprep.subr.bf16.mxu0 %v3561_v54 }
 0x4f9   :  { %3353 = vmatprep.subr.bf16.mxu1 %v3557_v27 }
 0x4fb   :  { %3182 = vmatpush3.bf16.msra.mxu0 %v3562_v60 }
 0x4fc   :  { %3354 = vmatpush3.bf16.msra.mxu1 %v3557_v27  ;;  %3183 = vmatprep.subr.bf16.mxu0 %v3564_v57  ;;  %v3574_v57 = vld [vmem:[%s4792_s3] sm:$0xff]  }
 0x4fd   :  { %3355 = vmatprep.subr.bf16.mxu1 %v3560_v52 }
 0x4ff   :  { %3184 = vmatpush3.bf16.msra.mxu0 %v3565_v63 }
 0x500   :  { %3356 = vmatpush3.bf16.msra.mxu1 %v3560_v52  ;;  %3185 = vmatprep.subr.bf16.mxu0 %v3567_v37 }
 0x501   :  { %3357 = vmatprep.subr.bf16.mxu1 %v3563_v62 }
 0x503   :  { %3186 = vmatpush3.bf16.msra.mxu0 %v3568_v40 }
 0x504   :  { %3358 = vmatpush3.bf16.msra.mxu1 %v3563_v62  ;;  %3187 = vmatprep.subr.bf16.mxu0 %v3570_v0 }
 0x505   :  { %3359 = vmatprep.subr.bf16.mxu1 %v3566_v32 }
 0x507   :  { %3188 = vmatpush3.bf16.msra.mxu0 %v3571_v41  ;;  %v3576_v41 = vld [vmem:[%s4792_s3 + $0x8] sm:$0xff]  }
 0x508   :  { %3360 = vmatpush3.bf16.msra.mxu1 %v3566_v32  ;;  %3211 = vmatprep.subr.bf16.mxu0 %v3573_v24 }
 0x509   :  { %3361 = vmatprep.subr.bf16.mxu1 %v3569_v16 }
 0x50c   :  { %3362 = vmatpush3.bf16.msra.mxu1 %v3569_v16 }
 0x50d   :  { %3363 = vmatprep.subr.bf16.mxu1 %v3572_v59 }
 0x510   :  { %3364 = vmatpush3.bf16.msra.mxu1 %v3572_v59 }
 0x5bd   :  { %v3151_v44 = vpop.f32.mrb[32].mxu0 }
 0x5be   :  { %v3152_v46 = vpop.f32.mrb[33].mxu0 }
 0x5bf   :  { %v3153_v58 = vadd.f32 %v3152_v46, %v3151_v44  ;;  %v3154_v42 = vpop.f32.mrb[34].mxu0 }
 0x5c0   :  { %v3155_v56 = vpop.f32.mrb[35].mxu0 }
 0x5c1   :  { %v3156_v51 = vadd.f32 %v3155_v56, %v3154_v42  ;;  %v3578_v42 = vld [vmem:[%s4792_s3 + $0x80] sm:$0xff]   ;;  %v3579_v56 = vld [vmem:[%s4792_s3 + $0x10] sm:$0xff]  }
 0x5c2   :  { %3369 = vmatprep.subr.bf16.mxu1 %v3578_v42 }
 0x5c5   :  { %v3157_v61 = vpop.f32.mrb[36].mxu0 }
 0x5c6   :  { %v3347_v3 = vpop.f32.mrb[24].mxu1  ;;  %v3158_v4 = vpop.f32.mrb[37].mxu0 }
 0x5c7   :  { %v1927_v7 = vpop.f32.mrb[25].mxu1  ;;  %v3159_v8 = vadd.f32 %v3158_v4, %v3157_v61  ;;  %v3160_v13 = vpop.f32.mrb[38].mxu0  ;;  %v3581_v61 = vld [vmem:[%s4792_s3 + $0x88] sm:$0xff]   ;;  %v3583_v4 = vld [vmem:[%s4792_s3 + $0x60] sm:$0xff]  }
 0x5c8   :  { %v1928_v9 = vadd.f32 %v3153_v58, %v1927_v7  ;;  %v3348_v22 = vpop.f32.mrb[26].mxu1  ;;  %v3161_v14 = vpop.f32.mrb[39].mxu0  ;;  %v3577_v58 = vld [vmem:[%s4792_s3 + $0x50] sm:$0xff]  }
 0x5c9   :  { %v1930_v18 = vpop.f32.mrb[27].mxu1  ;;  %v1936_v19 = vadd.f32 %v3347_v3, %v3159_v8  ;;  %v3162_v34 = vadd.f32 %v3161_v14, %v3160_v13  ;;  %v3582_v3 = vld [vmem:[%s4792_s3 + $0x18] sm:$0xff]   ;;  %v3584_v7 = vld [vmem:[%s4792_s3 + $0x90] sm:$0xff]   ;;  %v3585_v8 = vld [vmem:[%s4792_s3 + $0x20] sm:$0xff]  }
 0x5ca   :  { %v1942_v21 = vadd.f32 %v1928_v9, %v1618_v39  ;;  %v1931_v25 = vadd.f32 %v3156_v51, %v1930_v18  ;;  %v3580_v51 = vld [vmem:[%s4792_s3 + $0x58] sm:$0xff]   ;;  %v3586_v9 = vld [vmem:[%s4792_s3 + $0x68] sm:$0xff]   ;;  %v3589_v14 = vld [vmem:[%s4792_s3 + $0x70] sm:$0xff]  }
 0x5cb   :  { %v1944_v26 = vadd.f32 %v1936_v19, %v1620_v55  ;;  %v1939_v29 = vadd.f32 %v3348_v22, %v3162_v34  ;;  %v3587_v13 = vld [vmem:[%s4792_s3 + $0x98] sm:$0xff]   ;;  %v3588_v22 = vld [vmem:[%s4792_s3 + $0x28] sm:$0xff]   ;;  %v3590_v18 = vld [vmem:[%s4792_s3 + $0xa0] sm:$0xff]  }
 0x5cc   :  { %v4562_v27 = vadd.f32 %v1942_v21, %v3795_v1  ;;  %v1943_v30 = vadd.f32 %v1931_v25, %v1619_v28  ;;  %v3591_v19 = vld [vmem:[%s4792_s3 + $0x30] sm:$0xff]   ;;  %v3592_v21 = vld [vmem:[%s4792_s3 + $0x78] sm:$0xff]   ;;  %v3593_v34 = vld [vmem:[%s4792_s3 + $0xa8] sm:$0xff]  }
 0x5cd   :  { %v4568_v52 = vadd.f32 %v1944_v26, %v3808_v11  ;;  %v1945_v2 = vadd.f32 %v1939_v29, %v1621_v53  ;;  %v3594_v25 = vld [vmem:[%s4792_s3 + $0x38] sm:$0xff]   ;;  %v3595_v26 = vld [vmem:[%s4792_s3 + $0xb0] sm:$0xff]  }
 0x5ce   :  { %v4574_v10 = vadd.f32 %v1943_v30, %v3801_v6  ;;  %vm1950_vm0 = vcmp.ge.f32.partialorder %v4562_v27, 1.0  ;;  %v3596_v29 = vld [vmem:[%s4792_s3 + $0xb8] sm:$0xff]  }
 0x5cf   :  { %v4578_v39 = vsel %vm1950_vm0, 1.0, %v4416_v15  ;;  %vm1952_vm1 = vcmp.ge.f32.partialorder %v4568_v52, 1.0  ;;  %v4588_v38 = vadd.f32 %v1945_v2, %v3818_v17 }
 0x5d0   :  { %vm1951_vm2 = vcmp.ge.f32.partialorder %v4574_v10, 1.0  ;;  %v4584_v50 = vadd.f32 %v4578_v39, %v4424_v31  ;;  %1970 = vst [vmem:[#allocation2 + $0x8] sm:$0xff] %v4578_v39  ;;  %v4593_v28 = vsel %vm1952_vm1, 1.0, %v4416_v15  ;;  %v1962_v20 = vsub.f32 %v4562_v27, %v4578_v39 }
 0x5d1   :  { %v4596_v48 = vsel %vm1951_vm2, 1.0, %v4416_v15  ;;  %vm2919_vm3 = vmpackc.low %vm1951_vm2, %vm1950_vm0  ;;  %1972 = vst [vmem:[#allocation2 + $0x18] sm:$0xff] %v4593_v28  ;;  %vm1953_vm4 = vcmp.ge.f32.partialorder %v4588_v38, 1.0  ;;  %v1964_v55 = vsub.f32 %v4568_v52, %v4593_v28  ;;  %v4623_v53 = vadd.f32 %v4593_v28, %v4459_v5 }
 0x5d2   :  { %v4603_v31 = vadd.f32 %v4596_v48, %v4437_v45  ;;  %2920 = vmatprep.mubr.msk.bf16.mxu0 %vm2919_vm3, %v3600_v12  ;;  %1971 = vst [vmem:[#allocation2 + $0x10] sm:$0xff] %v4596_v48  ;;  %v1963_v35 = vsub.f32 %v4574_v10, %v4596_v48  ;;  %v4613_v49 = vsel %vm1953_vm4, 1.0, %v4416_v15  ;;  %vm4617_vm5 = vmpackc.low %vm1953_vm4, %vm1952_vm1 }
 0x5d3   :  { %v4627_v54 = vadd.f32 %v4613_v49, %v4472_v43  ;;  %1973 = vst [vmem:[#allocation2 + $0x20] sm:$0xff] %v4613_v49  ;;  %v1965_v60 = vsub.f32 %v4588_v38, %v4613_v49  ;;  %v3575_v43 = vld [vmem:[%s4792_s3 + $0x48] sm:$0xff]  }
 0x5d7   :  { %v1974_v62 = vld [vmem:[#allocation2 + $0x7] sm:$0xff] }
 0x5d9   :  { %v1975_v63 = vld [vmem:[#allocation2 + $0xf] sm:$0xff]  ;;  %v1976_v44 = vld [vmem:[#allocation2 + $0x17] sm:$0xff] }
 0x5da   :  { %v1982_v32 = vld [vmem:[#allocation2 + $0x9] sm:$0xff]  ;;  %v1983_v37 = vld [vmem:[#allocation2 + $0x11] sm:$0xff]  ;;  %v2922_v40 = vpack.c.bf16 %v1975_v63, %v1974_v62  ;;  %v1984_v16 = vld [vmem:[#allocation2 + $0x19] sm:$0xff] }
 0x5db   :  { %v2930_v5 = vpack.c.bf16 %v1983_v37, %v1982_v32  ;;  %v1985_v0 = vld [vmem:[#allocation2 + $0x21] sm:$0xff] }
 0x5dc   :  { %2923 = vmatmul.mubr.msk.bf16.vlgmr.msra.gmra.mrb[40].mxu0 %vm3823_vm8, %v2922_v40  ;;  %v2933_v59 = vpack.c.bf16 %v1985_v0, %v1984_v16  ;;  %v1977_v24 = vld [vmem:[#allocation2 + $0x1f] sm:$0xff] }
 0x5dd   :  { %3365 = vmatprep.mubr.msk.bf16.mxu1 %vm3848_vm13, %v2930_v5  ;;  %2925 = vmatprep.mubr.msk.bf16.mxu0 %vm4617_vm5, %v3600_v12  ;;  %v2927_v46 = vpack.c.bf16 %v1977_v24, %v1976_v44 }
 0x5de   :  { %3212 = vmatpush3.bf16.msra.mxu0 %v3574_v57  ;;  %3366 = vmatmul.mubr.msk.bf16.vlgmr.msra.gmra.mrb[28].mxu1 %vm3872_vm15, %v2933_v59 }
 0x5df   :  { %3213 = vmatprep.subr.bf16.mxu0 %v3575_v43  ;;  %3370 = vmatpush3.bf16.msra.mxu1 %v3578_v42 }
 0x5e0   :  { %3371 = vmatprep.subr.bf16.mxu1 %v3581_v61 }
 0x5e2   :  { %3214 = vmatpush3.bf16.msra.mxu0 %v3576_v41 }
 0x5e3   :  { %3215 = vmatprep.subr.bf16.mxu0 %v3577_v58  ;;  %3372 = vmatpush3.bf16.msra.mxu1 %v3581_v61 }
 0x5e4   :  { %2928 = vmatmul.mubr.msk.bf16.gmra.mrb[44].mxu0 %vm3843_vm12, %v2927_v46  ;;  %3373 = vmatprep.subr.bf16.mxu1 %v3584_v7 }
 0x5e6   :  { %3216 = vmatpush3.bf16.msra.mxu0 %v3579_v56 }
 0x5e7   :  { %3217 = vmatprep.subr.bf16.mxu0 %v3580_v51  ;;  %3374 = vmatpush3.bf16.msra.mxu1 %v3584_v7 }
 0x5e8   :  { %3375 = vmatprep.subr.bf16.mxu1 %v3587_v13 }
 0x5ea   :  { %3218 = vmatpush3.bf16.msra.mxu0 %v3582_v3 }
 0x5eb   :  { %3219 = vmatprep.subr.bf16.mxu0 %v3583_v4  ;;  %3376 = vmatpush3.bf16.msra.mxu1 %v3587_v13 }
 0x5ec   :  { %3377 = vmatprep.subr.bf16.mxu1 %v3590_v18 }
 0x5ee   :  { %3220 = vmatpush3.bf16.msra.mxu0 %v3585_v8 }
 0x5ef   :  { %3221 = vmatprep.subr.bf16.mxu0 %v3586_v9  ;;  %3378 = vmatpush3.bf16.msra.mxu1 %v3590_v18 }
 0x5f0   :  { %3379 = vmatprep.subr.bf16.mxu1 %v3593_v34 }
 0x5f2   :  { %3222 = vmatpush3.bf16.msra.mxu0 %v3588_v22 }
 0x5f3   :  { %3223 = vmatprep.subr.bf16.mxu0 %v3589_v14  ;;  %3380 = vmatpush3.bf16.msra.mxu1 %v3593_v34 }
 0x5f4   :  { %3381 = vmatprep.subr.bf16.mxu1 %v3595_v26 }
 0x5f6   :  { %3224 = vmatpush3.bf16.msra.mxu0 %v3591_v19 }
 0x5f7   :  { %3225 = vmatprep.subr.bf16.mxu0 %v3592_v21  ;;  %3382 = vmatpush3.bf16.msra.mxu1 %v3595_v26 }
 0x5f8   :  { %3383 = vmatprep.subr.bf16.mxu1 %v3596_v29 }
 0x5fa   :  { %3226 = vmatpush3.bf16.msra.mxu0 %v3594_v25 }
 0x5fb   :  { %3384 = vmatpush3.bf16.msra.mxu1 %v3596_v29 }
 0x6af   :  { %v3189_v30 = vpop.f32.mrb[40].mxu0 }
 0x6b0   :  { %v3190_v2 = vpop.f32.mrb[41].mxu0 }
 0x6b1   :  { %v3191_v45 = vadd.f32 %v3190_v2, %v3189_v30  ;;  %v3192_v62 = vpop.f32.mrb[42].mxu0  ;;  %v3367_v57 = vpop.f32.mrb[28].mxu1 }
 0x6b2   :  { %v3193_v63 = vpop.f32.mrb[43].mxu0  ;;  %v2271_v32 = vpop.f32.mrb[29].mxu1 }
 0x6b3   :  { %v3194_v37 = vadd.f32 %v3193_v63, %v3192_v62  ;;  %v2272_v40 = vadd.f32 %v3191_v45, %v2271_v32  ;;  %v3368_v5 = vpop.f32.mrb[30].mxu1 }
 0x6b4   :  { %v2274_v43 = vpop.f32.mrb[31].mxu1 }
 0x6b5   :  { %v2286_v16 = vadd.f32 %v2272_v40, %v1962_v20  ;;  %v2275_v0 = vadd.f32 %v3194_v37, %v2274_v43 }
 0x6b7   :  { %v4716_v59 = vadd.f32 %v2286_v16, %v3795_v1  ;;  %v2287_v41 = vadd.f32 %v2275_v0, %v1963_v35  ;;  %v3195_v24 = vpop.f32.mrb[44].mxu0 }
 0x6b8   :  { %v3196_v44 = vpop.f32.mrb[45].mxu0 }
 0x6b9   :  { %v4722_v46 = vadd.f32 %v2287_v41, %v3801_v6  ;;  %v3197_v58 = vadd.f32 %v3196_v44, %v3195_v24  ;;  %v3198_v42 = vpop.f32.mrb[46].mxu0  ;;  %vm2294_vm6 = vcmp.ge.f32.partialorder %v4716_v59, 1.0 }
 0x6ba   :  { %v3199_v56 = vpop.f32.mrb[47].mxu0  ;;  %v4726_v27 = vsel %vm2294_vm6, 1.0, %v4416_v15 }
 0x6bb   :  { %v2280_v39 = vadd.f32 %v3367_v57, %v3197_v58  ;;  %v3200_v20 = vadd.f32 %v3199_v56, %v3198_v42  ;;  %vm2295_vm7 = vcmp.ge.f32.partialorder %v4722_v46, 1.0  ;;  %v4731_v10 = vadd.f32 %v4726_v27, %v4584_v50  ;;  %2314 = vst [vmem:[#allocation2 + $0x8] sm:$0xff] %v4726_v27 }
 0x6bc   :  { %v4735_v48 = vsel %vm2295_vm7, 1.0, %v4416_v15  ;;  %vm2963_vm9 = vmpackc.low %vm2295_vm7, %vm2294_vm6  ;;  %v2306_v35 = vsub.f32 %v4716_v59, %v4726_v27 }
 0x6bd   :  { %v2288_v51 = vadd.f32 %v2280_v39, %v1964_v55  ;;  %v2283_v61 = vadd.f32 %v3368_v5, %v3200_v20  ;;  %v4744_v3 = vadd.f32 %v4735_v48, %v4603_v31  ;;  %2964 = vmatprep.mubr.msk.bf16.mxu0 %vm2963_vm9, %v3600_v12  ;;  %2315 = vst [vmem:[#allocation2 + $0x10] sm:$0xff] %v4735_v48 }
 0x6be   :  { %v2307_v50 = vsub.f32 %v4722_v46, %v4735_v48 }
 0x6bf   :  { %v2289_v4 = vadd.f32 %v2283_v61, %v1965_v60  ;;  %v2292_v7 = vadd.f32 %v2288_v51, %v3808_v11 }
 0x6c1   :  { %v2293_v52 = vadd.f32 %v2289_v4, %v3818_v17  ;;  %vm2296_vm10 = vcmp.ge.f32.partialorder %v2292_v7, 1.0 }
 0x6c2   :  { %v2937_v28 = vsel %vm2296_vm10, 1.0, %v4416_v15  ;;  %v2318_v8 = vld [vmem:[#allocation2 + $0x7] sm:$0xff] }
 0x6c3   :  { %vm2297_vm11 = vcmp.ge.f32.partialorder %v2293_v52, 1.0  ;;  %v2312_v31 = vadd.f32 %v2937_v28, %v4623_v53  ;;  %2316 = vst [vmem:[#allocation2 + $0x18] sm:$0xff] %v2937_v28  ;;  %v2308_v55 = vsub.f32 %v2292_v7, %v2937_v28 }
 0x6c4   :  { %v2319_v9 = vld [vmem:[#allocation2 + $0xf] sm:$0xff]  ;;  %v2938_v13 = vsel %vm2297_vm11, 1.0, %v4416_v15  ;;  %vm2968_vm14 = vmpackc.low %vm2297_vm11, %vm2296_vm10 }
 0x6c5   :  { %v2966_v22 = vpack.c.bf16 %v2319_v9, %v2318_v8  ;;  %v2313_v38 = vadd.f32 %v2938_v13, %v4627_v54  ;;  %2317 = vst [vmem:[#allocation2 + $0x20] sm:$0xff] %v2938_v13  ;;  %v2309_v49 = vsub.f32 %v2293_v52, %v2938_v13  ;;  %v2326_v60 = vld [vmem:[#allocation2 + $0x9] sm:$0xff] }
 0x6c7   :  { %2967 = vmatmul.mubr.msk.bf16.vlgmr.msra.gmra.mrb[48].mxu0 %vm3823_vm8, %v2966_v22 }
 0x6c8   :  { %2969 = vmatprep.mubr.msk.bf16.mxu0 %vm2968_vm14, %v3600_v12 }
 0x6ca   :  { %v2327_v14 = vld [vmem:[#allocation2 + $0x11] sm:$0xff] }
 0x6cb   :  { %v2974_v53 = vpack.c.bf16 %v2327_v14, %v2326_v60  ;;  %v2320_v18 = vld [vmem:[#allocation2 + $0x17] sm:$0xff] }
 0x6cc   :  { %v2321_v19 = vld [vmem:[#allocation2 + $0x1f] sm:$0xff] }
 0x6cd   :  { %v2328_v21 = vld [vmem:[#allocation2 + $0x19] sm:$0xff]  ;;  %v2329_v34 = vld [vmem:[#allocation2 + $0x21] sm:$0xff]  ;;  %3385 = vmatprep.mubr.msk.bf16.mxu1 %vm3848_vm13, %v2974_v53  ;;  %v2971_v25 = vpack.c.bf16 %v2321_v19, %v2320_v18 }
 0x6ce   :  { %v2977_v26 = vpack.c.bf16 %v2329_v34, %v2328_v21 }
 0x6cf   :  { %2972 = vmatmul.mubr.msk.bf16.gmra.mrb[52].mxu0 %vm3843_vm12, %v2971_v25 }
 0x6d0   :  { %3386 = vmatmul.mubr.msk.bf16.vlgmr.msra.gmra.mrb[32].mxu1 %vm3872_vm15, %v2977_v26 }
 0x79a   :  { %v3227_v23 = vpop.f32.mrb[48].mxu0 }
 0x79b   :  { %v3228_v12 = vpop.f32.mrb[49].mxu0 }
 0x79c   :  { %v3229_v54 = vadd.f32 %v3228_v12, %v3227_v23  ;;  %v3230_v29 = vpop.f32.mrb[50].mxu0 }
 0x79d   :  { %v3231_v30 = vpop.f32.mrb[51].mxu0 }
 0x79e   :  { %v3232_v2 = vadd.f32 %v3231_v30, %v3230_v29 }
 0x7a2   :  { %v3233_v45 = vpop.f32.mrb[52].mxu0 }
 0x7a3   :  { %v3387_v62 = vpop.f32.mrb[32].mxu1  ;;  %v3234_v57 = vpop.f32.mrb[53].mxu0 }
 0x7a4   :  { %v2615_v63 = vpop.f32.mrb[33].mxu1  ;;  %v3235_v36 = vadd.f32 %v3234_v57, %v3233_v45  ;;  %v3236_v37 = vpop.f32.mrb[54].mxu0 }
 0x7a5   :  { %v2616_v32 = vadd.f32 %v3229_v54, %v2615_v63  ;;  %v3388_v40 = vpop.f32.mrb[34].mxu1  ;;  %v3237_v5 = vpop.f32.mrb[55].mxu0 }
 0x7a6   :  { %v2618_v33 = vpop.f32.mrb[35].mxu1  ;;  %v2624_v43 = vadd.f32 %v3387_v62, %v3235_v36  ;;  %v3238_v47 = vadd.f32 %v3237_v5, %v3236_v37 }
 0x7a7   :  { %v2630_v16 = vadd.f32 %v2616_v32, %v2306_v35  ;;  %v2619_v0 = vadd.f32 %v3232_v2, %v2618_v33 }
 0x7a8   :  { %v2632_v59 = vadd.f32 %v2624_v43, %v2308_v55  ;;  %v2627_v24 = vadd.f32 %v3388_v40, %v3238_v47 }
 0x7a9   :  { %v2634_v41 = vadd.f32 %v2630_v16, %v3795_v1  ;;  %v2631_v44 = vadd.f32 %v2619_v0, %v2307_v50 }
 0x7aa   :  { %v2636_v46 = vadd.f32 %v2632_v59, %v3808_v11  ;;  %v2633_v58 = vadd.f32 %v2627_v24, %v2309_v49 }
 0x7ab   :  { %vm2638_vm8 = vcmp.ge.f32.partialorder %v2634_v41, 1.0  ;;  %v2635_v42 = vadd.f32 %v2631_v44, %v3801_v6 }
 0x7ac   :  { %v2979_v56 = vsel %vm2638_vm8, 1.0, %v4416_v15  ;;  %vm2640_vm12 = vcmp.ge.f32.partialorder %v2636_v46, 1.0  ;;  %v2637_v39 = vadd.f32 %v2633_v58, %v3818_v17 }
 0x7ad   :  { %v2650_v27 = vadd.f32 %v2979_v56, %v4731_v10  ;;  %vm2639_vm13 = vcmp.ge.f32.partialorder %v2635_v42, 1.0  ;;  %v2981_v20 = vsel %vm2640_vm12, 1.0, %v4416_v15 }
 0x7ae   :  { %v2980_v1 = vsel %vm2639_vm13, 1.0, %v4416_v15  ;;  %v2652_v48 = vadd.f32 %v2981_v20, %v2312_v31  ;;  %vm2641_vm15 = vcmp.ge.f32.partialorder %v2637_v39, 1.0 }
 0x7af   :  { %v2654_v35 = vmul.f32 0.125, %v2650_v27  ;;  %v2651_v11 = vadd.f32 %v2980_v1, %v4744_v3  ;;  %v2982_v51 = vsel %vm2641_vm15, 1.0, %v4416_v15 }
 0x7b0   :  { %v2656_v6 = vmul.f32 0.125, %v2652_v48  ;;  %v2653_v10 = vadd.f32 %v2982_v51, %v2313_v38 }
 0x7b1   :  { %2658 = vst [vmem:[%s4794_s4] sm:$0xff] %v2654_v35  ;;  %v2655_v61 = vmul.f32 0.125, %v2651_v11 }
 0x7b2   :  { %2660 = vst [vmem:[%s4794_s4 + $0x10] sm:$0xff] %v2656_v6  ;;  %v2657_v17 = vmul.f32 0.125, %v2653_v10 }
 0x7b3   :  { %2659 = vst [vmem:[%s4794_s4 + $0x8] sm:$0xff] %v2655_v61 }
 0x7b4   :  { %2661 = vst [vmem:[%s4794_s4 + $0x18] sm:$0xff] %v2657_v17 }

// kernel: snn_ide_convnet_forward.3
= control target key start
LH: loop header
LB: loop body
LE: loop exit
PB: predicated region body
PF: predicated region fallthrough
CT: control target
= control target key end

     0   :  { %v1513_v47 = vmov 1983009808   ;;  %v290_v49 = vlaneseq  ;;  %s2370_s0 = inlined_call_operand.vmem [shape: f32[2,2048], index: 0, kind: input, shape index: {}]   ;;  %s2371_s1 = inlined_call_operand.vmem [shape: f32[2048,10], index: 1, kind: input, shape index: {}]   ;;  %s2372_s2 = inlined_call_operand.vmem [shape: f32[1,10], index: 2, kind: input, shape index: {}]   ;;  %s2373_s3 = inlined_call_operand.hbm [shape: f32[2,10], index: 3, kind: output, shape index: {}]  }
   0x1   :  { %v35_v0 = vld [vmem:[%s2371_s1 + $0x80] sm:$0xff]  ;;  %v36_v1 = vld [vmem:[%s2371_s1 + $0x88] sm:$0xff]  ;;  %v37_v11 = vld [vmem:[%s2371_s1 + $0x90] sm:$0xff]  ;;  %v288_v48 = vunpack.c.l.s4 %v1513_v47 }
   0x2   :  { %v19_v2 = vld [vmem:[%s2371_s1] sm:$0xff]  ;;  %v1227_v3 = vpack.c.bf16 %v36_v1, %v35_v0  ;;  %v20_v4 = vld [vmem:[%s2371_s1 + $0x8] sm:$0xff]  ;;  %v38_v13 = vld [vmem:[%s2371_s1 + $0x98] sm:$0xff]  ;;  %v291_v0 = vshrl.u32 %v290_v49, 7 }
   0x3   :  { %v67_v5 = vld [vmem:[%s2371_s1 + $0x180] sm:$0xff]  ;;  %v68_v6 = vld [vmem:[%s2371_s1 + $0x188] sm:$0xff]  ;;  %v1229_v7 = vpack.c.bf16 %v20_v4, %v19_v2  ;;  %v21_v14 = vld [vmem:[%s2371_s1 + $0x10] sm:$0xff]  ;;  %v1231_v16 = vpack.c.bf16 %v38_v13, %v37_v11  ;;  %v289_v63 = vunpack.c.0.s8 %v288_v48 }
   0x4   :  { %v1259_v8 = vpack.c.bf16 %v68_v6, %v67_v5  ;;  %v51_v9 = vld [vmem:[%s2371_s1 + $0x100] sm:$0xff]  ;;  %v52_v10 = vld [vmem:[%s2371_s1 + $0x108] sm:$0xff]  ;;  %1228 = vmatprep.subr.bf16.mxu0 %v1227_v3  ;;  %v22_v15 = vld [vmem:[%s2371_s1 + $0x18] sm:$0xff] }
   0x5   :  { %v1261_v12 = vpack.c.bf16 %v52_v10, %v51_v9  ;;  %1230 = vmatpush3.bf16.msra.mxu0 %v1229_v7  ;;  %v1233_v17 = vpack.c.bf16 %v22_v15, %v21_v14  ;;  %v69_v18 = vld [vmem:[%s2371_s1 + $0x190] sm:$0xff]  ;;  %v70_v19 = vld [vmem:[%s2371_s1 + $0x198] sm:$0xff]  ;;  %v39_v23 = vld [vmem:[%s2371_s1 + $0xa0] sm:$0xff]  ;;  %v1685_v13 = vsub.s32 %v289_v63, %v291_v0 }
   0x6   :  { %1260 = vmatprep.subr.bf16.mxu1 %v1259_v8  ;;  %v53_v20 = vld [vmem:[%s2371_s1 + $0x110] sm:$0xff]  ;;  %v1263_v21 = vpack.c.bf16 %v70_v19, %v69_v18  ;;  %v54_v22 = vld [vmem:[%s2371_s1 + $0x118] sm:$0xff]  ;;  %v40_v24 = vld [vmem:[%s2371_s1 + $0xa8] sm:$0xff]  ;;  %1232 = vmatprep.subr.bf16.mxu0 %v1231_v16 }
   0x7   :  { %1262 = vmatpush3.bf16.msra.mxu1 %v1261_v12  ;;  %v1265_v25 = vpack.c.bf16 %v54_v22, %v53_v20  ;;  %v1235_v26 = vpack.c.bf16 %v40_v24, %v39_v23  ;;  %v23_v27 = vld [vmem:[%s2371_s1 + $0x20] sm:$0xff]  ;;  %v24_v28 = vld [vmem:[%s2371_s1 + $0x28] sm:$0xff]  ;;  %v41_v35 = vld [vmem:[%s2371_s1 + $0xb0] sm:$0xff] }
   0x8   :  { %v71_v29 = vld [vmem:[%s2371_s1 + $0x1a0] sm:$0xff]  ;;  %1264 = vmatprep.subr.bf16.mxu1 %v1263_v21  ;;  %v72_v30 = vld [vmem:[%s2371_s1 + $0x1a8] sm:$0xff]  ;;  %v1237_v33 = vpack.c.bf16 %v24_v28, %v23_v27  ;;  %v42_v36 = vld [vmem:[%s2371_s1 + $0xb8] sm:$0xff] }
   0x9   :  { %v55_v31 = vld [vmem:[%s2371_s1 + $0x120] sm:$0xff]  ;;  %v56_v32 = vld [vmem:[%s2371_s1 + $0x128] sm:$0xff]  ;;  %1234 = vmatpush3.bf16.msra.mxu0 %v1233_v17  ;;  %v1267_v34 = vpack.c.bf16 %v72_v30, %v71_v29  ;;  %v25_v37 = vld [vmem:[%s2371_s1 + $0x30] sm:$0xff]  ;;  %v1239_v39 = vpack.c.bf16 %v42_v36, %v41_v35 }
   0xa   :  { %1236 = vmatprep.subr.bf16.mxu0 %v1235_v26  ;;  %v1269_v38 = vpack.c.bf16 %v56_v32, %v55_v31  ;;  %v26_v40 = vld [vmem:[%s2371_s1 + $0x38] sm:$0xff]  ;;  %v73_v41 = vld [vmem:[%s2371_s1 + $0x1b0] sm:$0xff]  ;;  %v43_v46 = vld [vmem:[%s2371_s1 + $0xc0] sm:$0xff] }
   0xb   :  { %1266 = vmatpush3.bf16.msra.mxu1 %v1265_v25  ;;  %v74_v42 = vld [vmem:[%s2371_s1 + $0x1b8] sm:$0xff]  ;;  %v57_v44 = vld [vmem:[%s2371_s1 + $0x130] sm:$0xff]  ;;  %v44_v50 = vld [vmem:[%s2371_s1 + $0xc8] sm:$0xff]  ;;  %v1241_v51 = vpack.c.bf16 %v26_v40, %v25_v37 }
   0xc   :  { %1268 = vmatprep.subr.bf16.mxu1 %v1267_v34  ;;  %v1271_v43 = vpack.c.bf16 %v74_v42, %v73_v41  ;;  %v58_v45 = vld [vmem:[%s2371_s1 + $0x138] sm:$0xff]  ;;  %v75_v52 = vld [vmem:[%s2371_s1 + $0x1c0] sm:$0xff]  ;;  %v76_v53 = vld [vmem:[%s2371_s1 + $0x1c8] sm:$0xff]  ;;  %v1243_v55 = vpack.c.bf16 %v44_v50, %v43_v46 }
   0xd   :  { %1238 = vmatpush3.bf16.msra.mxu0 %v1237_v33  ;;  %v1273_v54 = vpack.c.bf16 %v58_v45, %v57_v44  ;;  %v27_v56 = vld [vmem:[%s2371_s1 + $0x40] sm:$0xff]  ;;  %v28_v57 = vld [vmem:[%s2371_s1 + $0x48] sm:$0xff]  ;;  %v1275_v59 = vpack.c.bf16 %v76_v53, %v75_v52  ;;  %v45_v61 = vld [vmem:[%s2371_s1 + $0xd0] sm:$0xff] }
   0xe   :  { %1240 = vmatprep.subr.bf16.mxu0 %v1239_v39  ;;  %v59_v58 = vld [vmem:[%s2371_s1 + $0x140] sm:$0xff]  ;;  %v60_v60 = vld [vmem:[%s2371_s1 + $0x148] sm:$0xff]  ;;  %v46_v62 = vld [vmem:[%s2371_s1 + $0xd8] sm:$0xff]  ;;  %v1245_v3 = vpack.c.bf16 %v28_v57, %v27_v56 }
   0xf   :  { %1270 = vmatpush3.bf16.msra.mxu1 %v1269_v38  ;;  %v77_v1 = vld [vmem:[%s2371_s1 + $0x1d0] sm:$0xff]  ;;  %v78_v2 = vld [vmem:[%s2371_s1 + $0x1d8] sm:$0xff]  ;;  %v1277_v4 = vpack.c.bf16 %v60_v60, %v59_v58  ;;  %v1247_v5 = vpack.c.bf16 %v46_v62, %v45_v61  ;;  %v47_v11 = vld [vmem:[%s2371_s1 + $0xe0] sm:$0xff] }
  0x10   :  { %1272 = vmatprep.subr.bf16.mxu1 %v1271_v43  ;;  %v29_v6 = vld [vmem:[%s2371_s1 + $0x50] sm:$0xff]  ;;  %v30_v7 = vld [vmem:[%s2371_s1 + $0x58] sm:$0xff]  ;;  %v1279_v9 = vpack.c.bf16 %v78_v2, %v77_v1  ;;  %v48_v12 = vld [vmem:[%s2371_s1 + $0xe8] sm:$0xff] }
  0x11   :  { %1242 = vmatpush3.bf16.msra.mxu0 %v1241_v51  ;;  %v61_v8 = vld [vmem:[%s2371_s1 + $0x150] sm:$0xff]  ;;  %v62_v10 = vld [vmem:[%s2371_s1 + $0x158] sm:$0xff]  ;;  %v79_v14 = vld [vmem:[%s2371_s1 + $0x1e0] sm:$0xff]  ;;  %v1249_v16 = vpack.c.bf16 %v30_v7, %v29_v6  ;;  %v1251_v19 = vpack.c.bf16 %v48_v12, %v47_v11 }
  0x12   :  { %1244 = vmatprep.subr.bf16.mxu0 %v1243_v55  ;;  %v80_v15 = vld [vmem:[%s2371_s1 + $0x1e8] sm:$0xff]  ;;  %v31_v17 = vld [vmem:[%s2371_s1 + $0x60] sm:$0xff]  ;;  %v1281_v18 = vpack.c.bf16 %v62_v10, %v61_v8  ;;  %v49_v25 = vld [vmem:[%s2371_s1 + $0xf0] sm:$0xff] }
  0x13   :  { %1274 = vmatpush3.bf16.msra.mxu1 %v1273_v54  ;;  %v32_v20 = vld [vmem:[%s2371_s1 + $0x68] sm:$0xff]  ;;  %v63_v21 = vld [vmem:[%s2371_s1 + $0x160] sm:$0xff]  ;;  %v1283_v23 = vpack.c.bf16 %v80_v15, %v79_v14  ;;  %v50_v26 = vld [vmem:[%s2371_s1 + $0xf8] sm:$0xff] }
  0x14   :  { %1276 = vmatprep.subr.bf16.mxu1 %v1275_v59  ;;  %v15_v22 = vld [vmem:[%s2370_s0] sm:$0xff]  ;;  %v64_v24 = vld [vmem:[%s2371_s1 + $0x168] sm:$0xff]  ;;  %v81_v29 = vld [vmem:[%s2371_s1 + $0x1f0] sm:$0xff]  ;;  %v1253_v31 = vpack.c.bf16 %v32_v20, %v31_v17  ;;  %v1255_v35 = vpack.c.bf16 %v50_v26, %v49_v25 }
  0x15   :  { %1246 = vmatpush3.bf16.msra.mxu0 %v1245_v3  ;;  %v293_v27 = vrot.slane %v15_v22, %v1685_v13  ;;  %v286_v28 = vcombine.high %v15_v22, %v15_v22  ;;  %v82_v30 = vld [vmem:[%s2371_s1 + $0x1f8] sm:$0xff]  ;;  %v1285_v34 = vpack.c.bf16 %v64_v24, %v63_v21  ;;  %v33_v36 = vld [vmem:[%s2371_s1 + $0x70] sm:$0xff]  ;;  %v99_v41 = vld [vmem:[%s2371_s1 + $0x280] sm:$0xff] }
  0x16   :  { %1248 = vmatprep.subr.bf16.mxu0 %v1247_v5  ;;  %v34_v37 = vld [vmem:[%s2371_s1 + $0x78] sm:$0xff]  ;;  %v65_v38 = vld [vmem:[%s2371_s1 + $0x170] sm:$0xff]  ;;  %v1287_v39 = vpack.c.bf16 %v82_v30, %v81_v29  ;;  %v100_v42 = vld [vmem:[%s2371_s1 + $0x288] sm:$0xff] }
  0x17   :  { %1278 = vmatpush3.bf16.msra.mxu1 %v1277_v4  ;;  %v301_v32 = vcombine.high %v293_v27, %v293_v27  ;;  %v300_v33 = vrot.slane %v286_v28, %v1685_v13  ;;  %v66_v40 = vld [vmem:[%s2371_s1 + $0x178] sm:$0xff]  ;;  %v131_v44 = vld [vmem:[%s2371_s1 + $0x380] sm:$0xff]  ;;  %v132_v45 = vld [vmem:[%s2371_s1 + $0x388] sm:$0xff]  ;;  %v1257_v46 = vpack.c.bf16 %v34_v37, %v33_v36  ;;  %v1291_v48 = vpack.c.bf16 %v100_v42, %v99_v41 }
  0x18   :  { %1280 = vmatprep.subr.bf16.mxu1 %v1279_v9  ;;  %v1289_v47 = vpack.c.bf16 %v66_v40, %v65_v38  ;;  %v83_v49 = vld [vmem:[%s2371_s1 + $0x200] sm:$0xff]  ;;  %v84_v50 = vld [vmem:[%s2371_s1 + $0x208] sm:$0xff]  ;;  %v1323_v52 = vpack.c.bf16 %v132_v45, %v131_v44  ;;  %v101_v54 = vld [vmem:[%s2371_s1 + $0x290] sm:$0xff] }
  0x19   :  { %1250 = vmatpush3.bf16.msra.mxu0 %v1249_v16  ;;  %434 = vmatprep.mubr.f32.mxu0 %v301_v32  ;;  %v302_v43 = vcombine.high %v300_v33, %v300_v33  ;;  %v115_v51 = vld [vmem:[%s2371_s1 + $0x300] sm:$0xff]  ;;  %v116_v53 = vld [vmem:[%s2371_s1 + $0x308] sm:$0xff]  ;;  %v102_v55 = vld [vmem:[%s2371_s1 + $0x298] sm:$0xff]  ;;  %v1293_v58 = vpack.c.bf16 %v84_v50, %v83_v49 }
  0x1a   :  { %1252 = vmatprep.subr.bf16.mxu0 %v1251_v19  ;;  %v133_v56 = vld [vmem:[%s2371_s1 + $0x390] sm:$0xff]  ;;  %v134_v57 = vld [vmem:[%s2371_s1 + $0x398] sm:$0xff]  ;;  %v1325_v59 = vpack.c.bf16 %v116_v53, %v115_v51  ;;  %v1295_v60 = vpack.c.bf16 %v102_v55, %v101_v54  ;;  %v103_v2 = vld [vmem:[%s2371_s1 + $0x2a0] sm:$0xff] }
  0x1b   :  { %1282 = vmatpush3.bf16.msra.mxu1 %v1281_v18  ;;  %504 = vmatprep.mubr.f32.mxu1 %v302_v43  ;;  %v85_v61 = vld [vmem:[%s2371_s1 + $0x210] sm:$0xff]  ;;  %v86_v62 = vld [vmem:[%s2371_s1 + $0x218] sm:$0xff]  ;;  %v1327_v0 = vpack.c.bf16 %v134_v57, %v133_v56  ;;  %v104_v3 = vld [vmem:[%s2371_s1 + $0x2a8] sm:$0xff] }
  0x1c   :  { %1284 = vmatprep.subr.bf16.mxu1 %v1283_v23  ;;  %v117_v63 = vld [vmem:[%s2371_s1 + $0x310] sm:$0xff]  ;;  %v118_v1 = vld [vmem:[%s2371_s1 + $0x318] sm:$0xff]  ;;  %v135_v4 = vld [vmem:[%s2371_s1 + $0x3a0] sm:$0xff]  ;;  %v1297_v6 = vpack.c.bf16 %v86_v62, %v85_v61  ;;  %v1299_v8 = vpack.c.bf16 %v104_v3, %v103_v2 }
  0x1d   :  { %1254 = vmatpush3.bf16.msra.mxu0 %v1253_v31  ;;  %v136_v5 = vld [vmem:[%s2371_s1 + $0x3a8] sm:$0xff]  ;;  %v1329_v7 = vpack.c.bf16 %v118_v1, %v117_v63  ;;  %v87_v9 = vld [vmem:[%s2371_s1 + $0x220] sm:$0xff]  ;;  %v105_v15 = vld [vmem:[%s2371_s1 + $0x2b0] sm:$0xff] }
  0x1e   :  { %1256 = vmatprep.subr.bf16.mxu0 %v1255_v35  ;;  %v88_v10 = vld [vmem:[%s2371_s1 + $0x228] sm:$0xff]  ;;  %v119_v11 = vld [vmem:[%s2371_s1 + $0x320] sm:$0xff]  ;;  %v1331_v12 = vpack.c.bf16 %v136_v5, %v135_v4  ;;  %v106_v16 = vld [vmem:[%s2371_s1 + $0x2b8] sm:$0xff] }
  0x1f   :  { %1286 = vmatpush3.bf16.msra.mxu1 %v1285_v34  ;;  %v120_v14 = vld [vmem:[%s2371_s1 + $0x328] sm:$0xff]  ;;  %v137_v17 = vld [vmem:[%s2371_s1 + $0x3b0] sm:$0xff]  ;;  %v138_v18 = vld [vmem:[%s2371_s1 + $0x3b8] sm:$0xff]  ;;  %v1301_v19 = vpack.c.bf16 %v88_v10, %v87_v9  ;;  %v1303_v21 = vpack.c.bf16 %v106_v16, %v105_v15 }
  0x20   :  { %1288 = vmatprep.subr.bf16.mxu1 %v1287_v39  ;;  %v1333_v20 = vpack.c.bf16 %v120_v14, %v119_v11  ;;  %v89_v22 = vld [vmem:[%s2371_s1 + $0x230] sm:$0xff]  ;;  %v90_v23 = vld [vmem:[%s2371_s1 + $0x238] sm:$0xff]  ;;  %v1335_v25 = vpack.c.bf16 %v138_v18, %v137_v17  ;;  %v108_v28 = vld [vmem:[%s2371_s1 + $0x2c8] sm:$0xff] }
  0x21   :  { %1258 = vmatpush3.bf16.msra.mxu0 %v1257_v46  ;;  %v121_v24 = vld [vmem:[%s2371_s1 + $0x330] sm:$0xff]  ;;  %v122_v26 = vld [vmem:[%s2371_s1 + $0x338] sm:$0xff]  ;;  %v139_v29 = vld [vmem:[%s2371_s1 + $0x3c0] sm:$0xff]  ;;  %v1305_v32 = vpack.c.bf16 %v90_v23, %v89_v22 }
  0x22   :  { %1292 = vmatprep.subr.bf16.mxu0 %v1291_v48  ;;  %v140_v30 = vld [vmem:[%s2371_s1 + $0x3c8] sm:$0xff]  ;;  %v1337_v35 = vpack.c.bf16 %v122_v26, %v121_v24  ;;  %v91_v37 = vld [vmem:[%s2371_s1 + $0x240] sm:$0xff]  ;;  %v109_v42 = vld [vmem:[%s2371_s1 + $0x2d0] sm:$0xff] }
  0x23   :  { %1290 = vmatpush3.bf16.msra.mxu1 %v1289_v47  ;;  %v16_v31 = vld [vmem:[%s2370_s0 + $0x8] sm:$0xff]  ;;  %v123_v39 = vld [vmem:[%s2371_s1 + $0x340] sm:$0xff]  ;;  %v1339_v40 = vpack.c.bf16 %v140_v30, %v139_v29  ;;  %v110_v43 = vld [vmem:[%s2371_s1 + $0x2d8] sm:$0xff] }
  0x24   :  { %1324 = vmatprep.subr.bf16.mxu1 %v1323_v52  ;;  %435 = vmatmul.mubr.f32.vlgmr.msra.gmra.mrb[0].mxu0 %v293_v27  ;;  %v107_v27 = vld [vmem:[%s2371_s1 + $0x2c0] sm:$0xff]  ;;  %v303_v34 = vcombine.high %v16_v31, %v16_v31  ;;  %v92_v38 = vld [vmem:[%s2371_s1 + $0x248] sm:$0xff]  ;;  %v141_v46 = vld [vmem:[%s2371_s1 + $0x3d0] sm:$0xff]  ;;  %v1311_v51 = vpack.c.bf16 %v110_v43, %v109_v42 }
  0x25   :  { %1294 = vmatpush3.bf16.msra.mxu0 %v1293_v58  ;;  %v1307_v36 = vpack.c.bf16 %v108_v28, %v107_v27  ;;  %v124_v41 = vld [vmem:[%s2371_s1 + $0x348] sm:$0xff]  ;;  %v142_v47 = vld [vmem:[%s2371_s1 + $0x3d8] sm:$0xff]  ;;  %v1309_v48 = vpack.c.bf16 %v92_v38, %v91_v37  ;;  %v93_v52 = vld [vmem:[%s2371_s1 + $0x250] sm:$0xff] }
  0x26   :  { %505 = vmatmul.mubr.f32.vlgmr.msra.gmra.mrb[0].mxu1 %v300_v33  ;;  %1296 = vmatprep.subr.bf16.mxu0 %v1295_v60  ;;  %v1846_v33 = vrot.slane %v16_v31, %v1685_v13  ;;  %v1869_v45 = vrot.slane %v303_v34, %v1685_v13  ;;  %v1341_v50 = vpack.c.bf16 %v124_v41, %v123_v39  ;;  %v94_v53 = vld [vmem:[%s2371_s1 + $0x258] sm:$0xff]  ;;  %v125_v54 = vld [vmem:[%s2371_s1 + $0x350] sm:$0xff]  ;;  %v111_v57 = vld [vmem:[%s2371_s1 + $0x2e0] sm:$0xff] }
  0x27   :  { %1326 = vmatpush3.bf16.msra.mxu1 %v1325_v59  ;;  %v1343_v55 = vpack.c.bf16 %v142_v47, %v141_v46  ;;  %v126_v56 = vld [vmem:[%s2371_s1 + $0x358] sm:$0xff]  ;;  %v112_v58 = vld [vmem:[%s2371_s1 + $0x2e8] sm:$0xff]  ;;  %v143_v59 = vld [vmem:[%s2371_s1 + $0x3e0] sm:$0xff]  ;;  %v1313_v61 = vpack.c.bf16 %v94_v53, %v93_v52 }
  0x28   :  { %1328 = vmatprep.subr.bf16.mxu1 %v1327_v0  ;;  %v318_v44 = vcombine.high %v1846_v33, %v1846_v33  ;;  %v319_v49 = vcombine.high %v1869_v45, %v1869_v45  ;;  %v144_v60 = vld [vmem:[%s2371_s1 + $0x3e8] sm:$0xff]  ;;  %v1345_v62 = vpack.c.bf16 %v126_v56, %v125_v54  ;;  %v1315_v63 = vpack.c.bf16 %v112_v58, %v111_v57  ;;  %v95_v0 = vld [vmem:[%s2371_s1 + $0x260] sm:$0xff]  ;;  %v113_v5 = vld [vmem:[%s2371_s1 + $0x2f0] sm:$0xff] }
  0x29   :  { %1298 = vmatpush3.bf16.msra.mxu0 %v1297_v6  ;;  %v96_v1 = vld [vmem:[%s2371_s1 + $0x268] sm:$0xff]  ;;  %v127_v2 = vld [vmem:[%s2371_s1 + $0x360] sm:$0xff]  ;;  %v1347_v3 = vpack.c.bf16 %v144_v60, %v143_v59  ;;  %v114_v6 = vld [vmem:[%s2371_s1 + $0x2f8] sm:$0xff] }
  0x2a   :  { %1300 = vmatprep.subr.bf16.mxu0 %v1299_v8  ;;  %574 = vmatprep.mubr.f32.mxu0 %v318_v44  ;;  %v128_v4 = vld [vmem:[%s2371_s1 + $0x368] sm:$0xff]  ;;  %v146_v8 = vld [vmem:[%s2371_s1 + $0x3f8] sm:$0xff]  ;;  %v1317_v9 = vpack.c.bf16 %v96_v1, %v95_v0  ;;  %v1319_v11 = vpack.c.bf16 %v114_v6, %v113_v5  ;;  %v129_v15 = vld [vmem:[%s2371_s1 + $0x370] sm:$0xff] }
  0x2b   :  { %1330 = vmatpush3.bf16.msra.mxu1 %v1329_v7  ;;  %644 = vmatprep.mubr.f32.mxu1 %v319_v49  ;;  %v145_v7 = vld [vmem:[%s2371_s1 + $0x3f0] sm:$0xff]  ;;  %v1349_v10 = vpack.c.bf16 %v128_v4, %v127_v2  ;;  %v98_v14 = vld [vmem:[%s2371_s1 + $0x278] sm:$0xff]  ;;  %v163_v18 = vld [vmem:[%s2371_s1 + $0x480] sm:$0xff] }
  0x2c   :  { %1332 = vmatprep.subr.bf16.mxu1 %v1331_v12  ;;  %v97_v12 = vld [vmem:[%s2371_s1 + $0x270] sm:$0xff]  ;;  %v1351_v16 = vpack.c.bf16 %v146_v8, %v145_v7  ;;  %v130_v17 = vld [vmem:[%s2371_s1 + $0x378] sm:$0xff]  ;;  %v147_v23 = vld [vmem:[%s2371_s1 + $0x400] sm:$0xff] }
  0x2d   :  { %1302 = vmatpush3.bf16.msra.mxu0 %v1301_v19  ;;  %v164_v19 = vld [vmem:[%s2371_s1 + $0x488] sm:$0xff]  ;;  %v1321_v22 = vpack.c.bf16 %v98_v14, %v97_v12  ;;  %v1353_v24 = vpack.c.bf16 %v130_v17, %v129_v15  ;;  %v179_v27 = vld [vmem:[%s2371_s1 + $0x500] sm:$0xff]  ;;  %v165_v30 = vld [vmem:[%s2371_s1 + $0x490] sm:$0xff] }
  0x2e   :  { %1304 = vmatprep.subr.bf16.mxu0 %v1303_v21  ;;  %v196_v21 = vld [vmem:[%s2371_s1 + $0x588] sm:$0xff]  ;;  %v166_v31 = vld [vmem:[%s2371_s1 + $0x498] sm:$0xff]  ;;  %v17_v37 = vld [vmem:[%s2370_s0 + $0x10] sm:$0xff] }
  0x2f   :  { %1334 = vmatpush3.bf16.msra.mxu1 %v1333_v20  ;;  %v195_v20 = vld [vmem:[%s2371_s1 + $0x580] sm:$0xff]  ;;  %v148_v26 = vld [vmem:[%s2371_s1 + $0x408] sm:$0xff]  ;;  %v198_v34 = vld [vmem:[%s2371_s1 + $0x598] sm:$0xff]  ;;  %v1359_v38 = vpack.c.bf16 %v166_v31, %v165_v30  ;;  %v1988_v42 = vrot.slane %v17_v37, %v1685_v13  ;;  %v320_v43 = vcombine.high %v17_v37, %v17_v37 }
  0x30   :  { %1336 = vmatprep.subr.bf16.mxu1 %v1335_v25  ;;  %v1355_v25 = vpack.c.bf16 %v164_v19, %v163_v18  ;;  %v180_v28 = vld [vmem:[%s2371_s1 + $0x508] sm:$0xff]  ;;  %v1387_v29 = vpack.c.bf16 %v196_v21, %v195_v20  ;;  %v149_v39 = vld [vmem:[%s2371_s1 + $0x410] sm:$0xff]  ;;  %v182_v46 = vld [vmem:[%s2371_s1 + $0x518] sm:$0xff] }
  0x31   :  { %1306 = vmatpush3.bf16.msra.mxu0 %v1305_v32  ;;  %v197_v32 = vld [vmem:[%s2371_s1 + $0x590] sm:$0xff]  ;;  %v167_v47 = vld [vmem:[%s2371_s1 + $0x4a0] sm:$0xff]  ;;  %v2009_v52 = vrot.slane %v320_v43, %v1685_v13  ;;  %v152_v56 = vld [vmem:[%s2371_s1 + $0x428] sm:$0xff] }
  0x32   :  { %1308 = vmatprep.subr.bf16.mxu0 %v1307_v36  ;;  %v1389_v36 = vpack.c.bf16 %v180_v28, %v179_v27  ;;  %v181_v41 = vld [vmem:[%s2371_s1 + $0x510] sm:$0xff]  ;;  %v1391_v44 = vpack.c.bf16 %v198_v34, %v197_v32  ;;  %v199_v49 = vld [vmem:[%s2371_s1 + $0x5a0] sm:$0xff]  ;;  %v184_v59 = vld [vmem:[%s2371_s1 + $0x528] sm:$0xff] }
  0x33   :  { %1338 = vmatpush3.bf16.msra.mxu1 %v1337_v35  ;;  %v1357_v35 = vpack.c.bf16 %v148_v26, %v147_v23  ;;  %v183_v57 = vld [vmem:[%s2371_s1 + $0x520] sm:$0xff]  ;;  %v169_v60 = vld [vmem:[%s2371_s1 + $0x4b0] sm:$0xff]  ;;  %v154_v4 = vld [vmem:[%s2371_s1 + $0x438] sm:$0xff] }
  0x34   :  { %1340 = vmatprep.subr.bf16.mxu1 %v1339_v40  ;;  %v150_v40 = vld [vmem:[%s2371_s1 + $0x418] sm:$0xff]  ;;  %v1397_v1 = vpack.c.bf16 %v184_v59, %v183_v57  ;;  %v185_v5 = vld [vmem:[%s2371_s1 + $0x530] sm:$0xff]  ;;  %v171_v8 = vld [vmem:[%s2371_s1 + $0x4c0] sm:$0xff] }
  0x35   :  { %1310 = vmatpush3.bf16.msra.mxu0 %v1309_v48  ;;  %v168_v48 = vld [vmem:[%s2371_s1 + $0x4a8] sm:$0xff]  ;;  %v1361_v53 = vpack.c.bf16 %v150_v40, %v149_v39  ;;  %v186_v7 = vld [vmem:[%s2371_s1 + $0x538] sm:$0xff]  ;;  %v187_v18 = vld [vmem:[%s2371_s1 + $0x540] sm:$0xff] }
  0x36   :  { %1312 = vmatprep.subr.bf16.mxu0 %v1311_v51  ;;  %v335_v51 = vcombine.high %v1988_v42, %v1988_v42  ;;  %v1363_v54 = vpack.c.bf16 %v168_v48, %v167_v47  ;;  %v1401_v14 = vpack.c.bf16 %v186_v7, %v185_v5  ;;  %v156_v17 = vld [vmem:[%s2371_s1 + $0x448] sm:$0xff]  ;;  %v173_v21 = vld [vmem:[%s2371_s1 + $0x4d0] sm:$0xff]  ;;  %v190_v32 = vld [vmem:[%s2371_s1 + $0x558] sm:$0xff] }
  0x37   :  { %1342 = vmatpush3.bf16.msra.mxu1 %v1341_v50  ;;  %v200_v50 = vld [vmem:[%s2371_s1 + $0x5a8] sm:$0xff]  ;;  %v205_v23 = vld [vmem:[%s2371_s1 + $0x5d0] sm:$0xff]  ;;  %v175_v34 = vld [vmem:[%s2371_s1 + $0x4e0] sm:$0xff] }
  0x38   :  { %1344 = vmatprep.subr.bf16.mxu1 %v1343_v55  ;;  %v151_v55 = vld [vmem:[%s2371_s1 + $0x420] sm:$0xff]  ;;  %v1395_v58 = vpack.c.bf16 %v200_v50, %v199_v49  ;;  %v188_v20 = vld [vmem:[%s2371_s1 + $0x548] sm:$0xff]  ;;  %v157_v28 = vld [vmem:[%s2371_s1 + $0x450] sm:$0xff] }
  0x39   :  { %1314 = vmatpush3.bf16.msra.mxu0 %v1313_v61  ;;  %v170_v61 = vld [vmem:[%s2371_s1 + $0x4b8] sm:$0xff]  ;;  %v1365_v0 = vpack.c.bf16 %v152_v56, %v151_v55  ;;  %v1405_v26 = vpack.c.bf16 %v188_v20, %v187_v18  ;;  %v189_v30 = vld [vmem:[%s2371_s1 + $0x550] sm:$0xff]  ;;  %v208_v37 = vld [vmem:[%s2371_s1 + $0x5e8] sm:$0xff] }
  0x3a   :  { %1316 = vmatprep.subr.bf16.mxu0 %v1315_v63  ;;  %v202_v63 = vld [vmem:[%s2371_s1 + $0x5b8] sm:$0xff]  ;;  %v1367_v2 = vpack.c.bf16 %v170_v61, %v169_v60  ;;  %v159_v39 = vld [vmem:[%s2371_s1 + $0x460] sm:$0xff]  ;;  %v1409_v40 = vpack.c.bf16 %v190_v32, %v189_v30  ;;  %v160_v43 = vld [vmem:[%s2371_s1 + $0x468] sm:$0xff] }
  0x3b   :  { %1346 = vmatpush3.bf16.msra.mxu1 %v1345_v62  ;;  %v201_v62 = vld [vmem:[%s2371_s1 + $0x5b0] sm:$0xff]  ;;  %v178_v49 = vld [vmem:[%s2371_s1 + $0x4f8] sm:$0xff] }
  0x3c   :  { %1348 = vmatprep.subr.bf16.mxu1 %v1347_v3  ;;  %v153_v3 = vld [vmem:[%s2371_s1 + $0x430] sm:$0xff]  ;;  %v1399_v6 = vpack.c.bf16 %v202_v63, %v201_v62 }
  0x3d   :  { %1318 = vmatpush3.bf16.msra.mxu0 %v1317_v9  ;;  %v172_v9 = vld [vmem:[%s2371_s1 + $0x4c8] sm:$0xff]  ;;  %v1369_v12 = vpack.c.bf16 %v154_v4, %v153_v3  ;;  %v177_v48 = vld [vmem:[%s2371_s1 + $0x4f0] sm:$0xff] }
  0x3e   :  { %1320 = vmatprep.subr.bf16.mxu0 %v1319_v11  ;;  %v204_v11 = vld [vmem:[%s2371_s1 + $0x5c8] sm:$0xff]  ;;  %v1371_v15 = vpack.c.bf16 %v172_v9, %v171_v8 }
  0x3f   :  { %1350 = vmatpush3.bf16.msra.mxu1 %v1349_v10  ;;  %v203_v10 = vld [vmem:[%s2371_s1 + $0x5c0] sm:$0xff] }
  0x40   :  { %1352 = vmatprep.subr.bf16.mxu1 %v1351_v16  ;;  %v155_v16 = vld [vmem:[%s2371_s1 + $0x440] sm:$0xff]  ;;  %v1403_v19 = vpack.c.bf16 %v204_v11, %v203_v10 }
  0x41   :  { %1322 = vmatpush3.bf16.msra.mxu0 %v1321_v22  ;;  %v174_v22 = vld [vmem:[%s2371_s1 + $0x4d8] sm:$0xff] }
  0x42   :  { %1356 = vmatprep.subr.bf16.mxu0 %v1355_v25  ;;  %v1373_v25 = vpack.c.bf16 %v156_v17, %v155_v16  ;;  %v1375_v27 = vpack.c.bf16 %v174_v22, %v173_v21 }
  0x43   :  { %1354 = vmatpush3.bf16.msra.mxu1 %v1353_v24  ;;  %v206_v24 = vld [vmem:[%s2371_s1 + $0x5d8] sm:$0xff] }
  0x44   :  { %1388 = vmatprep.subr.bf16.mxu1 %v1387_v29  ;;  %575 = vmatmul.mubr.f32.vlgmr.msra.gmra.mrb[2].mxu0 %v1846_v33  ;;  %v1393_v33 = vpack.c.bf16 %v182_v46, %v181_v41  ;;  %v158_v29 = vld [vmem:[%s2371_s1 + $0x458] sm:$0xff]  ;;  %v1407_v31 = vpack.c.bf16 %v206_v24, %v205_v23  ;;  %v192_v46 = vld [vmem:[%s2371_s1 + $0x568] sm:$0xff] }
  0x45   :  { %1358 = vmatpush3.bf16.msra.mxu0 %v1357_v35  ;;  %714 = vmatprep.mubr.f32.mxu0 %v335_v51  ;;  %v176_v35 = vld [vmem:[%s2371_s1 + $0x4e8] sm:$0xff] }
  0x46   :  { %645 = vmatmul.mubr.f32.vlgmr.msra.gmra.mrb[2].mxu1 %v1869_v45  ;;  %1360 = vmatprep.subr.bf16.mxu0 %v1359_v38  ;;  %v336_v45 = vcombine.high %v2009_v52, %v2009_v52  ;;  %v1377_v38 = vpack.c.bf16 %v158_v29, %v157_v28  ;;  %v1379_v41 = vpack.c.bf16 %v176_v35, %v175_v34 }
  0x47   :  { %1390 = vmatpush3.bf16.msra.mxu1 %v1389_v36  ;;  %v207_v36 = vld [vmem:[%s2371_s1 + $0x5e0] sm:$0xff] }
  0x48   :  { %1392 = vmatprep.subr.bf16.mxu1 %v1391_v44  ;;  %784 = vmatprep.mubr.f32.mxu1 %v336_v45  ;;  %v191_v44 = vld [vmem:[%s2371_s1 + $0x560] sm:$0xff]  ;;  %v1411_v47 = vpack.c.bf16 %v208_v37, %v207_v36 }
  0x49   :  { %1362 = vmatpush3.bf16.msra.mxu0 %v1361_v53 }
  0x4a   :  { %1364 = vmatprep.subr.bf16.mxu0 %v1363_v54 }
  0x4b   :  { %1394 = vmatpush3.bf16.msra.mxu1 %v1393_v33 }
  0x4c   :  { %1396 = vmatprep.subr.bf16.mxu1 %v1395_v58 }
  0x4d   :  { %1366 = vmatpush3.bf16.msra.mxu0 %v1365_v0 }
  0x4e   :  { %1368 = vmatprep.subr.bf16.mxu0 %v1367_v2 }
  0x4f   :  { %1398 = vmatpush3.bf16.msra.mxu1 %v1397_v1 }
  0x50   :  { %1400 = vmatprep.subr.bf16.mxu1 %v1399_v6 }
  0x51   :  { %1370 = vmatpush3.bf16.msra.mxu0 %v1369_v12 }
  0x52   :  { %1372 = vmatprep.subr.bf16.mxu0 %v1371_v15 }
  0x53   :  { %1402 = vmatpush3.bf16.msra.mxu1 %v1401_v14 }
  0x54   :  { %1404 = vmatprep.subr.bf16.mxu1 %v1403_v19 }
  0x55   :  { %1374 = vmatpush3.bf16.msra.mxu0 %v1373_v25 }
  0x56   :  { %1376 = vmatprep.subr.bf16.mxu0 %v1375_v27 }
  0x57   :  { %1406 = vmatpush3.bf16.msra.mxu1 %v1405_v26 }
  0x58   :  { %1408 = vmatprep.subr.bf16.mxu1 %v1407_v31 }
  0x59   :  { %8 = vsyncpa [#allocation3], 0  ;;  %v209_v50 = vld [vmem:[%s2371_s1 + $0x5f0] sm:$0xff]  ;;  %v210_v51 = vld [vmem:[%s2371_s1 + $0x5f8] sm:$0xff]  ;;  %1378 = vmatpush3.bf16.msra.mxu0 %v1377_v38  ;;  %v1381_v53 = vpack.c.bf16 %v160_v43, %v159_v39  ;;  %v1413_v54 = vpack.c.bf16 %v192_v46, %v191_v44  ;;  %v1383_v55 = vpack.c.bf16 %v178_v49, %v177_v48  ;;  %vm930_vm0 = vcmask 74752  }
  0x5a   :  { %v18_v33 = vld [vmem:[%s2370_s0 + $0x18] sm:$0xff]  ;;  %1380 = vmatprep.subr.bf16.mxu0 %v1379_v41  ;;  %v161_v56 = vld [vmem:[%s2371_s1 + $0x470] sm:$0xff]  ;;  %v1415_v58 = vpack.c.bf16 %v210_v51, %v209_v50  ;;  %v227_v60 = vld [vmem:[%s2371_s1 + $0x680] sm:$0xff] }
  0x5b   :  { %1410 = vmatpush3.bf16.msra.mxu1 %v1409_v40  ;;  %v162_v57 = vld [vmem:[%s2371_s1 + $0x478] sm:$0xff]  ;;  %v193_v45 = vld [vmem:[%s2371_s1 + $0x570] sm:$0xff]  ;;  %v228_v61 = vld [vmem:[%s2371_s1 + $0x688] sm:$0xff]  ;;  %v337_v0 = vcombine.high %v18_v33, %v18_v33  ;;  %v2180_v11 = vrot.slane %v18_v33, %v1685_v13 }
  0x5c   :  { %1412 = vmatprep.subr.bf16.mxu1 %v1411_v47  ;;  %v194_v59 = vld [vmem:[%s2371_s1 + $0x578] sm:$0xff]  ;;  %v259_v62 = vld [vmem:[%s2371_s1 + $0x780] sm:$0xff]  ;;  %v260_v63 = vld [vmem:[%s2371_s1 + $0x788] sm:$0xff]  ;;  %v1385_v1 = vpack.c.bf16 %v162_v57, %v161_v56  ;;  %v1419_v3 = vpack.c.bf16 %v228_v61, %v227_v60 }
  0x5d   :  { %1382 = vmatpush3.bf16.msra.mxu0 %v1381_v53  ;;  %v1417_v2 = vpack.c.bf16 %v194_v59, %v193_v45  ;;  %v211_v4 = vld [vmem:[%s2371_s1 + $0x600] sm:$0xff]  ;;  %v212_v5 = vld [vmem:[%s2371_s1 + $0x608] sm:$0xff]  ;;  %v1451_v7 = vpack.c.bf16 %v260_v63, %v259_v62  ;;  %v229_v9 = vld [vmem:[%s2371_s1 + $0x690] sm:$0xff]  ;;  %v2189_v15 = vrot.slane %v337_v0, %v1685_v13  ;;  %v352_v25 = vcombine.high %v2180_v11, %v2180_v11 }
  0x5e   :  { %1384 = vmatprep.subr.bf16.mxu0 %v1383_v55  ;;  %v243_v6 = vld [vmem:[%s2371_s1 + $0x700] sm:$0xff]  ;;  %v244_v8 = vld [vmem:[%s2371_s1 + $0x708] sm:$0xff]  ;;  %v230_v10 = vld [vmem:[%s2371_s1 + $0x698] sm:$0xff]  ;;  %v1421_v16 = vpack.c.bf16 %v212_v5, %v211_v4 }
  0x5f   :  { %1414 = vmatpush3.bf16.msra.mxu1 %v1413_v54  ;;  %v261_v12 = vld [vmem:[%s2371_s1 + $0x790] sm:$0xff]  ;;  %v262_v14 = vld [vmem:[%s2371_s1 + $0x798] sm:$0xff]  ;;  %v1453_v17 = vpack.c.bf16 %v244_v8, %v243_v6  ;;  %v1423_v18 = vpack.c.bf16 %v230_v10, %v229_v9  ;;  %v231_v23 = vld [vmem:[%s2371_s1 + $0x6a0] sm:$0xff]  ;;  %v353_v28 = vcombine.high %v2189_v15, %v2189_v15 }
  0x60   :  { %1416 = vmatprep.subr.bf16.mxu1 %v1415_v58  ;;  %v213_v19 = vld [vmem:[%s2371_s1 + $0x610] sm:$0xff]  ;;  %v214_v20 = vld [vmem:[%s2371_s1 + $0x618] sm:$0xff]  ;;  %v1455_v13 = vpack.c.bf16 %v262_v14, %v261_v12  ;;  %v232_v24 = vld [vmem:[%s2371_s1 + $0x6a8] sm:$0xff] }
  0x61   :  { %1386 = vmatpush3.bf16.msra.mxu0 %v1385_v1  ;;  %v245_v21 = vld [vmem:[%s2371_s1 + $0x710] sm:$0xff]  ;;  %v246_v22 = vld [vmem:[%s2371_s1 + $0x718] sm:$0xff]  ;;  %v263_v26 = vld [vmem:[%s2371_s1 + $0x7a0] sm:$0xff]  ;;  %v1425_v29 = vpack.c.bf16 %v214_v20, %v213_v19  ;;  %v1427_v31 = vpack.c.bf16 %v232_v24, %v231_v23 }
  0x62   :  { %1420 = vmatprep.subr.bf16.mxu0 %v1419_v3  ;;  %v264_v27 = vld [vmem:[%s2371_s1 + $0x7a8] sm:$0xff]  ;;  %v1457_v30 = vpack.c.bf16 %v246_v22, %v245_v21  ;;  %v247_v34 = vld [vmem:[%s2371_s1 + $0x720] sm:$0xff]  ;;  %v233_v36 = vld [vmem:[%s2371_s1 + $0x6b0] sm:$0xff] }
  0x63   :  { %1418 = vmatpush3.bf16.msra.mxu1 %v1417_v2  ;;  %v216_v32 = vld [vmem:[%s2371_s1 + $0x628] sm:$0xff]  ;;  %v1459_v35 = vpack.c.bf16 %v264_v27, %v263_v26  ;;  %v234_v37 = vld [vmem:[%s2371_s1 + $0x6b8] sm:$0xff]  ;;  %v265_v38 = vld [vmem:[%s2371_s1 + $0x7b0] sm:$0xff] }
  0x64   :  { %1452 = vmatprep.subr.bf16.mxu1 %v1451_v7  ;;  %715 = vmatmul.mubr.f32.vlgmr.msra.gmra.mrb[4].mxu0 %v1988_v42  ;;  %v215_v42 = vld [vmem:[%s2371_s1 + $0x620] sm:$0xff]  ;;  %v266_v39 = vld [vmem:[%s2371_s1 + $0x7b8] sm:$0xff]  ;;  %v1431_v43 = vpack.c.bf16 %v234_v37, %v233_v36  ;;  %v217_v44 = vld [vmem:[%s2371_s1 + $0x630] sm:$0xff] }
  0x65   :  { %1422 = vmatpush3.bf16.msra.mxu0 %v1421_v16  ;;  %854 = vmatprep.mubr.f32.mxu0 %v352_v25  ;;  %v1429_v40 = vpack.c.bf16 %v216_v32, %v215_v42  ;;  %v218_v46 = vld [vmem:[%s2371_s1 + $0x638] sm:$0xff]  ;;  %v249_v47 = vld [vmem:[%s2371_s1 + $0x730] sm:$0xff]  ;;  %v1463_v48 = vpack.c.bf16 %v266_v39, %v265_v38  ;;  %v235_v50 = vld [vmem:[%s2371_s1 + $0x6c0] sm:$0xff] }
  0x66   :  { %785 = vmatmul.mubr.f32.vlgmr.msra.gmra.mrb[4].mxu1 %v2009_v52  ;;  %1424 = vmatprep.subr.bf16.mxu0 %v1423_v18  ;;  %v248_v52 = vld [vmem:[%s2371_s1 + $0x728] sm:$0xff]  ;;  %v250_v49 = vld [vmem:[%s2371_s1 + $0x738] sm:$0xff]  ;;  %v267_v53 = vld [vmem:[%s2371_s1 + $0x7c0] sm:$0xff]  ;;  %v1433_v54 = vpack.c.bf16 %v218_v46, %v217_v44 }
  0x67   :  { %1454 = vmatpush3.bf16.msra.mxu1 %v1453_v17  ;;  %924 = vmatprep.mubr.f32.mxu1 %v353_v28  ;;  %v1461_v41 = vpack.c.bf16 %v248_v52, %v247_v34  ;;  %v236_v51 = vld [vmem:[%s2371_s1 + $0x6c8] sm:$0xff]  ;;  %v1465_v55 = vpack.c.bf16 %v250_v49, %v249_v47  ;;  %v219_v57 = vld [vmem:[%s2371_s1 + $0x640] sm:$0xff]  ;;  %v237_v61 = vld [vmem:[%s2371_s1 + $0x6d0] sm:$0xff] }
  0x68   :  { %1456 = vmatprep.subr.bf16.mxu1 %v1455_v13  ;;  %v268_v33 = vld [vmem:[%s2371_s1 + $0x7c8] sm:$0xff]  ;;  %v1435_v56 = vpack.c.bf16 %v236_v51, %v235_v50  ;;  %v251_v58 = vld [vmem:[%s2371_s1 + $0x740] sm:$0xff]  ;;  %v238_v62 = vld [vmem:[%s2371_s1 + $0x6d8] sm:$0xff] }
  0x69   :  { %1426 = vmatpush3.bf16.msra.mxu0 %v1425_v29  ;;  %v220_v45 = vld [vmem:[%s2371_s1 + $0x648] sm:$0xff]  ;;  %v1467_v59 = vpack.c.bf16 %v268_v33, %v267_v53  ;;  %v269_v63 = vld [vmem:[%s2371_s1 + $0x7d0] sm:$0xff]  ;;  %v270_v0 = vld [vmem:[%s2371_s1 + $0x7d8] sm:$0xff]  ;;  %v1439_v3 = vpack.c.bf16 %v238_v62, %v237_v61 }
  0x6a   :  { %1428 = vmatprep.subr.bf16.mxu0 %v1427_v31  ;;  %v252_v60 = vld [vmem:[%s2371_s1 + $0x748] sm:$0xff]  ;;  %v1437_v1 = vpack.c.bf16 %v220_v45, %v219_v57  ;;  %v221_v4 = vld [vmem:[%s2371_s1 + $0x650] sm:$0xff]  ;;  %v222_v5 = vld [vmem:[%s2371_s1 + $0x658] sm:$0xff]  ;;  %v1471_v7 = vpack.c.bf16 %v270_v0, %v269_v63 }
  0x6b   :  { %1458 = vmatpush3.bf16.msra.mxu1 %v1457_v30  ;;  %v1469_v2 = vpack.c.bf16 %v252_v60, %v251_v58  ;;  %v253_v6 = vld [vmem:[%s2371_s1 + $0x750] sm:$0xff]  ;;  %v254_v8 = vld [vmem:[%s2371_s1 + $0x758] sm:$0xff]  ;;  %v239_v9 = vld [vmem:[%s2371_s1 + $0x6e0] sm:$0xff]  ;;  %v1441_v16 = vpack.c.bf16 %v222_v5, %v221_v4 }
  0x6c   :  { %1460 = vmatprep.subr.bf16.mxu1 %v1459_v35  ;;  %v240_v10 = vld [vmem:[%s2371_s1 + $0x6e8] sm:$0xff]  ;;  %v271_v12 = vld [vmem:[%s2371_s1 + $0x7e0] sm:$0xff]  ;;  %v1473_v17 = vpack.c.bf16 %v254_v8, %v253_v6  ;;  %v241_v23 = vld [vmem:[%s2371_s1 + $0x6f0] sm:$0xff] }
  0x6d   :  { %1430 = vmatpush3.bf16.msra.mxu0 %v1429_v40  ;;  %v272_v14 = vld [vmem:[%s2371_s1 + $0x7e8] sm:$0xff]  ;;  %v1443_v18 = vpack.c.bf16 %v240_v10, %v239_v9  ;;  %v223_v19 = vld [vmem:[%s2371_s1 + $0x660] sm:$0xff]  ;;  %v242_v24 = vld [vmem:[%s2371_s1 + $0x6f8] sm:$0xff] }
  0x6e   :  { %1432 = vmatprep.subr.bf16.mxu0 %v1431_v43  ;;  %v224_v20 = vld [vmem:[%s2371_s1 + $0x668] sm:$0xff]  ;;  %v255_v21 = vld [vmem:[%s2371_s1 + $0x760] sm:$0xff]  ;;  %v1475_v13 = vpack.c.bf16 %v272_v14, %v271_v12  ;;  %v273_v25 = vld [vmem:[%s2371_s1 + $0x7f0] sm:$0xff]  ;;  %v1447_v29 = vpack.c.bf16 %v242_v24, %v241_v23 }
  0x6f   :  { %1462 = vmatpush3.bf16.msra.mxu1 %v1461_v41  ;;  %v256_v22 = vld [vmem:[%s2371_s1 + $0x768] sm:$0xff]  ;;  %v274_v26 = vld [vmem:[%s2371_s1 + $0x7f8] sm:$0xff]  ;;  %v1445_v27 = vpack.c.bf16 %v224_v20, %v223_v19  ;;  %v225_v30 = vld [vmem:[%s2371_s1 + $0x670] sm:$0xff] }
  0x70   :  { %1464 = vmatprep.subr.bf16.mxu1 %v1463_v48  ;;  %v1477_v28 = vpack.c.bf16 %v256_v22, %v255_v21  ;;  %v226_v31 = vld [vmem:[%s2371_s1 + $0x678] sm:$0xff]  ;;  %v1479_v42 = vpack.c.bf16 %v274_v26, %v273_v25  ;;  %v257_v32 = vld [vmem:[%s2371_s1 + $0x770] sm:$0xff]  ;;  %v946_v37 = vld [vmem:[%s2372_s2] ss:$0 sm:$0xff] }
  0x71   :  { %1434 = vmatpush3.bf16.msra.mxu0 %v1433_v54  ;;  %v258_v34 = vld [vmem:[%s2371_s1 + $0x778] sm:$0xff]  ;;  %v1449_v35 = vpack.c.bf16 %v226_v31, %v225_v30  ;;  %s1514_s1 = smov [#allocation2]  }
  0x72   :  { %1436 = vmatprep.subr.bf16.mxu0 %v1435_v56  ;;  %v1481_v52 = vpack.c.bf16 %v258_v34, %v257_v32  ;;  %s938_s2 = sshll.u32 %s1514_s1, 4  ;;  %s939_s2 = int_to_ptr.vmem [resolvable:$true] %s938_s2 }
  0x73   :  { %1466 = vmatpush3.bf16.msra.mxu1 %v1465_v55  ;;  %s1489_s16 = scalar_lea.vmem %s939_s2, 32  ;;  %p1494_p1 = scmp.lt.s32.totalorder %s939_s2, %s939_s2 }
  0x74   :  { %1468 = vmatprep.subr.bf16.mxu1 %v1467_v59  ;;  %p1490_p0 = scmp.ne.s32.totalorder %s939_s2, %s1489_s16  ;;  %p1495_p2 = scmp.lt.s32.totalorder %s1489_s16, %s1489_s16 }
  0x75   :  { %1438 = vmatpush3.bf16.msra.mxu0 %v1437_v1 }
  0x76   :  { %1440 = vmatprep.subr.bf16.mxu0 %v1439_v3  ;;  %p1496_p3 = por %p1495_p2, %p1494_p1 }
  0x77   :  { %1470 = vmatpush3.bf16.msra.mxu1 %v1469_v2 }
  0x78   :  { %1472 = vmatprep.subr.bf16.mxu1 %v1471_v7  ;;  %p1497_p4 = pnand %p1496_p3, %p1490_p0 }
  0x79   :  { %1442 = vmatpush3.bf16.msra.mxu0 %v1441_v16 }
  0x7a   :  { %1444 = vmatprep.subr.bf16.mxu0 %v1443_v18 }
  0x7b   :  { %1474 = vmatpush3.bf16.msra.mxu1 %v1473_v17 }
  0x7c   :  { %1476 = vmatprep.subr.bf16.mxu1 %v1475_v13 }
  0x7d   :  { %1446 = vmatpush3.bf16.msra.mxu0 %v1445_v27 }
  0x7e   :  { %1448 = vmatprep.subr.bf16.mxu0 %v1447_v29 }
  0x7f   :  { %1478 = vmatpush3.bf16.msra.mxu1 %v1477_v28 }
  0x80   :  { %1480 = vmatprep.subr.bf16.mxu1 %v1479_v42 }
  0x81   :  { %1450 = vmatpush3.bf16.msra.mxu0 %v1449_v35 }
  0x83   :  { %1482 = vmatpush3.bf16.msra.mxu1 %v1481_v52 }
  0x84   :  { %855 = vmatmul.mubr.f32.vlgmr.msra.gmra.mrb[6].mxu0 %v2180_v11 }
  0x86   :  { %925 = vmatmul.mubr.f32.vlgmr.msra.gmra.mrb[6].mxu1 %v2189_v15 }
  0xf7   :  { %v979_v36 = vpop.f32.mrb[0].mxu0 }
  0xf8   :  { %v980_v38 = vpop.f32.mrb[1].mxu0 }
  0xf9   :  { %v1014_v39 = vpop.f32.mrb[0].mxu1  ;;  %v981_v40 = vadd.f32 %v980_v38, %v979_v36 }
  0xfa   :  { %v1015_v41 = vpop.f32.mrb[1].mxu1 }
  0xfb   :  { %v1016_v43 = vadd.f32 %v1015_v41, %v1014_v39  ;;  %v437_v44 = vadd.f32 %v981_v40, %v946_v37 }
  0xfd   :  { %v507_v46 = vadd.f32 %v1016_v43, %v437_v44 }
 0x117   :  { %v1049_v47 = vpop.f32.mrb[2].mxu0 }
 0x118   :  { %v1050_v48 = vpop.f32.mrb[3].mxu0 }
 0x119   :  { %v1084_v49 = vpop.f32.mrb[2].mxu1  ;;  %v1051_v50 = vadd.f32 %v1050_v48, %v1049_v47 }
 0x11a   :  { %v1085_v51 = vpop.f32.mrb[3].mxu1 }
 0x11b   :  { %v1086_v11 = vadd.f32 %v1085_v51, %v1084_v49  ;;  %v577_v53 = vadd.f32 %v1051_v50, %v507_v46 }
 0x11d   :  { %v647_v15 = vadd.f32 %v1086_v11, %v577_v53 }
 0x137   :  { %v1119_v33 = vpop.f32.mrb[4].mxu0 }
 0x138   :  { %v1120_v54 = vpop.f32.mrb[5].mxu0 }
 0x139   :  { %v1154_v55 = vpop.f32.mrb[4].mxu1  ;;  %v1121_v56 = vadd.f32 %v1120_v54, %v1119_v33 }
 0x13a   :  { %v1155_v57 = vpop.f32.mrb[5].mxu1 }
 0x13b   :  { %v1156_v45 = vadd.f32 %v1155_v57, %v1154_v55  ;;  %v717_v58 = vadd.f32 %v1121_v56, %v647_v15 }
 0x13d   :  { %v787_v59 = vadd.f32 %v1156_v45, %v717_v58 }
 0x157   :  { %v1189_v60 = vpop.f32.mrb[6].mxu0 }
 0x158   :  { %v1190_v61 = vpop.f32.mrb[7].mxu0 }
 0x159   :  { %v1224_v62 = vpop.f32.mrb[6].mxu1  ;;  %v1191_v63 = vadd.f32 %v1190_v61, %v1189_v60 }
 0x15a   :  { %v1225_v0 = vpop.f32.mrb[7].mxu1 }
 0x15b   :  { %v1226_v1 = vadd.f32 %v1225_v0, %v1224_v62  ;;  %v857_v2 = vadd.f32 %v1191_v63, %v787_v59 }
 0x15d   :  { %v927_v3 = vadd.f32 %v1226_v1, %v857_v2 }
 0x15f   :  { %931 = vst.msk [vmem:[#allocation2] sm:$0x3] %vm930_vm0, %v927_v3 }
 0x160   :  { %1500 = shalt.err (!%p1497_p4)
}
 0x161   :  { %s1501_s19 = scalar_lea.hbm %s2373_s3, 32 }
 0x162   :  { %p1502_p5 = scmp.ne.s32.totalorder %s2373_s3, %s1501_s19  ;;  %p1505_p6 = scmp.lt.u32.totalorder %s1501_s19, %s2373_s3 }
 0x164   :  { %p1507_p7 = pnand %p1505_p6, %p1502_p5 }
 0x166   :  { %1510 = shalt.err (!%p1507_p7)
}
 0x167   :  { %941 = dma.vmem_to_hbm [thread:$0]  %s939_s2, 32, %s2373_s3, [#allocation3]  }
 0x168   :  { %1511 = dma.done.wait [#allocation3], 32  }
 0x169   :  { %1512 = vsyncadd [#allocation3], 4294967264 }
 0x16a   :  { %945 = vsyncpa [#allocation3], 1 }

</bundles_post_ra>
